<compile_context>
chip_gen: v5e
topology: v5e:2x2
jax: 0.10.0
libtpu: 0.0.40
codegen_flags: <defaults>
</compile_context>

<pallas_src>
import functools

import jax
import jax.numpy as jnp
from jax.experimental import pallas as pl
from jax.experimental.pallas import tpu as pltpu

EPS = 1e-5        # PyTorch InstanceNorm2d default eps
LANE = 128        # TPU lane width


def _round_up(n, m):
    return (n + m - 1) // m * m


# ----------------------------------------------------------------------------
# In-kernel helpers
# ----------------------------------------------------------------------------
def _halo_slab(src_ref, r0, s_idx, n_strips, strip_h, H):
    """Load rows [reflect(r0-1), r0 .. r0+S-1, reflect(r0+S)] from a (H, W, C)
    ref -> (S+2, W, C) value.  ReflectionPad2d(1) semantics at image edges."""
    top = jnp.where(s_idx == 0, 1, r0 - 1)
    bot = jnp.where(s_idx == n_strips - 1, H - 2, r0 + strip_h)
    return jnp.concatenate(
        [src_ref[pl.ds(top, 1)],
         src_ref[pl.ds(r0, strip_h)],
         src_ref[pl.ds(bot, 1)]], axis=0)


def _conv3x3_strip(slab, w_ref, strip_h):
    """3x3 conv (reflection already folded into the slab rows) for one strip.

    slab:  (S+2, W, C) activations (any float dtype; cast to bf16 for the MXU).
    w_ref: (3, 3, Cin, Cout) bf16 ref; w_ref[ky, kx] is (Cin, Cout).
    Returns (S*W, Cout) f32 conv output for the strip's S rows (no bias).
    """
    _, W, C = slab.shape
    xb = slab.astype(jnp.bfloat16)
    # W-axis taps with reflection (lane dim untouched; leading-dim slices are
    # cheap, the sublane-misaligned copy is handled by the XLU).
    left = jnp.concatenate([xb[:, 1:2], xb[:, :-1]], axis=1)     # col reflect(j-1)
    right = jnp.concatenate([xb[:, 1:], xb[:, -2:-1]], axis=1)   # col reflect(j+1)
    taps = (left, xb, right)

    acc = None
    for ky in range(3):
        for kx in range(3):
            # Row-offset slice of the halo slab = the ky tap; W % 8 == 0 keeps
            # this slice + reshape layout-preserving (pure addressing).
            lhs = taps[kx][ky:ky + strip_h].reshape(strip_h * W, C)
            d = jnp.dot(lhs, w_ref[ky, kx], preferred_element_type=jnp.float32)
            acc = d if acc is None else acc + d
    return acc


def _accum_stats(s_ref, a, first):
    """s_ref: (2, C) f32 [sum, sumsq]; a: (N, C) f32 strip values."""
    @pl.when(first)
    def _():
        s_ref[...] = jnp.zeros_like(s_ref)
    s_ref[0:1, :] += jnp.sum(a, axis=0, keepdims=True)
    s_ref[1:2, :] += jnp.sum(a * a, axis=0, keepdims=True)


def _stats_to_affine(s_ref, inv_n, C):
    """Global per-channel mean / rstd from accumulated sum & sumsq."""
    mean = s_ref[0:1, :] * inv_n                      # (1, C)
    var = s_ref[1:2, :] * inv_n - mean * mean
    rstd = jax.lax.rsqrt(var + EPS)
    return mean.reshape(1, 1, C), rstd.reshape(1, 1, C)


# ----------------------------------------------------------------------------
# Kernel body: grid = (batch, sweep, strip)
# ----------------------------------------------------------------------------
def _resnet_block_kernel(x_ref, w1_ref, w2_ref, o_ref,
                         h1_ref, s1_ref, s2_ref, *, strip_h):
    H, W, C = x_ref.shape
    S = strip_h
    inv_n = 1.0 / float(H * W)

    sweep = pl.program_id(1)
    s_idx = pl.program_id(2)
    n_strips = pl.num_programs(2)

    r0 = s_idx * S
    if S % 8 == 0:
        r0 = pl.multiple_of(r0, 8)

    # ---- sweep 0: conv1 per strip -> raw f32 into h1_ref, accumulate IN1 stats
    @pl.when(sweep == 0)
    def _():
        slab = _halo_slab(x_ref, r0, s_idx, n_strips, S, H)       # (S+2, W, C)
        a1 = _conv3x3_strip(slab, w1_ref, S)                      # (S*W, C) f32
        h1_ref[pl.ds(r0, S)] = a1.reshape(S, W, C)
        _accum_stats(s1_ref, a1, s_idx == 0)

    # ---- sweep 1: IN1 + ReLU + conv2 per strip -> raw result into the resident
    #      output block, accumulate IN2 stats
    @pl.when(sweep == 1)
    def _():
        mean1, rstd1 = _stats_to_affine(s1_ref, inv_n, C)
        slab = _halo_slab(h1_ref, r0, s_idx, n_strips, S, H)      # (S+2, W, C) f32
        slab = jnp.maximum((slab - mean1) * rstd1, 0.0)
        a2 = _conv3x3_strip(slab, w2_ref, S)                      # (S*W, C) f32
        o_ref[pl.ds(r0, S)] = a2.reshape(S, W, C).astype(o_ref.dtype)
        _accum_stats(s2_ref, a2, s_idx == 0)

    # ---- sweep 2: IN2 normalize + residual add
    @pl.when(sweep == 2)
    def _():
        mean2, rstd2 = _stats_to_affine(s2_ref, inv_n, C)
        y = o_ref[pl.ds(r0, S)].astype(jnp.float32)               # raw conv2 strip
        xres = x_ref[pl.ds(r0, S)].astype(jnp.float32)
        out = xres + (y - mean2) * rstd2
        o_ref[pl.ds(r0, S)] = out.astype(o_ref.dtype)


# ----------------------------------------------------------------------------
# Host-side wrappers
# ----------------------------------------------------------------------------
def prepare_params(w1, w2, c_pad):
    """PyTorch OIHW conv weights -> (ky, kx, Cin, Cout) bf16, channel-padded.
    Biases are intentionally dropped: exact under InstanceNorm2d(affine=False).
    Do this once per model, outside the per-call path."""
    def prep(w):
        c = w.shape[0]
        wt = jnp.transpose(w, (2, 3, 1, 0))                       # (ky, kx, Cin, Cout)
        wt = jnp.pad(wt, ((0, 0), (0, 0), (0, c_pad - c), (0, c_pad - c)))
        return wt.astype(jnp.bfloat16)
    return prep(w1), prep(w2)


def _pick_strip(H, strip_h=None):
    if strip_h is not None:
        return strip_h
    for s in (32, 16, 8):
        if H % s == 0:
            return s
    return H   # single whole-image strip


def _vmem_limit_bytes(H, W, Cp, S, x_dtype):
    """Shape-derived VMEM request, clamped to this generation's capacity."""
    itemsize = jnp.dtype(x_dtype).itemsize
    img = H * W * Cp
    est = (2 * img * itemsize            # input block (double-buffered)
           + 2 * img * itemsize          # output block (double-buffered)
           + img * 4                     # raw-conv1 f32 scratch
           + 4 * 9 * Cp * Cp * 2         # two bf16 weight slabs, double-buffered
           + 8 * (S + 2) * W * Cp * 4)   # strip temporaries (slabs, taps, acc)
    est = int(est * 1.3) + (8 << 20)
    try:
        cap = int(pltpu.get_tpu_info().vmem_capacity_bytes)
    except Exception:
        cap = 128 << 20                  # v5e/v6e physical VMEM
    return int(max(32 << 20, min(est, cap - (8 << 20))))


def resnet_block_nhwc(x_nhwc, w1c, w2c, *, strip_h=None):
    """Core kernel call.  x_nhwc: (B, H, W, Cp), Cp a multiple of 128;
    w1c/w2c from prepare_params."""
    B, H, W, Cp = x_nhwc.shape
    assert H >= 2 and W >= 2, "ReflectionPad2d(1) needs H, W >= 2"
    assert Cp % LANE == 0
    assert W % 8 == 0, "W must be a multiple of 8 for layout-preserving reshapes"
    # TODO(synk): pad W spatially (with reflection bookkeeping) instead of
    # asserting, if odd widths ever matter.

    S = _pick_strip(H, strip_h)
    n_strips = H // S
    assert H % S == 0, (H, S)
    if n_strips > 1:
        assert S % 8 == 0, "strip height must be a multiple of 8"

    kernel = functools.partial(_resnet_block_kernel, strip_h=S)

    return pl.pallas_call(
        kernel,
        out_shape=jax.ShapeDtypeStruct((B, H, W, Cp), x_nhwc.dtype),
        grid_spec=pltpu.PrefetchScalarGridSpec(
            num_scalar_prefetch=0,
            grid=(B, 3, n_strips),                    # batch, sweep, strip
            in_specs=[
                # Whole-image resident blocks per batch (the VMEM pressure came
                # from temporaries, not from x itself); weights are constant.
                pl.BlockSpec((None, H, W, Cp), lambda b, p, s: (b, 0, 0, 0)),
                pl.BlockSpec((3, 3, Cp, Cp), lambda b, p, s: (0, 0, 0, 0)),
                pl.BlockSpec((3, 3, Cp, Cp), lambda b, p, s: (0, 0, 0, 0)),
            ],
            out_specs=pl.BlockSpec((None, H, W, Cp), lambda b, p, s: (b, 0, 0, 0)),
            scratch_shapes=[
                pltpu.VMEM((H, W, Cp), jnp.float32),   # raw conv1 output (per image)
                pltpu.VMEM((2, Cp), jnp.float32),      # IN1 sum / sumsq
                pltpu.VMEM((2, Cp), jnp.float32),      # IN2 sum / sumsq
            ],
        ),
        compiler_params=pltpu.CompilerParams(
            dimension_semantics=("parallel", "arbitrary", "arbitrary"),
            vmem_limit_bytes=_vmem_limit_bytes(H, W, Cp, S, x_nhwc.dtype),
        ),
    )(x_nhwc, w1c, w2c)


def resnet_block(x_nchw, w1, b1, w2, b2, *, strip_h=None):
    """NCHW boundary wrapper (PyTorch convention).  Biases are accepted for
    interface parity but mathematically dead under InstanceNorm(affine=False).
    In a full network keep activations NHWC and call resnet_block_nhwc."""
    del b1, b2
    B, C, H, W = x_nchw.shape
    c_pad = _round_up(C, LANE)
    w1c, w2c = prepare_params(w1, w2, c_pad)

    x = jnp.transpose(x_nchw, (0, 2, 3, 1))                       # NHWC
    if c_pad != C:
        x = jnp.pad(x, ((0, 0), (0, 0), (0, 0), (0, c_pad - C)))
    out = resnet_block_nhwc(x, w1c, w2c, strip_h=strip_h)
    out = out[..., :C]
    return jnp.transpose(out, (0, 3, 1, 2))                       # back to NCHW


# ----------------------------------------------------------------------------
# Pure-JAX reference (f32, WITH biases) of the PyTorch module
# ----------------------------------------------------------------------------
def _reference(x_nchw, w1, b1, w2, b2):
    def refl_pad(a):
        return jnp.pad(a, ((0, 0), (0, 0), (1, 1), (1, 1)), mode="reflect")

    def conv(a, w, b):
        y = jax.lax.conv_general_dilated(
            a, w, window_strides=(1, 1), padding="VALID",
            dimension_numbers=("NCHW", "OIHW", "NCHW"))
        return y + b[None, :, None, None]

    def inorm(a):
        m = jnp.mean(a, axis=(2, 3), keepdims=True)
        v = jnp.mean((a - m) ** 2, axis=(2, 3), keepdims=True)
        return (a - m) * jax.lax.rsqrt(v + EPS)

    h = jnp.maximum(inorm(conv(refl_pad(x_nchw), w1, b1)), 0.0)
    h = inorm(conv(refl_pad(h), w2, b2))
    return x_nchw + h


if __name__ == "__main__":
    B, C, H, W = 2, 32, 16, 16
    key = jax.random.PRNGKey(0)
    kx, kw1, kb1, kw2, kb2 = jax.random.split(key, 5)

    x = jax.random.normal(kx, (B, C, H, W), dtype=jnp.float32)
    # Deterministic synthetic Conv2d parameters (PyTorch OIHW weight layout).
    fan_in = C * 3 * 3
    w1 = jax.random.normal(kw1, (C, C, 3, 3), dtype=jnp.float32) / jnp.sqrt(fan_in)
    b1 = jax.random.normal(kb1, (C,), dtype=jnp.float32) * 0.01
    w2 = jax.random.normal(kw2, (C, C, 3, 3), dtype=jnp.float32) / jnp.sqrt(fan_in)
    b2 = jax.random.normal(kb2, (C,), dtype=jnp.float32) * 0.01

    # strip_h=8 -> 2 H-strips, exercising the halo + cross-strip IN stats path.
    out = jax.block_until_ready(resnet_block(x, w1, b1, w2, b2, strip_h=8))
    assert out.shape == (B, C, H, W) and out.dtype == x.dtype

    ref = jax.block_until_ready(_reference(x, w1, b1, w2, b2))
    err = float(jnp.max(jnp.abs(out - ref)))
    assert err < 6e-2, f"max abs error {err}"
    print("KERNEL_OK")
</pallas_src>

<mosaic_0001>
module attributes {stable_mosaic.version = 11 : i64} {
  func.func @_resnet_block_kernel(%arg0: i32, %arg1: i32, %arg2: i32, %arg3: memref<1x16x16x128xf32, #tpu.memory_space<vmem>>, %arg4: memref<3x3x128x128xbf16, #tpu.memory_space<vmem>>, %arg5: memref<3x3x128x128xbf16, #tpu.memory_space<vmem>>, %arg6: memref<1x16x16x128xf32, #tpu.memory_space<vmem>>, %arg7: memref<16x16x128xf32, #tpu.memory_space<vmem>>, %arg8: memref<2x128xf32, #tpu.memory_space<vmem>>, %arg9: memref<2x128xf32, #tpu.memory_space<vmem>>) attributes {dimension_semantics = [#tpu.dimension_semantics<parallel>, #tpu.dimension_semantics<arbitrary>, #tpu.dimension_semantics<arbitrary>], iteration_bounds = array<i64: 2, 3, 2>, scalar_prefetch = 0 : i64, scratch_operands = 3 : i64, tpu.core_type = #tpu.core_type<tc>, window_params = [{transform_indices = @transform_0, window_bounds = array<i64: 1, 16, 16, 128>}, {pipeline_mode = #tpu.pipeline_mode<synchronous>, transform_indices = @transform_1, window_bounds = array<i64: 3, 3, 128, 128>}, {pipeline_mode = #tpu.pipeline_mode<synchronous>, transform_indices = @transform_2, window_bounds = array<i64: 3, 3, 128, 128>}, {transform_indices = @transform_3, window_bounds = array<i64: 1, 16, 16, 128>}]} {
    %c8_i32 = arith.constant 8 : i32
    %0 = arith.muli %arg2, %c8_i32 : i32
    %1 = tpu.assume_multiple %0, 8 : i32
    %c0_i32 = arith.constant 0 : i32
    %2 = arith.cmpi eq, %arg1, %c0_i32 : i32
    %3 = arith.extui %2 : i1 to i32
    %c0_i32_0 = arith.constant 0 : i32
    %4 = arith.cmpi ne, %3, %c0_i32_0 : i32
    scf.if %4 {
      %c0_i32_3 = arith.constant 0 : i32
      %11 = arith.cmpi eq, %arg2, %c0_i32_3 : i32
      %c1_i32_4 = arith.constant 1 : i32
      %12 = arith.subi %1, %c1_i32_4 : i32
      %c1_i32_5 = arith.constant 1 : i32
      %13 = arith.select %11, %c1_i32_5, %12 : i32
      %c1_i32_6 = arith.constant 1 : i32
      %14 = arith.cmpi eq, %arg2, %c1_i32_6 : i32
      %c8_i32_7 = arith.constant 8 : i32
      %15 = arith.addi %1, %c8_i32_7 : i32
      %c14_i32 = arith.constant 14 : i32
      %16 = arith.select %14, %c14_i32, %15 : i32
      %c0 = arith.constant 0 : index
      %17 = arith.index_cast %13 : i32 to index
      %c0_8 = arith.constant 0 : index
      %c0_9 = arith.constant 0 : index
      %18 = vector.load %arg3[%c0, %17, %c0_8, %c0_9] : memref<1x16x16x128xf32, #tpu.memory_space<vmem>>, vector<1x1x16x128xf32>
      %19 = vector.shape_cast %18 : vector<1x1x16x128xf32> to vector<1x16x128xf32>
      %c0_10 = arith.constant 0 : index
      %20 = arith.index_cast %1 : i32 to index
      %c0_11 = arith.constant 0 : index
      %c0_12 = arith.constant 0 : index
      %21 = vector.load %arg3[%c0_10, %20, %c0_11, %c0_12] : memref<1x16x16x128xf32, #tpu.memory_space<vmem>>, vector<1x8x16x128xf32>
      %22 = vector.shape_cast %21 : vector<1x8x16x128xf32> to vector<8x16x128xf32>
      %c0_13 = arith.constant 0 : index
      %23 = arith.index_cast %16 : i32 to index
      %c0_14 = arith.constant 0 : index
      %c0_15 = arith.constant 0 : index
      %24 = vector.load %arg3[%c0_13, %23, %c0_14, %c0_15] : memref<1x16x16x128xf32, #tpu.memory_space<vmem>>, vector<1x1x16x128xf32>
      %25 = vector.shape_cast %24 : vector<1x1x16x128xf32> to vector<1x16x128xf32>
      %26 = tpu.concatenate %19, %22, %25 in 0 : vector<1x16x128xf32>, vector<8x16x128xf32>, vector<1x16x128xf32> -> vector<10x16x128xf32>
      %27 = arith.truncf %26 : vector<10x16x128xf32> to vector<10x16x128xbf16>
      %28 = vector.extract_strided_slice %27 {offsets = [0, 1, 0], sizes = [10, 1, 128], strides = [1, 1, 1]} : vector<10x16x128xbf16> to vector<10x1x128xbf16>
      %29 = vector.extract_strided_slice %27 {offsets = [0, 0, 0], sizes = [10, 15, 128], strides = [1, 1, 1]} : vector<10x16x128xbf16> to vector<10x15x128xbf16>
      %30 = tpu.concatenate %28, %29 in 1 : vector<10x1x128xbf16>, vector<10x15x128xbf16> -> vector<10x16x128xbf16>
      %31 = vector.extract_strided_slice %27 {offsets = [0, 1, 0], sizes = [10, 15, 128], strides = [1, 1, 1]} : vector<10x16x128xbf16> to vector<10x15x128xbf16>
      %32 = vector.extract_strided_slice %27 {offsets = [0, 14, 0], sizes = [10, 1, 128], strides = [1, 1, 1]} : vector<10x16x128xbf16> to vector<10x1x128xbf16>
      %33 = tpu.concatenate %31, %32 in 1 : vector<10x15x128xbf16>, vector<10x1x128xbf16> -> vector<10x16x128xbf16>
      %34 = vector.extract_strided_slice %30 {offsets = [0, 0, 0], sizes = [8, 16, 128], strides = [1, 1, 1]} : vector<10x16x128xbf16> to vector<8x16x128xbf16>
      %35 = vector.shape_cast %34 : vector<8x16x128xbf16> to vector<128x128xbf16>
      %c0_16 = arith.constant 0 : index
      %c0_17 = arith.constant 0 : index
      %c0_18 = arith.constant 0 : index
      %c0_19 = arith.constant 0 : index
      %36 = vector.load %arg4[%c0_16, %c0_17, %c0_18, %c0_19] : memref<3x3x128x128xbf16, #tpu.memory_space<vmem>>, vector<1x1x128x128xbf16>
      %37 = vector.shape_cast %36 : vector<1x1x128x128xbf16> to vector<128x128xbf16>
      %cst = arith.constant dense<0.000000e+00> : vector<128x128xf32>
      %38 = tpu.matmul %35, %37, %cst {dimension_numbers = #tpu.dot_dimension_numbers<[1], [0], [0], [1], [0, 0, 1, 1], [], []>} : vector<128x128xbf16>, vector<128x128xbf16>, vector<128x128xf32> -> vector<128x128xf32>
      %39 = vector.extract_strided_slice %27 {offsets = [0, 0, 0], sizes = [8, 16, 128], strides = [1, 1, 1]} : vector<10x16x128xbf16> to vector<8x16x128xbf16>
      %40 = vector.shape_cast %39 : vector<8x16x128xbf16> to vector<128x128xbf16>
      %c0_20 = arith.constant 0 : index
      %c1 = arith.constant 1 : index
      %c0_21 = arith.constant 0 : index
      %c0_22 = arith.constant 0 : index
      %41 = vector.load %arg4[%c0_20, %c1, %c0_21, %c0_22] : memref<3x3x128x128xbf16, #tpu.memory_space<vmem>>, vector<1x1x128x128xbf16>
      %42 = vector.shape_cast %41 : vector<1x1x128x128xbf16> to vector<128x128xbf16>
      %cst_23 = arith.constant dense<0.000000e+00> : vector<128x128xf32>
      %43 = tpu.matmul %40, %42, %cst_23 {dimension_numbers = #tpu.dot_dimension_numbers<[1], [0], [0], [1], [0, 0, 1, 1], [], []>} : vector<128x128xbf16>, vector<128x128xbf16>, vector<128x128xf32> -> vector<128x128xf32>
      %44 = arith.addf %38, %43 : vector<128x128xf32>
      %45 = vector.extract_strided_slice %33 {offsets = [0, 0, 0], sizes = [8, 16, 128], strides = [1, 1, 1]} : vector<10x16x128xbf16> to vector<8x16x128xbf16>
      %46 = vector.shape_cast %45 : vector<8x16x128xbf16> to vector<128x128xbf16>
      %c0_24 = arith.constant 0 : index
      %c2 = arith.constant 2 : index
      %c0_25 = arith.constant 0 : index
      %c0_26 = arith.constant 0 : index
      %47 = vector.load %arg4[%c0_24, %c2, %c0_25, %c0_26] : memref<3x3x128x128xbf16, #tpu.memory_space<vmem>>, vector<1x1x128x128xbf16>
      %48 = vector.shape_cast %47 : vector<1x1x128x128xbf16> to vector<128x128xbf16>
      %cst_27 = arith.constant dense<0.000000e+00> : vector<128x128xf32>
      %49 = tpu.matmul %46, %48, %cst_27 {dimension_numbers = #tpu.dot_dimension_numbers<[1], [0], [0], [1], [0, 0, 1, 1], [], []>} : vector<128x128xbf16>, vector<128x128xbf16>, vector<128x128xf32> -> vector<128x128xf32>
      %50 = arith.addf %44, %49 : vector<128x128xf32>
      %51 = vector.extract_strided_slice %30 {offsets = [1, 0, 0], sizes = [8, 16, 128], strides = [1, 1, 1]} : vector<10x16x128xbf16> to vector<8x16x128xbf16>
      %52 = vector.shape_cast %51 : vector<8x16x128xbf16> to vector<128x128xbf16>
      %c1_28 = arith.constant 1 : index
      %c0_29 = arith.constant 0 : index
      %c0_30 = arith.constant 0 : index
      %c0_31 = arith.constant 0 : index
      %53 = vector.load %arg4[%c1_28, %c0_29, %c0_30, %c0_31] : memref<3x3x128x128xbf16, #tpu.memory_space<vmem>>, vector<1x1x128x128xbf16>
      %54 = vector.shape_cast %53 : vector<1x1x128x128xbf16> to vector<128x128xbf16>
      %cst_32 = arith.constant dense<0.000000e+00> : vector<128x128xf32>
      %55 = tpu.matmul %52, %54, %cst_32 {dimension_numbers = #tpu.dot_dimension_numbers<[1], [0], [0], [1], [0, 0, 1, 1], [], []>} : vector<128x128xbf16>, vector<128x128xbf16>, vector<128x128xf32> -> vector<128x128xf32>
      %56 = arith.addf %50, %55 : vector<128x128xf32>
      %57 = vector.extract_strided_slice %27 {offsets = [1, 0, 0], sizes = [8, 16, 128], strides = [1, 1, 1]} : vector<10x16x128xbf16> to vector<8x16x128xbf16>
      %58 = vector.shape_cast %57 : vector<8x16x128xbf16> to vector<128x128xbf16>
      %c1_33 = arith.constant 1 : index
      %c1_34 = arith.constant 1 : index
      %c0_35 = arith.constant 0 : index
      %c0_36 = arith.constant 0 : index
      %59 = vector.load %arg4[%c1_33, %c1_34, %c0_35, %c0_36] : memref<3x3x128x128xbf16, #tpu.memory_space<vmem>>, vector<1x1x128x128xbf16>
      %60 = vector.shape_cast %59 : vector<1x1x128x128xbf16> to vector<128x128xbf16>
      %cst_37 = arith.constant dense<0.000000e+00> : vector<128x128xf32>
      %61 = tpu.matmul %58, %60, %cst_37 {dimension_numbers = #tpu.dot_dimension_numbers<[1], [0], [0], [1], [0, 0, 1, 1], [], []>} : vector<128x128xbf16>, vector<128x128xbf16>, vector<128x128xf32> -> vector<128x128xf32>
      %62 = arith.addf %56, %61 : vector<128x128xf32>
      %63 = vector.extract_strided_slice %33 {offsets = [1, 0, 0], sizes = [8, 16, 128], strides = [1, 1, 1]} : vector<10x16x128xbf16> to vector<8x16x128xbf16>
      %64 = vector.shape_cast %63 : vector<8x16x128xbf16> to vector<128x128xbf16>
      %c1_38 = arith.constant 1 : index
      %c2_39 = arith.constant 2 : index
      %c0_40 = arith.constant 0 : index
      %c0_41 = arith.constant 0 : index
      %65 = vector.load %arg4[%c1_38, %c2_39, %c0_40, %c0_41] : memref<3x3x128x128xbf16, #tpu.memory_space<vmem>>, vector<1x1x128x128xbf16>
      %66 = vector.shape_cast %65 : vector<1x1x128x128xbf16> to vector<128x128xbf16>
      %cst_42 = arith.constant dense<0.000000e+00> : vector<128x128xf32>
      %67 = tpu.matmul %64, %66, %cst_42 {dimension_numbers = #tpu.dot_dimension_numbers<[1], [0], [0], [1], [0, 0, 1, 1], [], []>} : vector<128x128xbf16>, vector<128x128xbf16>, vector<128x128xf32> -> vector<128x128xf32>
      %68 = arith.addf %62, %67 : vector<128x128xf32>
      %69 = vector.extract_strided_slice %30 {offsets = [2, 0, 0], sizes = [8, 16, 128], strides = [1, 1, 1]} : vector<10x16x128xbf16> to vector<8x16x128xbf16>
      %70 = vector.shape_cast %69 : vector<8x16x128xbf16> to vector<128x128xbf16>
      %c2_43 = arith.constant 2 : index
      %c0_44 = arith.constant 0 : index
      %c0_45 = arith.constant 0 : index
      %c0_46 = arith.constant 0 : index
      %71 = vector.load %arg4[%c2_43, %c0_44, %c0_45, %c0_46] : memref<3x3x128x128xbf16, #tpu.memory_space<vmem>>, vector<1x1x128x128xbf16>
      %72 = vector.shape_cast %71 : vector<1x1x128x128xbf16> to vector<128x128xbf16>
      %cst_47 = arith.constant dense<0.000000e+00> : vector<128x128xf32>
      %73 = tpu.matmul %70, %72, %cst_47 {dimension_numbers = #tpu.dot_dimension_numbers<[1], [0], [0], [1], [0, 0, 1, 1], [], []>} : vector<128x128xbf16>, vector<128x128xbf16>, vector<128x128xf32> -> vector<128x128xf32>
      %74 = arith.addf %68, %73 : vector<128x128xf32>
      %75 = vector.extract_strided_slice %27 {offsets = [2, 0, 0], sizes = [8, 16, 128], strides = [1, 1, 1]} : vector<10x16x128xbf16> to vector<8x16x128xbf16>
      %76 = vector.shape_cast %75 : vector<8x16x128xbf16> to vector<128x128xbf16>
      %c2_48 = arith.constant 2 : index
      %c1_49 = arith.constant 1 : index
      %c0_50 = arith.constant 0 : index
      %c0_51 = arith.constant 0 : index
      %77 = vector.load %arg4[%c2_48, %c1_49, %c0_50, %c0_51] : memref<3x3x128x128xbf16, #tpu.memory_space<vmem>>, vector<1x1x128x128xbf16>
      %78 = vector.shape_cast %77 : vector<1x1x128x128xbf16> to vector<128x128xbf16>
      %cst_52 = arith.constant dense<0.000000e+00> : vector<128x128xf32>
      %79 = tpu.matmul %76, %78, %cst_52 {dimension_numbers = #tpu.dot_dimension_numbers<[1], [0], [0], [1], [0, 0, 1, 1], [], []>} : vector<128x128xbf16>, vector<128x128xbf16>, vector<128x128xf32> -> vector<128x128xf32>
      %80 = arith.addf %74, %79 : vector<128x128xf32>
      %81 = vector.extract_strided_slice %33 {offsets = [2, 0, 0], sizes = [8, 16, 128], strides = [1, 1, 1]} : vector<10x16x128xbf16> to vector<8x16x128xbf16>
      %82 = vector.shape_cast %81 : vector<8x16x128xbf16> to vector<128x128xbf16>
      %c2_53 = arith.constant 2 : index
      %c2_54 = arith.constant 2 : index
      %c0_55 = arith.constant 0 : index
      %c0_56 = arith.constant 0 : index
      %83 = vector.load %arg4[%c2_53, %c2_54, %c0_55, %c0_56] : memref<3x3x128x128xbf16, #tpu.memory_space<vmem>>, vector<1x1x128x128xbf16>
      %84 = vector.shape_cast %83 : vector<1x1x128x128xbf16> to vector<128x128xbf16>
      %cst_57 = arith.constant dense<0.000000e+00> : vector<128x128xf32>
      %85 = tpu.matmul %82, %84, %cst_57 {dimension_numbers = #tpu.dot_dimension_numbers<[1], [0], [0], [1], [0, 0, 1, 1], [], []>} : vector<128x128xbf16>, vector<128x128xbf16>, vector<128x128xf32> -> vector<128x128xf32>
      %86 = arith.addf %80, %85 : vector<128x128xf32>
      %87 = vector.shape_cast %86 : vector<128x128xf32> to vector<8x16x128xf32>
      %88 = arith.index_cast %1 : i32 to index
      %c0_58 = arith.constant 0 : index
      %c0_59 = arith.constant 0 : index
      %89 = vector.load %arg7[%88, %c0_58, %c0_59] : memref<16x16x128xf32, #tpu.memory_space<vmem>>, vector<8x16x128xf32>
      tpu.vector_store %arg7[%88, %c0_58, %c0_59], %87 {strides = array<i32>} : memref<16x16x128xf32, #tpu.memory_space<vmem>>, vector<8x16x128xf32>,
      %c0_i32_60 = arith.constant 0 : i32
      %90 = arith.cmpi eq, %arg2, %c0_i32_60 : i32
      %91 = arith.extui %90 : i1 to i32
      %c0_i32_61 = arith.constant 0 : i32
      %92 = arith.cmpi ne, %91, %c0_i32_61 : i32
      scf.if %92 {
        %cst_72 = arith.constant 0.000000e+00 : f32
        %104 = vector.broadcast %cst_72 : f32 to vector<2x128xf32>
        %c0_73 = arith.constant 0 : index
        %c0_74 = arith.constant 0 : index
        %105 = vector.load %arg8[%c0_73, %c0_74] : memref<2x128xf32, #tpu.memory_space<vmem>>, vector<2x128xf32>
        tpu.vector_store %arg8[%c0_73, %c0_74], %104 {strides = array<i32>} : memref<2x128xf32, #tpu.memory_space<vmem>>, vector<2x128xf32>,
      } else {
      }
      %c0_62 = arith.constant 0 : index
      %c0_63 = arith.constant 0 : index
      %93 = vector.load %arg8[%c0_62, %c0_63] : memref<2x128xf32, #tpu.memory_space<vmem>>, vector<1x128xf32>
      %cst_64 = arith.constant dense<0.000000e+00> : vector<128xf32>
      %94 = vector.multi_reduction <add>, %86, %cst_64 [0] : vector<128x128xf32> to vector<128xf32>
      %95 = vector.shape_cast %94 : vector<128xf32> to vector<1x128xf32>
      %96 = arith.addf %93, %95 : vector<1x128xf32>
      %c0_65 = arith.constant 0 : index
      %c0_66 = arith.constant 0 : index
      %97 = vector.load %arg8[%c0_65, %c0_66] : memref<2x128xf32, #tpu.memory_space<vmem>>, vector<1x128xf32>
      tpu.vector_store %arg8[%c0_65, %c0_66], %96 {strides = array<i32>} : memref<2x128xf32, #tpu.memory_space<vmem>>, vector<1x128xf32>,
      %c1_67 = arith.constant 1 : index
      %c0_68 = arith.constant 0 : index
      %98 = vector.load %arg8[%c1_67, %c0_68] : memref<2x128xf32, #tpu.memory_space<vmem>>, vector<1x128xf32>
      %99 = arith.mulf %86, %86 : vector<128x128xf32>
      %cst_69 = arith.constant dense<0.000000e+00> : vector<128xf32>
      %100 = vector.multi_reduction <add>, %99, %cst_69 [0] : vector<128x128xf32> to vector<128xf32>
      %101 = vector.shape_cast %100 : vector<128xf32> to vector<1x128xf32>
      %102 = arith.addf %98, %101 : vector<1x128xf32>
      %c1_70 = arith.constant 1 : index
      %c0_71 = arith.constant 0 : index
      %103 = vector.load %arg8[%c1_70, %c0_71] : memref<2x128xf32, #tpu.memory_space<vmem>>, vector<1x128xf32>
      tpu.vector_store %arg8[%c1_70, %c0_71], %102 {strides = array<i32>} : memref<2x128xf32, #tpu.memory_space<vmem>>, vector<1x128xf32>,
    } else {
    }
    %c1_i32 = arith.constant 1 : i32
    %5 = arith.cmpi eq, %arg1, %c1_i32 : i32
    %6 = arith.extui %5 : i1 to i32
    %c0_i32_1 = arith.constant 0 : i32
    %7 = arith.cmpi ne, %6, %c0_i32_1 : i32
    scf.if %7 {
      %c0 = arith.constant 0 : index
      %c0_3 = arith.constant 0 : index
      %11 = vector.load %arg8[%c0, %c0_3] : memref<2x128xf32, #tpu.memory_space<vmem>>, vector<1x128xf32>
      %cst = arith.constant 3.906250e-03 : f32
      %12 = vector.broadcast %cst : f32 to vector<1x128xf32>
      %13 = arith.mulf %11, %12 : vector<1x128xf32>
      %c1 = arith.constant 1 : index
      %c0_4 = arith.constant 0 : index
      %14 = vector.load %arg8[%c1, %c0_4] : memref<2x128xf32, #tpu.memory_space<vmem>>, vector<1x128xf32>
      %cst_5 = arith.constant 3.906250e-03 : f32
      %15 = vector.broadcast %cst_5 : f32 to vector<1x128xf32>
      %16 = arith.mulf %14, %15 : vector<1x128xf32>
      %17 = arith.mulf %13, %13 : vector<1x128xf32>
      %18 = arith.subf %16, %17 : vector<1x128xf32>
      %cst_6 = arith.constant 9.99999974E-6 : f32
      %19 = vector.broadcast %cst_6 : f32 to vector<1x128xf32>
      %20 = arith.addf %18, %19 : vector<1x128xf32>
      %21 = math.rsqrt %20 : vector<1x128xf32>
      %22 = vector.shape_cast %13 : vector<1x128xf32> to vector<1x1x128xf32>
      %23 = vector.shape_cast %21 : vector<1x128xf32> to vector<1x1x128xf32>
      %c0_i32_7 = arith.constant 0 : i32
      %24 = arith.cmpi eq, %arg2, %c0_i32_7 : i32
      %c1_i32_8 = arith.constant 1 : i32
      %25 = arith.subi %1, %c1_i32_8 : i32
      %c1_i32_9 = arith.constant 1 : i32
      %26 = arith.select %24, %c1_i32_9, %25 : i32
      %c1_i32_10 = arith.constant 1 : i32
      %27 = arith.cmpi eq, %arg2, %c1_i32_10 : i32
      %c8_i32_11 = arith.constant 8 : i32
      %28 = arith.addi %1, %c8_i32_11 : i32
      %c14_i32 = arith.constant 14 : i32
      %29 = arith.select %27, %c14_i32, %28 : i32
      %30 = arith.index_cast %26 : i32 to index
      %c0_12 = arith.constant 0 : index
      %c0_13 = arith.constant 0 : index
      %31 = vector.load %arg7[%30, %c0_12, %c0_13] : memref<16x16x128xf32, #tpu.memory_space<vmem>>, vector<1x16x128xf32>
      %32 = arith.index_cast %1 : i32 to index
      %c0_14 = arith.constant 0 : index
      %c0_15 = arith.constant 0 : index
      %33 = vector.load %arg7[%32, %c0_14, %c0_15] : memref<16x16x128xf32, #tpu.memory_space<vmem>>, vector<8x16x128xf32>
      %34 = arith.index_cast %29 : i32 to index
      %c0_16 = arith.constant 0 : index
      %c0_17 = arith.constant 0 : index
      %35 = vector.load %arg7[%34, %c0_16, %c0_17] : memref<16x16x128xf32, #tpu.memory_space<vmem>>, vector<1x16x128xf32>
      %36 = tpu.concatenate %31, %33, %35 in 0 : vector<1x16x128xf32>, vector<8x16x128xf32>, vector<1x16x128xf32> -> vector<10x16x128xf32>
      %37 = vector.broadcast %22 : vector<1x1x128xf32> to vector<10x16x128xf32>
      %38 = arith.subf %36, %37 : vector<10x16x128xf32>
      %39 = vector.broadcast %23 : vector<1x1x128xf32> to vector<10x16x128xf32>
      %40 = arith.mulf %38, %39 : vector<10x16x128xf32>
      %cst_18 = arith.constant 0.000000e+00 : f32
      %41 = vector.broadcast %cst_18 : f32 to vector<10x16x128xf32>
      %42 = arith.maximumf %40, %41 : vector<10x16x128xf32>
      %43 = arith.truncf %42 : vector<10x16x128xf32> to vector<10x16x128xbf16>
      %44 = vector.extract_strided_slice %43 {offsets = [0, 1, 0], sizes = [10, 1, 128], strides = [1, 1, 1]} : vector<10x16x128xbf16> to vector<10x1x128xbf16>
      %45 = vector.extract_strided_slice %43 {offsets = [0, 0, 0], sizes = [10, 15, 128], strides = [1, 1, 1]} : vector<10x16x128xbf16> to vector<10x15x128xbf16>
      %46 = tpu.concatenate %44, %45 in 1 : vector<10x1x128xbf16>, vector<10x15x128xbf16> -> vector<10x16x128xbf16>
      %47 = vector.extract_strided_slice %43 {offsets = [0, 1, 0], sizes = [10, 15, 128], strides = [1, 1, 1]} : vector<10x16x128xbf16> to vector<10x15x128xbf16>
      %48 = vector.extract_strided_slice %43 {offsets = [0, 14, 0], sizes = [10, 1, 128], strides = [1, 1, 1]} : vector<10x16x128xbf16> to vector<10x1x128xbf16>
      %49 = tpu.concatenate %47, %48 in 1 : vector<10x15x128xbf16>, vector<10x1x128xbf16> -> vector<10x16x128xbf16>
      %50 = vector.extract_strided_slice %46 {offsets = [0, 0, 0], sizes = [8, 16, 128], strides = [1, 1, 1]} : vector<10x16x128xbf16> to vector<8x16x128xbf16>
      %51 = vector.shape_cast %50 : vector<8x16x128xbf16> to vector<128x128xbf16>
      %c0_19 = arith.constant 0 : index
      %c0_20 = arith.constant 0 : index
      %c0_21 = arith.constant 0 : index
      %c0_22 = arith.constant 0 : index
      %52 = vector.load %arg5[%c0_19, %c0_20, %c0_21, %c0_22] : memref<3x3x128x128xbf16, #tpu.memory_space<vmem>>, vector<1x1x128x128xbf16>
      %53 = vector.shape_cast %52 : vector<1x1x128x128xbf16> to vector<128x128xbf16>
      %cst_23 = arith.constant dense<0.000000e+00> : vector<128x128xf32>
      %54 = tpu.matmul %51, %53, %cst_23 {dimension_numbers = #tpu.dot_dimension_numbers<[1], [0], [0], [1], [0, 0, 1, 1], [], []>} : vector<128x128xbf16>, vector<128x128xbf16>, vector<128x128xf32> -> vector<128x128xf32>
      %55 = vector.extract_strided_slice %43 {offsets = [0, 0, 0], sizes = [8, 16, 128], strides = [1, 1, 1]} : vector<10x16x128xbf16> to vector<8x16x128xbf16>
      %56 = vector.shape_cast %55 : vector<8x16x128xbf16> to vector<128x128xbf16>
      %c0_24 = arith.constant 0 : index
      %c1_25 = arith.constant 1 : index
      %c0_26 = arith.constant 0 : index
      %c0_27 = arith.constant 0 : index
      %57 = vector.load %arg5[%c0_24, %c1_25, %c0_26, %c0_27] : memref<3x3x128x128xbf16, #tpu.memory_space<vmem>>, vector<1x1x128x128xbf16>
      %58 = vector.shape_cast %57 : vector<1x1x128x128xbf16> to vector<128x128xbf16>
      %cst_28 = arith.constant dense<0.000000e+00> : vector<128x128xf32>
      %59 = tpu.matmul %56, %58, %cst_28 {dimension_numbers = #tpu.dot_dimension_numbers<[1], [0], [0], [1], [0, 0, 1, 1], [], []>} : vector<128x128xbf16>, vector<128x128xbf16>, vector<128x128xf32> -> vector<128x128xf32>
      %60 = arith.addf %54, %59 : vector<128x128xf32>
      %61 = vector.extract_strided_slice %49 {offsets = [0, 0, 0], sizes = [8, 16, 128], strides = [1, 1, 1]} : vector<10x16x128xbf16> to vector<8x16x128xbf16>
      %62 = vector.shape_cast %61 : vector<8x16x128xbf16> to vector<128x128xbf16>
      %c0_29 = arith.constant 0 : index
      %c2 = arith.constant 2 : index
      %c0_30 = arith.constant 0 : index
      %c0_31 = arith.constant 0 : index
      %63 = vector.load %arg5[%c0_29, %c2, %c0_30, %c0_31] : memref<3x3x128x128xbf16, #tpu.memory_space<vmem>>, vector<1x1x128x128xbf16>
      %64 = vector.shape_cast %63 : vector<1x1x128x128xbf16> to vector<128x128xbf16>
      %cst_32 = arith.constant dense<0.000000e+00> : vector<128x128xf32>
      %65 = tpu.matmul %62, %64, %cst_32 {dimension_numbers = #tpu.dot_dimension_numbers<[1], [0], [0], [1], [0, 0, 1, 1], [], []>} : vector<128x128xbf16>, vector<128x128xbf16>, vector<128x128xf32> -> vector<128x128xf32>
      %66 = arith.addf %60, %65 : vector<128x128xf32>
      %67 = vector.extract_strided_slice %46 {offsets = [1, 0, 0], sizes = [8, 16, 128], strides = [1, 1, 1]} : vector<10x16x128xbf16> to vector<8x16x128xbf16>
      %68 = vector.shape_cast %67 : vector<8x16x128xbf16> to vector<128x128xbf16>
      %c1_33 = arith.constant 1 : index
      %c0_34 = arith.constant 0 : index
      %c0_35 = arith.constant 0 : index
      %c0_36 = arith.constant 0 : index
      %69 = vector.load %arg5[%c1_33, %c0_34, %c0_35, %c0_36] : memref<3x3x128x128xbf16, #tpu.memory_space<vmem>>, vector<1x1x128x128xbf16>
      %70 = vector.shape_cast %69 : vector<1x1x128x128xbf16> to vector<128x128xbf16>
      %cst_37 = arith.constant dense<0.000000e+00> : vector<128x128xf32>
      %71 = tpu.matmul %68, %70, %cst_37 {dimension_numbers = #tpu.dot_dimension_numbers<[1], [0], [0], [1], [0, 0, 1, 1], [], []>} : vector<128x128xbf16>, vector<128x128xbf16>, vector<128x128xf32> -> vector<128x128xf32>
      %72 = arith.addf %66, %71 : vector<128x128xf32>
      %73 = vector.extract_strided_slice %43 {offsets = [1, 0, 0], sizes = [8, 16, 128], strides = [1, 1, 1]} : vector<10x16x128xbf16> to vector<8x16x128xbf16>
      %74 = vector.shape_cast %73 : vector<8x16x128xbf16> to vector<128x128xbf16>
      %c1_38 = arith.constant 1 : index
      %c1_39 = arith.constant 1 : index
      %c0_40 = arith.constant 0 : index
      %c0_41 = arith.constant 0 : index
      %75 = vector.load %arg5[%c1_38, %c1_39, %c0_40, %c0_41] : memref<3x3x128x128xbf16, #tpu.memory_space<vmem>>, vector<1x1x128x128xbf16>
      %76 = vector.shape_cast %75 : vector<1x1x128x128xbf16> to vector<128x128xbf16>
      %cst_42 = arith.constant dense<0.000000e+00> : vector<128x128xf32>
      %77 = tpu.matmul %74, %76, %cst_42 {dimension_numbers = #tpu.dot_dimension_numbers<[1], [0], [0], [1], [0, 0, 1, 1], [], []>} : vector<128x128xbf16>, vector<128x128xbf16>, vector<128x128xf32> -> vector<128x128xf32>
      %78 = arith.addf %72, %77 : vector<128x128xf32>
      %79 = vector.extract_strided_slice %49 {offsets = [1, 0, 0], sizes = [8, 16, 128], strides = [1, 1, 1]} : vector<10x16x128xbf16> to vector<8x16x128xbf16>
      %80 = vector.shape_cast %79 : vector<8x16x128xbf16> to vector<128x128xbf16>
      %c1_43 = arith.constant 1 : index
      %c2_44 = arith.constant 2 : index
      %c0_45 = arith.constant 0 : index
      %c0_46 = arith.constant 0 : index
      %81 = vector.load %arg5[%c1_43, %c2_44, %c0_45, %c0_46] : memref<3x3x128x128xbf16, #tpu.memory_space<vmem>>, vector<1x1x128x128xbf16>
      %82 = vector.shape_cast %81 : vector<1x1x128x128xbf16> to vector<128x128xbf16>
      %cst_47 = arith.constant dense<0.000000e+00> : vector<128x128xf32>
      %83 = tpu.matmul %80, %82, %cst_47 {dimension_numbers = #tpu.dot_dimension_numbers<[1], [0], [0], [1], [0, 0, 1, 1], [], []>} : vector<128x128xbf16>, vector<128x128xbf16>, vector<128x128xf32> -> vector<128x128xf32>
      %84 = arith.addf %78, %83 : vector<128x128xf32>
      %85 = vector.extract_strided_slice %46 {offsets = [2, 0, 0], sizes = [8, 16, 128], strides = [1, 1, 1]} : vector<10x16x128xbf16> to vector<8x16x128xbf16>
      %86 = vector.shape_cast %85 : vector<8x16x128xbf16> to vector<128x128xbf16>
      %c2_48 = arith.constant 2 : index
      %c0_49 = arith.constant 0 : index
      %c0_50 = arith.constant 0 : index
      %c0_51 = arith.constant 0 : index
      %87 = vector.load %arg5[%c2_48, %c0_49, %c0_50, %c0_51] : memref<3x3x128x128xbf16, #tpu.memory_space<vmem>>, vector<1x1x128x128xbf16>
      %88 = vector.shape_cast %87 : vector<1x1x128x128xbf16> to vector<128x128xbf16>
      %cst_52 = arith.constant dense<0.000000e+00> : vector<128x128xf32>
      %89 = tpu.matmul %86, %88, %cst_52 {dimension_numbers = #tpu.dot_dimension_numbers<[1], [0], [0], [1], [0, 0, 1, 1], [], []>} : vector<128x128xbf16>, vector<128x128xbf16>, vector<128x128xf32> -> vector<128x128xf32>
      %90 = arith.addf %84, %89 : vector<128x128xf32>
      %91 = vector.extract_strided_slice %43 {offsets = [2, 0, 0], sizes = [8, 16, 128], strides = [1, 1, 1]} : vector<10x16x128xbf16> to vector<8x16x128xbf16>
      %92 = vector.shape_cast %91 : vector<8x16x128xbf16> to vector<128x128xbf16>
      %c2_53 = arith.constant 2 : index
      %c1_54 = arith.constant 1 : index
      %c0_55 = arith.constant 0 : index
      %c0_56 = arith.constant 0 : index
      %93 = vector.load %arg5[%c2_53, %c1_54, %c0_55, %c0_56] : memref<3x3x128x128xbf16, #tpu.memory_space<vmem>>, vector<1x1x128x128xbf16>
      %94 = vector.shape_cast %93 : vector<1x1x128x128xbf16> to vector<128x128xbf16>
      %cst_57 = arith.constant dense<0.000000e+00> : vector<128x128xf32>
      %95 = tpu.matmul %92, %94, %cst_57 {dimension_numbers = #tpu.dot_dimension_numbers<[1], [0], [0], [1], [0, 0, 1, 1], [], []>} : vector<128x128xbf16>, vector<128x128xbf16>, vector<128x128xf32> -> vector<128x128xf32>
      %96 = arith.addf %90, %95 : vector<128x128xf32>
      %97 = vector.extract_strided_slice %49 {offsets = [2, 0, 0], sizes = [8, 16, 128], strides = [1, 1, 1]} : vector<10x16x128xbf16> to vector<8x16x128xbf16>
      %98 = vector.shape_cast %97 : vector<8x16x128xbf16> to vector<128x128xbf16>
      %c2_58 = arith.constant 2 : index
      %c2_59 = arith.constant 2 : index
      %c0_60 = arith.constant 0 : index
      %c0_61 = arith.constant 0 : index
      %99 = vector.load %arg5[%c2_58, %c2_59, %c0_60, %c0_61] : memref<3x3x128x128xbf16, #tpu.memory_space<vmem>>, vector<1x1x128x128xbf16>
      %100 = vector.shape_cast %99 : vector<1x1x128x128xbf16> to vector<128x128xbf16>
      %cst_62 = arith.constant dense<0.000000e+00> : vector<128x128xf32>
      %101 = tpu.matmul %98, %100, %cst_62 {dimension_numbers = #tpu.dot_dimension_numbers<[1], [0], [0], [1], [0, 0, 1, 1], [], []>} : vector<128x128xbf16>, vector<128x128xbf16>, vector<128x128xf32> -> vector<128x128xf32>
      %102 = arith.addf %96, %101 : vector<128x128xf32>
      %103 = vector.shape_cast %102 : vector<128x128xf32> to vector<8x16x128xf32>
      %c0_63 = arith.constant 0 : index
      %104 = arith.index_cast %1 : i32 to index
      %c0_64 = arith.constant 0 : index
      %c0_65 = arith.constant 0 : index
      %105 = vector.load %arg6[%c0_63, %104, %c0_64, %c0_65] : memref<1x16x16x128xf32, #tpu.memory_space<vmem>>, vector<1x8x16x128xf32>
      %106 = vector.shape_cast %105 : vector<1x8x16x128xf32> to vector<8x16x128xf32>
      %107 = vector.shape_cast %103 : vector<8x16x128xf32> to vector<1x8x16x128xf32>
      tpu.vector_store %arg6[%c0_63, %104, %c0_64, %c0_65], %107 {strides = array<i32>} : memref<1x16x16x128xf32, #tpu.memory_space<vmem>>, vector<1x8x16x128xf32>,
      %c0_i32_66 = arith.constant 0 : i32
      %108 = arith.cmpi eq, %arg2, %c0_i32_66 : i32
      %109 = arith.extui %108 : i1 to i32
      %c0_i32_67 = arith.constant 0 : i32
      %110 = arith.cmpi ne, %109, %c0_i32_67 : i32
      scf.if %110 {
        %cst_78 = arith.constant 0.000000e+00 : f32
        %122 = vector.broadcast %cst_78 : f32 to vector<2x128xf32>
        %c0_79 = arith.constant 0 : index
        %c0_80 = arith.constant 0 : index
        %123 = vector.load %arg9[%c0_79, %c0_80] : memref<2x128xf32, #tpu.memory_space<vmem>>, vector<2x128xf32>
        tpu.vector_store %arg9[%c0_79, %c0_80], %122 {strides = array<i32>} : memref<2x128xf32, #tpu.memory_space<vmem>>, vector<2x128xf32>,
      } else {
      }
      %c0_68 = arith.constant 0 : index
      %c0_69 = arith.constant 0 : index
      %111 = vector.load %arg9[%c0_68, %c0_69] : memref<2x128xf32, #tpu.memory_space<vmem>>, vector<1x128xf32>
      %cst_70 = arith.constant dense<0.000000e+00> : vector<128xf32>
      %112 = vector.multi_reduction <add>, %102, %cst_70 [0] : vector<128x128xf32> to vector<128xf32>
      %113 = vector.shape_cast %112 : vector<128xf32> to vector<1x128xf32>
      %114 = arith.addf %111, %113 : vector<1x128xf32>
      %c0_71 = arith.constant 0 : index
      %c0_72 = arith.constant 0 : index
      %115 = vector.load %arg9[%c0_71, %c0_72] : memref<2x128xf32, #tpu.memory_space<vmem>>, vector<1x128xf32>
      tpu.vector_store %arg9[%c0_71, %c0_72], %114 {strides = array<i32>} : memref<2x128xf32, #tpu.memory_space<vmem>>, vector<1x128xf32>,
      %c1_73 = arith.constant 1 : index
      %c0_74 = arith.constant 0 : index
      %116 = vector.load %arg9[%c1_73, %c0_74] : memref<2x128xf32, #tpu.memory_space<vmem>>, vector<1x128xf32>
      %117 = arith.mulf %102, %102 : vector<128x128xf32>
      %cst_75 = arith.constant dense<0.000000e+00> : vector<128xf32>
      %118 = vector.multi_reduction <add>, %117, %cst_75 [0] : vector<128x128xf32> to vector<128xf32>
      %119 = vector.shape_cast %118 : vector<128xf32> to vector<1x128xf32>
      %120 = arith.addf %116, %119 : vector<1x128xf32>
      %c1_76 = arith.constant 1 : index
      %c0_77 = arith.constant 0 : index
      %121 = vector.load %arg9[%c1_76, %c0_77] : memref<2x128xf32, #tpu.memory_space<vmem>>, vector<1x128xf32>
      tpu.vector_store %arg9[%c1_76, %c0_77], %120 {strides = array<i32>} : memref<2x128xf32, #tpu.memory_space<vmem>>, vector<1x128xf32>,
    } else {
    }
    %c2_i32 = arith.constant 2 : i32
    %8 = arith.cmpi eq, %arg1, %c2_i32 : i32
    %9 = arith.extui %8 : i1 to i32
    %c0_i32_2 = arith.constant 0 : i32
    %10 = arith.cmpi ne, %9, %c0_i32_2 : i32
    scf.if %10 {
      %c0 = arith.constant 0 : index
      %c0_3 = arith.constant 0 : index
      %11 = vector.load %arg9[%c0, %c0_3] : memref<2x128xf32, #tpu.memory_space<vmem>>, vector<1x128xf32>
      %cst = arith.constant 3.906250e-03 : f32
      %12 = vector.broadcast %cst : f32 to vector<1x128xf32>
      %13 = arith.mulf %11, %12 : vector<1x128xf32>
      %c1 = arith.constant 1 : index
      %c0_4 = arith.constant 0 : index
      %14 = vector.load %arg9[%c1, %c0_4] : memref<2x128xf32, #tpu.memory_space<vmem>>, vector<1x128xf32>
      %cst_5 = arith.constant 3.906250e-03 : f32
      %15 = vector.broadcast %cst_5 : f32 to vector<1x128xf32>
      %16 = arith.mulf %14, %15 : vector<1x128xf32>
      %17 = arith.mulf %13, %13 : vector<1x128xf32>
      %18 = arith.subf %16, %17 : vector<1x128xf32>
      %cst_6 = arith.constant 9.99999974E-6 : f32
      %19 = vector.broadcast %cst_6 : f32 to vector<1x128xf32>
      %20 = arith.addf %18, %19 : vector<1x128xf32>
      %21 = math.rsqrt %20 : vector<1x128xf32>
      %22 = vector.shape_cast %13 : vector<1x128xf32> to vector<1x1x128xf32>
      %23 = vector.shape_cast %21 : vector<1x128xf32> to vector<1x1x128xf32>
      %c0_7 = arith.constant 0 : index
      %24 = arith.index_cast %1 : i32 to index
      %c0_8 = arith.constant 0 : index
      %c0_9 = arith.constant 0 : index
      %25 = vector.load %arg6[%c0_7, %24, %c0_8, %c0_9] : memref<1x16x16x128xf32, #tpu.memory_space<vmem>>, vector<1x8x16x128xf32>
      %26 = vector.shape_cast %25 : vector<1x8x16x128xf32> to vector<8x16x128xf32>
      %c0_10 = arith.constant 0 : index
      %27 = arith.index_cast %1 : i32 to index
      %c0_11 = arith.constant 0 : index
      %c0_12 = arith.constant 0 : index
      %28 = vector.load %arg3[%c0_10, %27, %c0_11, %c0_12] : memref<1x16x16x128xf32, #tpu.memory_space<vmem>>, vector<1x8x16x128xf32>
      %29 = vector.shape_cast %28 : vector<1x8x16x128xf32> to vector<8x16x128xf32>
      %30 = vector.broadcast %22 : vector<1x1x128xf32> to vector<8x16x128xf32>
      %31 = arith.subf %26, %30 : vector<8x16x128xf32>
      %32 = vector.broadcast %23 : vector<1x1x128xf32> to vector<8x16x128xf32>
      %33 = arith.mulf %31, %32 : vector<8x16x128xf32>
      %34 = arith.addf %29, %33 : vector<8x16x128xf32>
      %c0_13 = arith.constant 0 : index
      %35 = arith.index_cast %1 : i32 to index
      %c0_14 = arith.constant 0 : index
      %c0_15 = arith.constant 0 : index
      %36 = vector.load %arg6[%c0_13, %35, %c0_14, %c0_15] : memref<1x16x16x128xf32, #tpu.memory_space<vmem>>, vector<1x8x16x128xf32>
      %37 = vector.shape_cast %36 : vector<1x8x16x128xf32> to vector<8x16x128xf32>
      %38 = vector.shape_cast %34 : vector<8x16x128xf32> to vector<1x8x16x128xf32>
      tpu.vector_store %arg6[%c0_13, %35, %c0_14, %c0_15], %38 {strides = array<i32>} : memref<1x16x16x128xf32, #tpu.memory_space<vmem>>, vector<1x8x16x128xf32>,
    } else {
    }
    return
  }
  func.func @transform_0(%arg0: i32, %arg1: i32, %arg2: i32) -> (i32, i32, i32, i32) {
    %c0_i32 = arith.constant 0 : i32
    %c0_i32_0 = arith.constant 0 : i32
    %c0_i32_1 = arith.constant 0 : i32
    %c0_i32_2 = arith.constant 0 : i32
    return %arg0, %c0_i32, %c0_i32_0, %c0_i32_1 : i32, i32, i32, i32
  }
  func.func @transform_1(%arg0: i32, %arg1: i32, %arg2: i32) -> (i32, i32, i32, i32) {
    %c0_i32 = arith.constant 0 : i32
    %c0_i32_0 = arith.constant 0 : i32
    %c0_i32_1 = arith.constant 0 : i32
    %c0_i32_2 = arith.constant 0 : i32
    %c0_i32_3 = arith.constant 0 : i32
    return %c0_i32, %c0_i32_0, %c0_i32_1, %c0_i32_2 : i32, i32, i32, i32
  }
  func.func @transform_2(%arg0: i32, %arg1: i32, %arg2: i32) -> (i32, i32, i32, i32) {
    %c0_i32 = arith.constant 0 : i32
    %c0_i32_0 = arith.constant 0 : i32
    %c0_i32_1 = arith.constant 0 : i32
    %c0_i32_2 = arith.constant 0 : i32
    %c0_i32_3 = arith.constant 0 : i32
    return %c0_i32, %c0_i32_0, %c0_i32_1, %c0_i32_2 : i32, i32, i32, i32
  }
  func.func @transform_3(%arg0: i32, %arg1: i32, %arg2: i32) -> (i32, i32, i32, i32) {
    %c0_i32 = arith.constant 0 : i32
    %c0_i32_0 = arith.constant 0 : i32
    %c0_i32_1 = arith.constant 0 : i32
    %c0_i32_2 = arith.constant 0 : i32
    return %arg0, %c0_i32, %c0_i32_0, %c0_i32_1 : i32, i32, i32, i32
  }
}

</mosaic_0001>

<bundles_post_ra>
// kernel: tpu_custom_call.1
= control target key start
LH: loop header
LB: loop body
LE: loop exit
PB: predicated region body
PF: predicated region fallthrough
CT: control target
= control target key end

     0   :  { %s6292_s0 = inlined_call_operand.hbm [shape: f32[2,16,16,128], index: 0, kind: input, shape index: {}]   ;;  %s6293_s1 = inlined_call_operand.hbm [shape: bf16[3,3,128,128], index: 1, kind: input, shape index: {}]   ;;  %s6294_s2 = inlined_call_operand.hbm [shape: bf16[3,3,128,128], index: 2, kind: input, shape index: {}]   ;;  %s6295_s3 = inlined_call_operand.hbm [shape: f32[2,16,16,128], index: 3, kind: output, shape index: {}]  }
   0x1   :  { %6297 = sst [smem:[#allocation18_spill]] %s6293_s1 }
   0x2   :  { %6298 = sst [smem:[#allocation19_spill]] %s6294_s2 }
   0x3   :  { %8 = vsyncpa [#allocation6], 0 }
   0x4   :  { %10 = vsyncpa [#allocation6 + $0x1], 0 }
   0x5   :  { %11 = vsyncpa [#allocation9], 0 }
   0x6   :  { %12 = vsyncpa [#allocation7], 0 }
   0x7   :  { %14 = vsyncpa [#allocation7 + $0x1], 0  ;;  %s4932_s12 = smov 0   ;;  %s4934_s13 = smov 0  }
   0x8   :  { %s4936_s14 = smov 0   ;;  %s4938_s15 = smov 0  }
   0x9   :  { %s4940_s16 = smov 0   ;;  %s4942_s17 = smov 0  }
   0xa   :  { %s4944_s18 = smov 0   ;;  %s4946_s19 = smov 0  }
   0xb   :  { %s4948_s20 = smov 0   ;;  %s4950_s21 = smov 0  }
   0xc LB: > { %6299 = sst [smem:[#allocation15_spill]] %s4892_s19  ;;  %s3758_s22 = sadd.s32 4294967295, %s4900_s21   ;;  %s4900_s21 = sphi %s4950_s21, %s20_s21   ;;  %s4896_s20 = sphi %s4948_s20, %s6330_s20   ;;  %s4892_s19 = sphi %s4946_s19, %s6323_s19   ;;  %s4888_s18 = sphi %s4944_s18, %s6329_s18   ;;  %s4884_s17 = sphi %s4942_s17, %s6328_s17   ;;  %s4880_s16 = sphi %s4940_s16, %s6321_s16   ;;  %s4876_s15 = sphi %s4938_s15, %s6327_s15   ;;  %s4872_s14 = sphi %s4936_s14, %s6326_s14   ;;  %s4868_s13 = sphi %s4934_s13, %s6325_s13   ;;  %s4864_s12 = sphi %s4932_s12, %s6324_s12  }
   0xd   : > { %s3759_s23 = sadd.s32 4294967294, %s4900_s21   ;;  %p59_p0 = scmp.ne.s32.totalorder %s4868_s13, %s4864_s12 }
   0xe   : > { %p4986_p1 = scmp.eq.s32.totalorder %s3758_s22, 0  ;;  %p4990_p2 = scmp.eq.s32.totalorder %s3758_s22, 11 }
   0xf   : > { %p131_p3 = scmp.eq.s32.totalorder %s3759_s23, 11  ;;  %p3760_p5 = scmp.ge.s32.totalorder %s4900_s21, 1 }
  0x10   : > { %p4996_p4 = por %p4986_p1, %p59_p0  ;;  %p138_p7 = scmp.lt.s32.totalorder %s4900_s21, 13 }
  0x11   : > { %p5001_p6 = por %p131_p3, %p59_p0  ;;  %s6304_s1 = sld [smem:[#allocation18_spill]] }
  0x12   : > { %p5009_p8 = pnand %p3760_p5, %p138_p7  ;;  %s4902_s5 = smov [#allocation8]  }
  0x13   : > { %s151_s6 = sshll.u32 %s4902_s5, 4  ;;  %s6306_s2 = sld [smem:[#allocation19_spill]]  ;;  %s152_s6 = int_to_ptr.vmem [resolvable:$true] %s151_s6 }
  0x14   : > { %p4577_p9 = pneg %p5009_p8  ;;  %s4903_s10 = smov 64  }
  0x15   : > { %s4904_s11 = smov 4   ;;  %s4905_s22 = smov [#allocation10]  }
  0x16   : > { %p4578_p10 = pnand %p4577_p9, %p4986_p1  ;;  %s165_s23 = sshll.u32 %s4905_s22, 4  ;;  %s166_s23 = int_to_ptr.vmem [resolvable:$true] %s165_s23 }
  0x17   : > { %s149_s30 = sshll.u32 %s6304_s1, 4  ;;  %s32_s28 = sadd.s32 1, %s4888_s18  ;;  %s150_s30 = int_to_ptr.hbm [resolvable:$true] %s149_s30 }
  0x18   : > { %4580 = dma.hbm_to_vmem [thread:$0]  (!%p4578_p10), %s150_s30, 9216, %s152_s6, [#allocation9], %s4903_s10, %s4903_s10, %s4904_s11  }
  0x19   : > { %s163_s9 = sshll.u32 %s6306_s2, 4  ;;  %s35_s29 = sadd.s32 1, %s4892_s19  ;;  %s164_s9 = int_to_ptr.hbm [resolvable:$true] %s163_s9 }
  0x1a   : > { %4583 = dma.hbm_to_vmem [thread:$0]  (!%p4578_p10), %s164_s9, 9216, %s166_s23, [#allocation9], %s4903_s10, %s4903_s10, %s4904_s11  }
  0x1b   : > { %p33_p11 = scmp.ge.s32.totalorder %s32_s28, 2  ;;  %s39_s5 = sadd.s32 1, %s4896_s20 }
  0x1c   : > { %s46_s7 = sadd.s32 1, %s4872_s14  ;;  %p53_p12 = scmp.ne.s32.totalorder %s4872_s14, %s4868_s13 }
  0x1d   : > { %s6332_s28 = smov (%p33_p11, %s32_s28), 0  ;;  %s6334_s29 = smov (!%p33_p11, %s35_s29), %s4892_s19 }
  0x1e   : > { %6307 = sst [smem:[#allocation16_spill]] %s6332_s28  ;;  %p54_p13 = scmp.eq.s32.totalorder %s4900_s21, 0 }
  0x1f   : > { %p5032_p0 = por %p4990_p2, %p53_p12  ;;  %p37_p3 = scmp.ge.s32.totalorder %s6334_s29, 3 }
  0x20   : > { %p4594_p5 = scmp.lt.s32.totalorder %s4900_s21, 12  ;;  %p5037_p7 = por %p54_p13, %p53_p12 }
  0x21   : > { %s179_s8 = sand.u32 1, %s4872_s14   ;;  %s6336_s29 = smov (%p37_p3, %s6334_s29), 0 }
  0x22   : > { %6310 = sst [smem:[#allocation17_spill]] %s6336_s29  ;;  %s6338_s5 = smov (!%p37_p3, %s39_s5), %s4896_s20 }
  0x23   : > { %s3764_s9 = sshll.u32 %s179_s8, 8  ;;  %p41_p9 = scmp.ge.s32.totalorder %s6338_s5, 2 }
  0x24   : > { %s4368_s25 = sshll.u32 %s4896_s20, 8  ;;  %s183_s10 = scalar_lea.vmem [#allocation5], %s3764_s9 }
  0x25   : > { %s191_s11 = sshll.u32 %s183_s10, 4  ;;  %s6340_s5 = smov (%p41_p9, %s6338_s5), 0  ;;  %s192_s11 = int_to_ptr.vmem [resolvable:$true] %s191_s11 }
  0x26   : > { %s188_s1 = scalar_lea.hbm %s6292_s0, %s4368_s25  ;;  %s43_s2 = ssub.s32 %s4896_s20, %s6340_s5 }
  0x27   : > { %s189_s28 = sshll.u32 %s188_s1, 4  ;;  %p44_p2 = scmp.eq.s32.totalorder %s43_s2, 0  ;;  %s190_s28 = int_to_ptr.hbm [resolvable:$true] %s189_s28 }
  0x28   : > { %p4585_p10 = pnand %p4594_p5, %p5037_p7  ;;  %s180_s19 = scalar_lea.sflag [#allocation6], %s179_s8 }
  0x29   : > { %s5058_s29 = scalar_select %p44_p2, %s4872_s14, %s46_s7  }
  0x2a   : > { %s4906_s9 = smov 128   ;;  %s4907_s10 = smov 8  }
  0x2b   : > { %4587 = dma.hbm_to_vmem [thread:$0]  (!%p4585_p10), %s190_s28, 4096, %s192_s11, %s180_s19, %s4906_s9, %s4906_s9, %s4907_s10  }
  0x2c   : > { %203 = sbr.rel (%p5009_p8) target bundleno = 1149 (0x47d), region = 32  ;;  %s5063_s25 = sand.u32 (!%p5009_p8), 1, %s4868_s13  }
  0x2d   : > { %s3768_s1 = sshll.u32 (!%p5009_p8), %s5063_s25, 8  ;;  %s206_s2 = scalar_lea.sflag (!%p5009_p8), [#allocation6], %s5063_s25 }
  0x2e   : > { %s5067_s6 = scalar_lea.vmem (!%p5009_p8), [#allocation5], %s3768_s1 }
  0x31   : > { %4851 = dma.done.wait (%p4996_p4), %s206_s2, 4096  }
  0x32   : > { %4853 = vsyncadd (%p4996_p4), %s206_s2, 4294963200 }
  0x33   : > { %4855 = dma.done.wait (%p4986_p1), [#allocation9], 18432  }
  0x34   : > { %4857 = vsyncadd (%p4986_p1), [#allocation9], 4294948864  ;;  %s5078_s19 = sshll.u32 %s4876_s15, 3  ;;  %s5080_s4 = scalar_lea.vmem [#allocation11], %s3768_s1 }
  0x35   : > { %p3773_p8 = scmp.ne.s32.totalorder %s4880_s16, 0 }
  0x36   : > { %p248_p4 = scmp.eq.s32.totalorder (!%p3773_p8), %s4876_s15, 0  ;;  %s3774_s24 = sadd.s32 (!%p3773_p8), 4294967295, %s5078_s19 }
  0x37   : > { %247 = sbr.rel (%p3773_p8) target bundleno = 560 (0x230), region = 48  ;;  %s4369_s26 = sshll.u32 (!%p3773_p8), %s4876_s15, 7 }
  0x38   : > { %s5089_s7 = scalar_lea.vmem (!%p3773_p8), %s5067_s6, %s4369_s26 [#allocation5]  ;;  %p251_p1 = scmp.eq.s32.totalorder (!%p3773_p8), %s4876_s15, 1 }
  0x39   : > { %s252_s11 = sadd.s32 (!%p3773_p8), 8, %s5078_s19  ;;  %s5456_s9 = scalar_lea.vmem (!%p3773_p8), [#allocation2], %s4369_s26 }
  0x3a   : > { %p4066_p11 = scmp.ne.s32.totalorder (!%p3773_p8), %s4876_s15, 0 }
  0x3c   : > { %v4385_v0 = vld [vmem:[#allocation8 + $0x78] sm:$0xff]  ;;  %v4384_v1 = vld [vmem:[#allocation8 + $0x70] sm:$0xff]  ;;  %v4383_v2 = vld [vmem:[#allocation8 + $0x68] sm:$0xff]  ;;  %s6342_s24 = smov (%p248_p4, %s3774_s24), 1  ;;  %vm480_vm0 = vcmask 1040384   ;;  %vm583_vm2 = vcmask 1047552  }
  0x3d   : > { %4517 = vmatpush.bf16.msra.mxu1 %v4385_v0  ;;  %4518 = vmatpush.bf16.msra.mxu2 %v4385_v0  ;;  %v4382_v3 = vld [vmem:[#allocation8 + $0x60] sm:$0xff]  ;;  %s3775_s28 = sshll.u32 %s6342_s24, 4  ;;  %v4381_v4 = vld [vmem:[#allocation8 + $0x58] sm:$0xff]  ;;  %v4380_v5 = vld [vmem:[#allocation8 + $0x50] sm:$0xff]  ;;  %vm481_vm1 = vsmask.f32 256 }
  0x3e   : > { %4519 = vmatpush.bf16.msra.mxu3 %v4385_v0  ;;  %685 = vmatpush.bf16.msra.mxu0 %v4385_v0  ;;  %s255_s8 = scalar_lea.vmem %s5067_s6, %s3775_s28 [#allocation5]  ;;  %v262_v6 = vld [vmem:[%s5089_s7 + $0x10] sm:$0xff]  ;;  %v263_v7 = vld [vmem:[%s5089_s7 + $0x18] sm:$0xff]  ;;  %v4378_v27 = vld [vmem:[#allocation8 + $0x40] sm:$0xff]  ;;  %vm584_vm3 = vsmask.f32 7424  ;;  %s6344_s11 = smov (%p251_p1, %s252_s11), 14 }
  0x3f   : > { %v266_v8 = vld [vmem:[%s5089_s7 + $0x30] sm:$0xff]  ;;  %v267_v9 = vld [vmem:[%s5089_s7 + $0x38] sm:$0xff]  ;;  %v256_v12 = vld [vmem:[%s255_s8] sm:$0xff]  ;;  %v284_v14 = vpack.c.bf16 %v262_v6, %v262_v6  ;;  %v285_v15 = vpack.c.bf16 %v263_v7, %v263_v7  ;;  %s3777_s22 = sshll.u32 %s6344_s11, 4 }
  0x40   : > { %v270_v10 = vld [vmem:[%s5089_s7 + $0x50] sm:$0xff]  ;;  %v271_v11 = vld [vmem:[%s5089_s7 + $0x58] sm:$0xff]  ;;  %v257_v13 = vld [vmem:[%s255_s8 + $0x8] sm:$0xff]  ;;  %v288_v16 = vpack.c.bf16 %v266_v8, %v266_v8  ;;  %v289_v17 = vpack.c.bf16 %v267_v9, %v267_v9  ;;  %v280_v21 = vpack.c.bf16 %v256_v12, %v256_v12  ;;  %s277_s23 = scalar_lea.vmem %s5067_s6, %s3777_s22 [#allocation5] }
  0x41   : > { %4520 = vmatpush.bf16.msra.mxu1 %v4384_v1  ;;  %4521 = vmatpush.bf16.msra.mxu2 %v4384_v1  ;;  %v292_v18 = vpack.c.bf16 %v270_v10, %v270_v10  ;;  %v4379_v19 = vld [vmem:[#allocation8 + $0x48] sm:$0xff]  ;;  %v293_v20 = vpack.c.bf16 %v271_v11, %v271_v11  ;;  %v281_v22 = vpack.c.bf16 %v257_v13, %v257_v13  ;;  %v5098_v23 = vunpack.c.l.b16 %v284_v14  ;;  %v4393_v32 = vld [vmem:[#allocation8 + $0xb8] sm:$0xff]  ;;  %v4392_v40 = vld [vmem:[#allocation8 + $0xb0] sm:$0xff] }
  0x42   : > { %4522 = vmatpush.bf16.msra.mxu3 %v4384_v1  ;;  %686 = vmatpush.bf16.msra.mxu0 %v4384_v1  ;;  %v5100_v24 = vunpack.c.l.b16 %v285_v15  ;;  %v5102_v25 = vunpack.c.l.b16 %v288_v16  ;;  %v5104_v26 = vunpack.c.l.b16 %v289_v17  ;;  %v5110_v30 = vunpack.c.l.b16 %v280_v21  ;;  %v4377_v33 = vld [vmem:[#allocation8 + $0x38] sm:$0xff]  ;;  %v4376_v41 = vld [vmem:[#allocation8 + $0x30] sm:$0xff]  ;;  %v265_v45 = vld [vmem:[%s5089_s7 + $0x28] sm:$0xff] }
  0x43   : > { %v5106_v28 = vunpack.c.l.b16 %v292_v18  ;;  %v5108_v29 = vunpack.c.l.b16 %v293_v20  ;;  %v5112_v31 = vunpack.c.l.b16 %v281_v22  ;;  %v4401_v38 = vld [vmem:[#allocation8 + $0xf8] sm:$0xff]  ;;  %v4400_v42 = vld [vmem:[#allocation8 + $0xf0] sm:$0xff]  ;;  %v269_v47 = vld [vmem:[%s5089_s7 + $0x48] sm:$0xff]  ;;  %v287_v55 = vpack.c.bf16 %v265_v45, %v265_v45 }
  0x44   : > { %v5116_v34 = vpack.c.b16 %v5100_v24, %v5098_v23  ;;  %v5120_v35 = vpack.c.b16 %v5104_v26, %v5102_v25  ;;  %v4409_v39 = vld [vmem:[#allocation8 + $0x138] sm:$0xff]  ;;  %v4408_v43 = vld [vmem:[#allocation8 + $0x130] sm:$0xff]  ;;  %v273_v49 = vld [vmem:[%s5089_s7 + $0x68] sm:$0xff]  ;;  %v291_v57 = vpack.c.bf16 %v269_v47, %v269_v47 }
  0x45   : > { %4523 = vmatpush.bf16.msra.mxu1 %v4383_v2  ;;  %4524 = vmatpush.bf16.msra.mxu2 %v4383_v2  ;;  %v5124_v36 = vpack.c.b16 %v5108_v29, %v5106_v28  ;;  %v5128_v37 = vpack.c.b16 %v5112_v31, %v5110_v30  ;;  %v264_v44 = vld [vmem:[%s5089_s7 + $0x20] sm:$0xff]  ;;  %v261_v51 = vld [vmem:[%s5089_s7 + $0x8] sm:$0xff]  ;;  %v295_v59 = vpack.c.bf16 %v273_v49, %v273_v49  ;;  %v4388_v20 = vld [vmem:[#allocation8 + $0x90] sm:$0xff] }
  0x46   : > { %4525 = vmatpush.bf16.msra.mxu3 %v4383_v2  ;;  %687 = vmatpush.bf16.msra.mxu0 %v4383_v2  ;;  %v268_v46 = vld [vmem:[%s5089_s7 + $0x40] sm:$0xff]  ;;  %v4391_v52 = vld [vmem:[#allocation8 + $0xa8] sm:$0xff]  ;;  %v286_v54 = vpack.c.bf16 %v264_v44, %v264_v44  ;;  %v283_v61 = vpack.c.bf16 %v261_v51, %v261_v51  ;;  %v4372_v21 = vld [vmem:[#allocation8 + $0x10] sm:$0xff] }
  0x47   : > { %v272_v48 = vld [vmem:[%s5089_s7 + $0x60] sm:$0xff]  ;;  %v4375_v53 = vld [vmem:[#allocation8 + $0x28] sm:$0xff]  ;;  %v290_v56 = vpack.c.bf16 %v268_v46, %v268_v46  ;;  %v5152_v7 = vunpack.c.l.b16 %v295_v59  ;;  %v401_v22 = vshrl.u32 %v5128_v37, 16  ;;  %vm5190_vm4 = vmand %vm480_vm0, %vm481_vm1 }
  0x48   : > { %v260_v50 = vld [vmem:[%s5089_s7] sm:$0xff]  ;;  %v294_v58 = vpack.c.bf16 %v272_v48, %v272_v48  ;;  %v4399_v62 = vld [vmem:[#allocation8 + $0xe8] sm:$0xff]  ;;  %v5142_v2 = vunpack.c.l.b16 %v286_v54  ;;  %v5156_v9 = vunpack.c.l.b16 %v283_v61  ;;  %vm5194_vm5 = vmand %vm583_vm2, %vm584_vm3 }
  0x49   : > { %4526 = vmatpush.bf16.msra.mxu1 %v4382_v3  ;;  %4527 = vmatpush.bf16.msra.mxu2 %v4382_v3  ;;  %v282_v60 = vpack.c.bf16 %v260_v50, %v260_v50  ;;  %v4407_v63 = vld [vmem:[#allocation8 + $0x128] sm:$0xff]  ;;  %v4390_v0 = vld [vmem:[#allocation8 + $0xa0] sm:$0xff]  ;;  %v4389_v12 = vld [vmem:[#allocation8 + $0x98] sm:$0xff]  ;;  %v403_v44 = vrot.slane %v401_v22, 7 }
  0x4a   : > { %4528 = vmatpush.bf16.msra.mxu3 %v4382_v3  ;;  %688 = vmatpush.bf16.msra.mxu0 %v4382_v3  ;;  %v4374_v1 = vld [vmem:[#allocation8 + $0x20] sm:$0xff]  ;;  %v5144_v3 = vunpack.c.l.b16 %v287_v55  ;;  %v5150_v6 = vunpack.c.l.b16 %v294_v58  ;;  %v4373_v13 = vld [vmem:[#allocation8 + $0x18] sm:$0xff]  ;;  %v4403_v46 = vld [vmem:[#allocation8 + $0x108] sm:$0xff] }
  0x4b   : > { %v5154_v8 = vunpack.c.l.b16 %v282_v60  ;;  %v4398_v10 = vld [vmem:[#allocation8 + $0xe0] sm:$0xff]  ;;  %v4397_v18 = vld [vmem:[#allocation8 + $0xd8] sm:$0xff] }
  0x4c   : > { %v4406_v11 = vld [vmem:[#allocation8 + $0x120] sm:$0xff]  ;;  %v5160_v14 = vpack.c.b16 %v5144_v3, %v5142_v2  ;;  %v5168_v16 = vpack.c.b16 %v5152_v7, %v5150_v6  ;;  %v4425_v50 = vld [vmem:[#allocation8 + $0x1b8] sm:$0xff] }
  0x4d   : > { %4529 = vmatpush.bf16.msra.mxu1 %v4381_v4  ;;  %4530 = vmatpush.bf16.msra.mxu2 %v4381_v4  ;;  %v5172_v17 = vpack.c.b16 %v5156_v9, %v5154_v8  ;;  %v4370_v49 = vld [vmem:[#allocation8] sm:$0xff]  ;;  %v4417_v51 = vld [vmem:[#allocation8 + $0x178] sm:$0xff] }
  0x4e   : > { %4531 = vmatpush.bf16.msra.mxu3 %v4381_v4  ;;  %689 = vmatpush.bf16.msra.mxu0 %v4381_v4  ;;  %v5146_v4 = vunpack.c.l.b16 %v290_v56  ;;  %v4402_v58 = vld [vmem:[#allocation8 + $0x100] sm:$0xff] }
  0x4f   : > { %v411_v48 = vshll.u32 %v5172_v17, 16 }
  0x51   : > { %4532 = vmatpush.bf16.msra.mxu1 %v4380_v5  ;;  %4533 = vmatpush.bf16.msra.mxu2 %v4380_v5 }
  0x52   : > { %4534 = vmatpush.bf16.msra.mxu3 %v4380_v5  ;;  %690 = vmatpush.bf16.msra.mxu0 %v4380_v5  ;;  %v5148_v5 = vunpack.c.l.b16 %v291_v57  ;;  %v4394_v57 = vld [vmem:[#allocation8 + $0xc0] sm:$0xff] }
  0x54   : > { %v5164_v15 = vpack.c.b16 %v5148_v5, %v5146_v4 }
  0x55   : > { %4535 = vmatpush.bf16.msra.mxu1 %v4379_v19  ;;  %4536 = vmatpush.bf16.msra.mxu2 %v4379_v19 }
  0x56   : > { %4537 = vmatpush.bf16.msra.mxu3 %v4379_v19  ;;  %691 = vmatpush.bf16.msra.mxu0 %v4379_v19  ;;  %v4405_v19 = vld [vmem:[#allocation8 + $0x118] sm:$0xff] }
  0x59   : > { %4538 = vmatpush.bf16.msra.mxu1 %v4378_v27  ;;  %4539 = vmatpush.bf16.msra.mxu2 %v4378_v27 }
  0x5a   : > { %4540 = vmatpush.bf16.msra.mxu3 %v4378_v27  ;;  %692 = vmatpush.bf16.msra.mxu0 %v4378_v27  ;;  %v404_v27 = vshll.u32 %v5128_v37, 16 }
  0x5c   : > { %703 = vmatmul.bf16.vlgmr.msra.gmra.mxu1 %v5116_v34  ;;  %713 = vmatmul.bf16.vlgmr.msra.gmra.mxu2 %v5120_v35  ;;  %v493_v45 = vrot.slane %v404_v27, 1 }
  0x5d   : > { %896 = vmatpush.bf16.msrb.mxu2 %v4393_v32  ;;  %782 = vmatpush.bf16.msrb.mxu1 %v4377_v33  ;;  %v523_v32 = vpack.c.b16 %v5112_v31, %v5112_v31  ;;  %v4396_v33 = vld [vmem:[#allocation8 + $0xd0] sm:$0xff]  ;;  %v321_v31 = vpack.c.b16 %v5154_v8, %v5154_v8 }
  0x5e   : > { %723 = vmatmul.bf16.vlgmr.msra.gmra.mxu3 %v5124_v36  ;;  %693 = vmatmul.bf16.vlgmr.msra.gmra.mxu0 %v5128_v37  ;;  %v494_v55 = vor.u32 %v493_v45, %v401_v22  ;;  %v4431_v22 = vld [vmem:[#allocation8 + $0x1e8] sm:$0xff] }
  0x5f   : > { %1026 = vmatpush.bf16.msrb.mxu3 %v4401_v38  ;;  %1157 = vmatpush.bf16.msrb.mxu0 %v4409_v39  ;;  %v4404_v38 = vld [vmem:[#allocation8 + $0x110] sm:$0xff]  ;;  %v408_v39 = vshrl.u32 %v5172_v17, 16  ;;  %v534_v37 = vshll.u32 %v523_v32, 16  ;;  %v334_v60 = vshrl.u32 %v321_v31, 16  ;;  %v495_v32 = vrot.slane %v411_v48, 1  ;;  %v4414_v31 = vld [vmem:[#allocation8 + $0x160] sm:$0xff] }
  0x61   : > { %897 = vmatpush.bf16.msrb.mxu2 %v4392_v40  ;;  %783 = vmatpush.bf16.msrb.mxu1 %v4376_v41  ;;  %v4387_v40 = vld [vmem:[#allocation8 + $0x88] sm:$0xff]  ;;  %v410_v47 = vrot.slane %v408_v39, 7  ;;  %v536_v56 = vrot.slane %v534_v37, 4  ;;  %v4430_v37 = vld [vmem:[#allocation8 + $0x1e0] sm:$0xff] }
  0x62   : > { %v4371_v41 = vld [vmem:[#allocation8 + $0x8] sm:$0xff] }
  0x63   : > { %1027 = vmatpush.bf16.msrb.mxu3 %v4400_v42  ;;  %1158 = vmatpush.bf16.msrb.mxu0 %v4408_v43  ;;  %v320_v42 = vpack.c.b16 %v5110_v30, %v5110_v30  ;;  %v4395_v43 = vld [vmem:[#allocation8 + $0xc8] sm:$0xff]  ;;  %v4386_v30 = vld [vmem:[#allocation8 + $0x80] sm:$0xff]  ;;  %v413_v61 = vor.u32 %v411_v48, %v410_v47 }
  0x64   : > { %v4438_v47 = vld [vmem:[#allocation8 + $0x220] sm:$0xff] }
  0x65   : > { %898 = vmatpush.bf16.msrb.mxu2 %v4391_v52  ;;  %784 = vmatpush.bf16.msrb.mxu1 %v4375_v53  ;;  %v331_v52 = vshrl.u32 %v320_v42, 16  ;;  %v406_v53 = vor.u32 %v404_v27, %v403_v44  ;;  %v484_v8 = vsel %vm5190_vm4, %v334_v60, %v413_v61  ;;  %v4439_v27 = vld [vmem:[#allocation8 + $0x228] sm:$0xff]  ;;  %v4429_v60 = vld [vmem:[#allocation8 + $0x1d8] sm:$0xff] }
  0x66   : > { %v4413_v61 = vld [vmem:[#allocation8 + $0x158] sm:$0xff] }
  0x67   : > { %1028 = vmatpush.bf16.msrb.mxu3 %v4399_v62  ;;  %1159 = vmatpush.bf16.msrb.mxu0 %v4407_v63  ;;  %v4433_v62 = vld [vmem:[#allocation8 + $0x1f8] sm:$0xff] }
  0x68   : > { %v4441_v63 = vld [vmem:[#allocation8 + $0x238] sm:$0xff] }
  0x69   : > { %899 = vmatpush.bf16.msrb.mxu2 %v4390_v0  ;;  %785 = vmatpush.bf16.msrb.mxu1 %v4374_v1  ;;  %v483_v0 = vsel %vm5190_vm4, %v331_v52, %v406_v53  ;;  %v586_v1 = vsel %vm5194_vm5, %v494_v55, %v536_v56 }
  0x6b   : > { %1029 = vmatpush.bf16.msrb.mxu3 %v4398_v10  ;;  %1160 = vmatpush.bf16.msrb.mxu0 %v4406_v11  ;;  %v4424_v10 = vld [vmem:[#allocation8 + $0x1b0] sm:$0xff] }
  0x6c   : > { %708 = vmatmul.bf16.gmra.mxu1 %v5160_v14  ;;  %718 = vmatmul.bf16.gmra.mxu2 %v5164_v15  ;;  %v4416_v11 = vld [vmem:[#allocation8 + $0x170] sm:$0xff] }
  0x6d   : > { %900 = vmatpush.bf16.msrb.mxu2 %v4389_v12  ;;  %786 = vmatpush.bf16.msrb.mxu1 %v4373_v13  ;;  %v4432_v12 = vld [vmem:[#allocation8 + $0x1f0] sm:$0xff] }
  0x6e   : > { %728 = vmatmul.bf16.gmra.mxu3 %v5168_v16  ;;  %698 = vmatmul.bf16.gmra.mxu0 %v5172_v17  ;;  %v4440_v13 = vld [vmem:[#allocation8 + $0x230] sm:$0xff] }
  0x6f   : > { %1030 = vmatpush.bf16.msrb.mxu3 %v4397_v18  ;;  %1161 = vmatpush.bf16.msrb.mxu0 %v4405_v19  ;;  %v524_v18 = vpack.c.b16 %v5156_v9, %v5156_v9  ;;  %v415_v19 = vshrl.u32 %v5116_v34, 16  ;;  %v496_v9 = vor.u32 %v495_v32, %v408_v39  ;;  %v4422_v39 = vld [vmem:[#allocation8 + $0x1a0] sm:$0xff]  ;;  %v436_v32 = vshrl.u32 %v5164_v15, 16 }
  0x71   : > { %901 = vmatpush.bf16.msrb.mxu2 %v4388_v20  ;;  %787 = vmatpush.bf16.msrb.mxu1 %v4372_v21  ;;  %v4423_v20 = vld [vmem:[#allocation8 + $0x1a8] sm:$0xff] }
  0x72   : > { %v4415_v21 = vld [vmem:[#allocation8 + $0x168] sm:$0xff] }
  0x73   : > { %1031 = vmatpush.bf16.msrb.mxu3 %v4396_v33  ;;  %1162 = vmatpush.bf16.msrb.mxu0 %v4404_v38  ;;  %v538_v33 = vshll.u32 %v524_v18, 16  ;;  %v322_v38 = vpack.c.b16 %v5098_v23, %v5098_v23 }
  0x75   : > { %902 = vmatpush.bf16.msrb.mxu2 %v4387_v40  ;;  %788 = vmatpush.bf16.msrb.mxu1 %v4371_v41  ;;  %v417_v40 = vrot.slane %v415_v19, 7  ;;  %v418_v41 = vshll.u32 %v5116_v34, 16  ;;  %v540_v42 = vrot.slane %v538_v33, 4  ;;  %v4436_v33 = vld [vmem:[#allocation8 + $0x210] sm:$0xff] }
  0x77   : > { %1032 = vmatpush.bf16.msrb.mxu3 %v4395_v43  ;;  %1163 = vmatpush.bf16.msrb.mxu0 %v4403_v46  ;;  %v337_v43 = vshrl.u32 %v322_v38, 16  ;;  %v420_v44 = vor.u32 %v418_v41, %v417_v40  ;;  %v5215_v45 = vsel %vm5194_vm5, %v496_v9, %v540_v42  ;;  %v422_v46 = vshrl.u32 %v5160_v14, 16 }
  0x78   : > { %v497_v48 = vrot.slane %v418_v41, 1  ;;  %v325_v41 = vpack.c.b16 %v5146_v4, %v5146_v4  ;;  %v438_v9 = vrot.slane %v436_v32, 7  ;;  %v439_v42 = vshll.u32 %v5164_v15, 16 }
  0x79   : > { %903 = vmatpush.bf16.msrb.mxu2 %v4386_v30  ;;  %789 = vmatpush.bf16.msrb.mxu1 %v4370_v49  ;;  %v5219_v23 = vsel %vm5190_vm4, %v337_v43, %v420_v44  ;;  %v323_v49 = vpack.c.b16 %v5142_v2, %v5142_v2  ;;  %v526_v2 = vpack.c.b16 %v5144_v3, %v5144_v3 }
  0x7a   : > { %v498_v52 = vor.u32 %v497_v48, %v415_v19  ;;  %v346_v44 = vshrl.u32 %v325_v41, 16  ;;  %v528_v4 = vpack.c.b16 %v5148_v5, %v5148_v5  ;;  %v4411_v48 = vld [vmem:[#allocation8 + $0x148] sm:$0xff] }
  0x7b   : > { %1033 = vmatpush.bf16.msrb.mxu3 %v4394_v57  ;;  %1164 = vmatpush.bf16.msrb.mxu0 %v4402_v58  ;;  %v340_v53 = vshrl.u32 %v323_v49, 16  ;;  %v4421_v58 = vld [vmem:[#allocation8 + $0x198] sm:$0xff] }
  0x7c   : > { %790 = vmatmul.bf16.vlgmr.msrb.gmra.mxu1 %v483_v0  ;;  %904 = vmatmul.bf16.vlgmr.msrb.gmra.mxu2 %v586_v1  ;;  %v546_v1 = vshll.u32 %v526_v2, 16  ;;  %v554_v49 = vshll.u32 %v528_v4, 16 }
  0x7d   : > { %1417 = vmatpush.bf16.msra.mxu2 %v4425_v50  ;;  %1287 = vmatpush.bf16.msra.mxu1 %v4417_v51  ;;  %v424_v50 = vrot.slane %v422_v46, 7  ;;  %v425_v51 = vshll.u32 %v5160_v14, 16 }
  0x7e   : > { %1034 = vmatmul.bf16.vlgmr.msrb.gmra.mxu3 %v484_v8  ;;  %1165 = vmatmul.bf16.vlgmr.msrb.gmra.mxu0 %v5172_v17  ;;  %v525_v17 = vpack.c.b16 %v5100_v24, %v5100_v24  ;;  %v548_v3 = vrot.slane %v546_v1, 4  ;;  %v275_v1 = vld [vmem:[%s5089_s7 + $0x78] sm:$0xff] }
  0x7f   : > { %1548 = vmatpush.bf16.msra.mxu3 %v4433_v62  ;;  %1678 = vmatpush.bf16.msra.mxu0 %v4441_v63  ;;  %v427_v55 = vor.u32 %v425_v51, %v424_v50  ;;  %v429_v62 = vshrl.u32 %v5120_v35, 16  ;;  %v4437_v63 = vld [vmem:[#allocation8 + $0x218] sm:$0xff]  ;;  %v499_v0 = vrot.slane %v425_v51, 1  ;;  %v326_v50 = vpack.c.b16 %v5106_v28, %v5106_v28 }
  0x80   : > { %v542_v30 = vshll.u32 %v525_v17, 16  ;;  %v441_v17 = vor.u32 %v439_v42, %v438_v9  ;;  %v529_v28 = vpack.c.b16 %v5108_v29, %v5108_v29  ;;  %v4434_v29 = vld [vmem:[#allocation8 + $0x200] sm:$0xff] }
  0x81   : > { %1418 = vmatpush.bf16.msra.mxu2 %v4424_v10  ;;  %1288 = vmatpush.bf16.msra.mxu1 %v4416_v11  ;;  %v5236_v57 = vsel %vm5190_vm4, %v340_v53, %v427_v55  ;;  %v431_v10 = vrot.slane %v429_v62, 7  ;;  %v432_v11 = vshll.u32 %v5120_v35, 16  ;;  %v556_v53 = vrot.slane %v554_v49, 4 }
  0x82   : > { %v544_v24 = vrot.slane %v542_v30, 4  ;;  %v503_v30 = vrot.slane %v439_v42, 1  ;;  %v349_v55 = vshrl.u32 %v326_v50, 16 }
  0x83   : > { %1549 = vmatpush.bf16.msra.mxu3 %v4432_v12  ;;  %1679 = vmatpush.bf16.msra.mxu0 %v4440_v13  ;;  %v500_v12 = vor.u32 %v499_v0, %v422_v46  ;;  %v434_v18 = vor.u32 %v432_v11, %v431_v10  ;;  %v501_v38 = vrot.slane %v432_v11, 1  ;;  %v4427_v46 = vld [vmem:[#allocation8 + $0x1c8] sm:$0xff]  ;;  %v558_v11 = vshll.u32 %v529_v28, 16 }
  0x84   : > { %v5232_v56 = vsel %vm5194_vm5, %v498_v52, %v544_v24  ;;  %v446_v52 = vshll.u32 %v5124_v36, 16  ;;  %v4435_v24 = vld [vmem:[#allocation8 + $0x208] sm:$0xff]  ;;  %v504_v5 = vor.u32 %v503_v30, %v436_v32 }
  0x85   : > { %1419 = vmatpush.bf16.msra.mxu2 %v4423_v20  ;;  %1289 = vmatpush.bf16.msra.mxu1 %v4415_v21  ;;  %v5250_v19 = vsel %vm5194_vm5, %v500_v12, %v548_v3  ;;  %v4420_v21 = vld [vmem:[#allocation8 + $0x190] sm:$0xff]  ;;  %v502_v43 = vor.u32 %v501_v38, %v429_v62  ;;  %v4426_v62 = vld [vmem:[#allocation8 + $0x1c0] sm:$0xff]  ;;  %v327_v12 = vpack.c.b16 %v5150_v6, %v5150_v6 }
  0x86   : > { %v274_v0 = vld [vmem:[%s5089_s7 + $0x70] sm:$0xff]  ;;  %v505_v10 = vrot.slane %v446_v52, 1 }
  0x87   : > { %1550 = vmatpush.bf16.msra.mxu3 %v4431_v22  ;;  %1680 = vmatpush.bf16.msra.mxu0 %v4439_v27  ;;  %v4428_v22 = vld [vmem:[#allocation8 + $0x1d0] sm:$0xff] }
  0x88   : > { %v4412_v27 = vld [vmem:[#allocation8 + $0x150] sm:$0xff] }
  0x89   : > { %1420 = vmatpush.bf16.msra.mxu2 %v4422_v39  ;;  %1290 = vmatpush.bf16.msra.mxu1 %v4414_v31  ;;  %v4419_v31 = vld [vmem:[#allocation8 + $0x188] sm:$0xff] }
  0x8b   : > { %1551 = vmatpush.bf16.msra.mxu3 %v4430_v37  ;;  %1681 = vmatpush.bf16.msra.mxu0 %v4438_v47  ;;  %v5272_v37 = vsel %vm5190_vm4, %v346_v44, %v441_v17  ;;  %v443_v47 = vshrl.u32 %v5124_v36, 16 }
  0x8c   : > { %795 = vmatmul.bf16.gmra.mxu1 %v484_v8  ;;  %909 = vmatmul.bf16.gmra.mxu2 %v5215_v45  ;;  %v324_v8 = vpack.c.b16 %v5102_v25, %v5102_v25  ;;  %v527_v25 = vpack.c.b16 %v5104_v26, %v5104_v26 }
  0x8d   : > { %1421 = vmatpush.bf16.msra.mxu2 %v4421_v58  ;;  %1291 = vmatpush.bf16.msra.mxu1 %v4413_v61  ;;  %v445_v51 = vrot.slane %v443_v47, 7  ;;  %v5286_v58 = vsel %vm5194_vm5, %v504_v5, %v556_v53  ;;  %v4418_v61 = vld [vmem:[#allocation8 + $0x180] sm:$0xff] }
  0x8e   : > { %1039 = vmatmul.bf16.gmra.mxu3 %v5219_v23  ;;  %1170 = vmatmul.bf16.gmra.mxu0 %v5116_v34  ;;  %v343_v13 = vshrl.u32 %v324_v8, 16  ;;  %v550_v40 = vshll.u32 %v527_v25, 16  ;;  %v4410_v8 = vld [vmem:[#allocation8 + $0x140] sm:$0xff]  ;;  %v297_v25 = vpack.c.bf16 %v275_v1, %v275_v1 }
  0x8f   : > { %1552 = vmatpush.bf16.msra.mxu3 %v4429_v60  ;;  %1682 = vmatpush.bf16.msra.mxu0 %v4437_v63  ;;  %v448_v2 = vor.u32 %v446_v52, %v445_v51  ;;  %v450_v63 = vshrl.u32 %v5168_v16, 16 }
  0x90   : > { %v5254_v20 = vsel %vm5190_vm4, %v343_v13, %v434_v18  ;;  %v552_v26 = vrot.slane %v550_v40, 4  ;;  %v453_v13 = vshll.u32 %v5168_v16, 16  ;;  %v296_v18 = vpack.c.bf16 %v274_v0, %v274_v0 }
  0x91   : > { %1422 = vmatpush.bf16.msra.mxu2 %v4420_v21  ;;  %1292 = vmatpush.bf16.msra.mxu1 %v4412_v27  ;;  %v5290_v60 = vsel %vm5190_vm4, %v349_v55, %v448_v2  ;;  %v452_v3 = vrot.slane %v450_v63, 7  ;;  %v506_v21 = vor.u32 %v505_v10, %v443_v47  ;;  %v352_v27 = vshrl.u32 %v327_v12, 16 }
  0x92   : > { %v5268_v39 = vsel %vm5194_vm5, %v502_v43, %v552_v26  ;;  %v5304_v38 = vunpack.c.l.b16 %v297_v25  ;;  %v530_v43 = vpack.c.b16 %v5152_v7, %v5152_v7 }
  0x93   : > { %1553 = vmatpush.bf16.msra.mxu3 %v4428_v22  ;;  %1683 = vmatpush.bf16.msra.mxu0 %v4436_v33  ;;  %v560_v22 = vrot.slane %v558_v11, 4  ;;  %v455_v32 = vor.u32 %v453_v13, %v452_v3  ;;  %v318_v33 = vunpack.c.l.b16 %v296_v18 }
  0x95   : > { %1423 = vmatpush.bf16.msra.mxu2 %v4419_v31  ;;  %1293 = vmatpush.bf16.msra.mxu1 %v4411_v48  ;;  %v5310_v6 = vsel %vm5194_vm5, %v506_v21, %v560_v22  ;;  %v5314_v9 = vsel %vm5190_vm4, %v352_v27, %v455_v32  ;;  %v5317_v42 = vpack.c.b16 %v5304_v38, %v318_v33  ;;  %v507_v31 = vrot.slane %v453_v13, 1 }
  0x96   : > { %v328_v48 = vpack.c.b16 %v318_v33, %v318_v33 }
  0x97   : > { %1554 = vmatpush.bf16.msra.mxu3 %v4427_v46  ;;  %1684 = vmatpush.bf16.msra.mxu0 %v4435_v24  ;;  %v457_v26 = vshrl.u32 %v5317_v42, 16  ;;  %v562_v46 = vshll.u32 %v530_v43, 16  ;;  %v460_v49 = vshll.u32 %v5317_v42, 16  ;;  %v508_v50 = vor.u32 %v507_v31, %v450_v63 }
  0x98   : > { %v355_v7 = vshrl.u32 %v328_v48, 16 }
  0x99   : > { %1424 = vmatpush.bf16.msra.mxu2 %v4418_v61  ;;  %1294 = vmatpush.bf16.msra.mxu1 %v4410_v8  ;;  %v459_v30 = vrot.slane %v457_v26, 7  ;;  %v564_v51 = vrot.slane %v562_v46, 4 }
  0x9b   : > { %1555 = vmatpush.bf16.msra.mxu3 %v4426_v62  ;;  %1685 = vmatpush.bf16.msra.mxu0 %v4434_v29  ;;  %v462_v52 = vor.u32 %v460_v49, %v459_v30  ;;  %v5345_v55 = vsel %vm5194_vm5, %v508_v50, %v564_v51 }
  0x9c   : > { %800 = vmatmul.bf16.gmra.mxu1 %v5219_v23  ;;  %914 = vmatmul.bf16.gmra.mxu2 %v5232_v56 }
  0x9d   : > { %v5349_v28 = vsel %vm5190_vm4, %v355_v7, %v462_v52 }
  0x9e   : > { %1044 = vmatmul.bf16.gmra.mxu3 %v5236_v57  ;;  %1175 = vmatmul.bf16.gmra.mxu0 %v5160_v14 }
  0xac   : > { %805 = vmatmul.bf16.gmra.mxu1 %v5236_v57  ;;  %919 = vmatmul.bf16.gmra.mxu2 %v5250_v19 }
  0xae   : > { %1049 = vmatmul.bf16.gmra.mxu3 %v5254_v20  ;;  %1180 = vmatmul.bf16.gmra.mxu0 %v5120_v35 }
  0xbc   : > { %810 = vmatmul.bf16.gmra.mxu1 %v5254_v20  ;;  %924 = vmatmul.bf16.gmra.mxu2 %v5268_v39 }
  0xbe   : > { %1054 = vmatmul.bf16.gmra.mxu3 %v5272_v37  ;;  %1185 = vmatmul.bf16.gmra.mxu0 %v5164_v15 }
  0xcc   : > { %815 = vmatmul.bf16.gmra.mxu1 %v5272_v37  ;;  %929 = vmatmul.bf16.gmra.mxu2 %v5286_v58 }
  0xce   : > { %1059 = vmatmul.bf16.gmra.mxu3 %v5290_v60  ;;  %1190 = vmatmul.bf16.gmra.mxu0 %v5124_v36 }
  0xd9   : > { %v5306_v40 = vpop.f32.mrf.mxu1 }
  0xdb   : > { %v694_v41 = vpop.f32.mrf.mxu0 }
  0xdc   : > { %820 = vmatmul.bf16.gmra.mxu1 %v5290_v60  ;;  %934 = vmatmul.bf16.gmra.mxu2 %v5310_v6 }
  0xde   : > { %1064 = vmatmul.bf16.gmra.mxu3 %v5314_v9  ;;  %1195 = vmatmul.bf16.gmra.mxu0 %v5168_v16 }
  0xdf   : > { %v5326_v44 = vpop.f32.mrf.mxu2 }
  0xe1   : > { %v5328_v17 = vpop.f32.mrf.mxu3  ;;  %v5330_v4 = vpop.f32.mrf.mxu1 }
  0xe3   : > { %v696_v47 = vpop.f32.mrf.mxu0 }
  0xe7   : > { %v5337_v24 = vpop.f32.mrf.mxu2 }
  0xe9   : > { %v5339_v5 = vpop.f32.mrf.mxu3  ;;  %v5341_v53 = vpop.f32.mrf.mxu1 }
  0xeb   : > { %v699_v2 = vpop.f32.mrf.mxu0 }
  0xec   : > { %825 = vmatmul.bf16.gmra.mxu1 %v5314_v9  ;;  %939 = vmatmul.bf16.gmra.mxu2 %v5345_v55 }
  0xee   : > { %1069 = vmatmul.bf16.gmra.mxu3 %v5349_v28  ;;  %1200 = vmatmul.bf16.gmra.mxu0 %v5317_v42 }
  0xef   : > { %v5355_v61 = vpop.f32.mrf.mxu2 }
  0xf1   : > { %v5357_v62 = vpop.f32.mrf.mxu3  ;;  %v5359_v63 = vpop.f32.mrf.mxu1 }
  0xf3   : > { %v701_v0 = vpop.f32.mrf.mxu0 }
  0xf7   : > { %v5361_v1 = vpop.f32.mrf.mxu2 }
  0xf9   : > { %v5363_v8 = vpop.f32.mrf.mxu3  ;;  %v791_v10 = vpop.f32.mrf.mxu1 }
  0xfa   : > { %v792_v11 = vadd.f32 %v791_v10, %v694_v41 }
  0xfb   : > { %v1166_v12 = vpop.f32.mrf.mxu0 }
  0xfc   : > { %1295 = vmatmul.bf16.vlgmr.msra.gmra.mxu1 %v5215_v45  ;;  %1425 = vmatmul.bf16.vlgmr.msra.gmra.mxu2 %v5219_v23 }
  0xfe   : > { %1556 = vmatmul.bf16.vlgmr.msra.gmra.mxu3 %v5116_v34  ;;  %1686 = vmatmul.bf16.vlgmr.msra.gmra.mxu0 %v5232_v56 }
  0xff   : > { %v905_v3 = vpop.f32.mrf.mxu2 }
 0x100   : > { %v945_v13 = vadd.f32 %v905_v3, %v792_v11 }
 0x101   : > { %v1035_v18 = vpop.f32.mrf.mxu3  ;;  %v793_v25 = vpop.f32.mrf.mxu1 }
 0x102   : > { %v1075_v29 = vadd.f32 %v1035_v18, %v945_v13  ;;  %v794_v21 = vadd.f32 %v793_v25, %v696_v47 }
 0x103   : > { %v1168_v22 = vpop.f32.mrf.mxu0 }
 0x104   : > { %v5369_v27 = vadd.f32 %v1166_v12, %v1075_v29 }
 0x107   : > { %v907_v32 = vpop.f32.mrf.mxu2 }
 0x108   : > { %v946_v33 = vadd.f32 %v907_v32, %v794_v21 }
 0x109   : > { %v1037_v41 = vpop.f32.mrf.mxu3  ;;  %v796_v43 = vpop.f32.mrf.mxu1 }
 0x10a   : > { %v1076_v45 = vadd.f32 %v1037_v41, %v946_v33  ;;  %v797_v31 = vadd.f32 %v796_v43, %v699_v2 }
 0x10b   : > { %v1171_v23 = vpop.f32.mrf.mxu0 }
 0x10c   : > { %1300 = vmatmul.bf16.gmra.mxu1 %v5232_v56  ;;  %1430 = vmatmul.bf16.gmra.mxu2 %v5236_v57  ;;  %v5373_v34 = vadd.f32 %v1168_v22, %v1076_v45 }
 0x10e   : > { %1561 = vmatmul.bf16.gmra.mxu3 %v5160_v14  ;;  %1691 = vmatmul.bf16.gmra.mxu0 %v5250_v19 }
 0x10f   : > { %v910_v46 = vpop.f32.mrf.mxu2 }
 0x110   : > { %v947_v47 = vadd.f32 %v910_v46, %v797_v31 }
 0x111   : > { %v1040_v48 = vpop.f32.mrf.mxu3  ;;  %v798_v30 = vpop.f32.mrf.mxu1 }
 0x112   : > { %v1077_v50 = vadd.f32 %v1040_v48, %v947_v47  ;;  %v799_v51 = vadd.f32 %v798_v30, %v701_v0 }
 0x113   : > { %v1173_v7 = vpop.f32.mrf.mxu0 }
 0x114   : > { %v5377_v52 = vadd.f32 %v1171_v23, %v1077_v50 }
 0x117   : > { %v912_v2 = vpop.f32.mrf.mxu2 }
 0x118   : > { %v948_v10 = vadd.f32 %v912_v2, %v799_v51 }
 0x119   : > { %v1042_v56 = vpop.f32.mrf.mxu3  ;;  %v801_v11 = vpop.f32.mrf.mxu1 }
 0x11a   : > { %v1078_v57 = vadd.f32 %v1042_v56, %v948_v10  ;;  %v802_v12 = vadd.f32 %v801_v11, %v5306_v40 }
 0x11b   : > { %v1176_v3 = vpop.f32.mrf.mxu0 }
 0x11c   : > { %1305 = vmatmul.bf16.gmra.mxu1 %v5250_v19  ;;  %1435 = vmatmul.bf16.gmra.mxu2 %v5254_v20  ;;  %v5382_v14 = vadd.f32 %v1173_v7, %v1078_v57 }
 0x11e   : > { %1566 = vmatmul.bf16.gmra.mxu3 %v5120_v35  ;;  %1696 = vmatmul.bf16.gmra.mxu0 %v5268_v39 }
 0x11f   : > { %v915_v0 = vpop.f32.mrf.mxu2 }
 0x120   : > { %v949_v13 = vadd.f32 %v915_v0, %v802_v12 }
 0x121   : > { %v1045_v18 = vpop.f32.mrf.mxu3  ;;  %v803_v25 = vpop.f32.mrf.mxu1 }
 0x122   : > { %v1079_v29 = vadd.f32 %v1045_v18, %v949_v13  ;;  %v804_v21 = vadd.f32 %v803_v25, %v5330_v4 }
 0x123   : > { %v1178_v22 = vpop.f32.mrf.mxu0 }
 0x124   : > { %v5387_v40 = vadd.f32 %v1176_v3, %v1079_v29 }
 0x127   : > { %v917_v32 = vpop.f32.mrf.mxu2 }
 0x128   : > { %v950_v19 = vadd.f32 %v917_v32, %v804_v21  ;;  %v531_v21 = vpack.c.b16 %v5304_v38, %v5304_v38  ;;  %v279_v32 = vld [vmem:[%s277_s23 + $0x8] sm:$0xff] }
 0x129   : > { %v1047_v33 = vpop.f32.mrf.mxu3  ;;  %v806_v20 = vpop.f32.mrf.mxu1 }
 0x12a   : > { %v1080_v41 = vadd.f32 %v1047_v33, %v950_v19  ;;  %v807_v43 = vadd.f32 %v806_v20, %v5341_v53 }
 0x12b   : > { %v1181_v35 = vpop.f32.mrf.mxu0 }
 0x12c   : > { %1310 = vmatmul.bf16.gmra.mxu1 %v5268_v39  ;;  %1440 = vmatmul.bf16.gmra.mxu2 %v5272_v37  ;;  %v5392_v45 = vadd.f32 %v1178_v22, %v1080_v41  ;;  %v278_v22 = vld [vmem:[%s277_s23] sm:$0xff] }
 0x12e   : > { %1571 = vmatmul.bf16.gmra.mxu3 %v5164_v15  ;;  %1701 = vmatmul.bf16.gmra.mxu0 %v5286_v58 }
 0x12f   : > { %v920_v4 = vpop.f32.mrf.mxu2 }
 0x130   : > { %v951_v31 = vadd.f32 %v920_v4, %v807_v43  ;;  %v299_v43 = vpack.c.bf16 %v279_v32, %v279_v32  ;;  %v566_v4 = vshll.u32 %v531_v21, 16 }
 0x131   : > { %v1050_v23 = vpop.f32.mrf.mxu3  ;;  %v808_v46 = vpop.f32.mrf.mxu1 }
 0x132   : > { %v1081_v47 = vadd.f32 %v1050_v23, %v951_v31  ;;  %v809_v48 = vadd.f32 %v808_v46, %v5359_v63  ;;  %v389_v23 = vunpack.c.l.b16 %v299_v43 }
 0x133   : > { %v1183_v30 = vpop.f32.mrf.mxu0 }
 0x134   : > { %v5397_v53 = vadd.f32 %v1181_v35, %v1081_v47  ;;  %v568_v47 = vrot.slane %v566_v4, 4 }
 0x137   : > { %v922_v39 = vpop.f32.mrf.mxu2 }
 0x138   : > { %v952_v50 = vadd.f32 %v922_v39, %v809_v48 }
 0x139   : > { %v1052_v37 = vpop.f32.mrf.mxu3  ;;  %v811_v51 = vpop.f32.mrf.mxu1 }
 0x13a   : > { %v1082_v7 = vadd.f32 %v1052_v37, %v952_v50  ;;  %v812_v63 = vadd.f32 %v811_v51, %v5326_v44 }
 0x13b   : > { %v1186_v15 = vpop.f32.mrf.mxu0 }
 0x13c   : > { %1315 = vmatmul.bf16.gmra.mxu1 %v5286_v58  ;;  %1445 = vmatmul.bf16.gmra.mxu2 %v5290_v60  ;;  %v5401_v2 = vadd.f32 %v1183_v30, %v1082_v7 }
 0x13e   : > { %1576 = vmatmul.bf16.gmra.mxu3 %v5124_v36  ;;  %1706 = vmatmul.bf16.gmra.mxu0 %v5310_v6 }
 0x13f   : > { %v925_v10 = vpop.f32.mrf.mxu2 }
 0x140   : > { %v953_v56 = vadd.f32 %v925_v10, %v812_v63  ;;  %v532_v10 = vpack.c.b16 %v389_v23, %v389_v23 }
 0x141   : > { %v1055_v11 = vpop.f32.mrf.mxu3  ;;  %v813_v57 = vpop.f32.mrf.mxu1 }
 0x142   : > { %v1083_v12 = vadd.f32 %v1055_v11, %v953_v56  ;;  %v814_v60 = vadd.f32 %v813_v57, %v5337_v24 }
 0x143   : > { %v1188_v3 = vpop.f32.mrf.mxu0 }
 0x144   : > { %v5408_v58 = vadd.f32 %v1186_v15, %v1083_v12 }
 0x147   : > { %v927_v0 = vpop.f32.mrf.mxu2 }
 0x148   : > { %v954_v36 = vadd.f32 %v927_v0, %v814_v60 }
 0x149   : > { %v1057_v13 = vpop.f32.mrf.mxu3  ;;  %v816_v18 = vpop.f32.mrf.mxu1 }
 0x14a   : > { %v1084_v44 = vadd.f32 %v1057_v13, %v954_v36  ;;  %v817_v24 = vadd.f32 %v816_v18, %v5355_v61 }
 0x14b   : > { %v1191_v25 = vpop.f32.mrf.mxu0 }
 0x14c   : > { %1320 = vmatmul.bf16.gmra.mxu1 %v5310_v6  ;;  %1450 = vmatmul.bf16.gmra.mxu2 %v5314_v9  ;;  %v5414_v29 = vadd.f32 %v1188_v3, %v1084_v44  ;;  %v298_v6 = vpack.c.bf16 %v278_v22, %v278_v22 }
 0x14e   : > { %1581 = vmatmul.bf16.gmra.mxu3 %v5168_v16  ;;  %1711 = vmatmul.bf16.gmra.mxu0 %v5345_v55  ;;  %v509_v16 = vrot.slane %v460_v49, 1  ;;  %v319_v61 = vunpack.c.l.b16 %v298_v6 }
 0x14f   : > { %v930_v19 = vpop.f32.mrf.mxu2 }
 0x150   : > { %v955_v33 = vadd.f32 %v930_v19, %v817_v24  ;;  %v510_v46 = vor.u32 %v509_v16, %v457_v26  ;;  %v399_v37 = vpack.c.b16 %v389_v23, %v319_v61  ;;  %v329_v3 = vpack.c.b16 %v319_v61, %v319_v61 }
 0x151   : > { %v1060_v20 = vpop.f32.mrf.mxu3  ;;  %v818_v41 = vpop.f32.mrf.mxu1 }
 0x152   : > { %v1085_v9 = vadd.f32 %v1060_v20, %v955_v33  ;;  %v819_v38 = vadd.f32 %v818_v41, %v5361_v1  ;;  %v594_v49 = vsel %vm5194_vm5, %v510_v46, %v568_v47  ;;  %v464_v26 = vshrl.u32 %v399_v37, 16 }
 0x153   : > { %v1193_v35 = vpop.f32.mrf.mxu0  ;;  %v467_v63 = vshll.u32 %v399_v37, 16  ;;  %v358_v18 = vshrl.u32 %v329_v3, 16 }
 0x154   : > { %v5423_v31 = vadd.f32 %v1191_v25, %v1085_v9  ;;  %v466_v60 = vrot.slane %v464_v26, 7 }
 0x155   : > { %v511_v36 = vrot.slane %v467_v63, 1 }
 0x157   : > { %v932_v48 = vpop.f32.mrf.mxu2  ;;  %v512_v25 = vor.u32 %v511_v36, %v464_v26 }
 0x158   : > { %v956_v30 = vadd.f32 %v932_v48, %v819_v38 }
 0x159   : > { %v1062_v39 = vpop.f32.mrf.mxu3  ;;  %v821_v50 = vpop.f32.mrf.mxu1 }
 0x15a   : > { %v1086_v51 = vadd.f32 %v1062_v39, %v956_v30  ;;  %v822_v1 = vadd.f32 %v821_v50, %v5328_v17 }
 0x15b   : > { %v1196_v7 = vpop.f32.mrf.mxu0 }
 0x15c   : > { %1325 = vmatmul.bf16.gmra.mxu1 %v5345_v55  ;;  %1455 = vmatmul.bf16.gmra.mxu2 %v5349_v28  ;;  %v5432_v15 = vadd.f32 %v1193_v35, %v1086_v51  ;;  %v570_v28 = vshll.u32 %v532_v10, 16 }
 0x15e   : > { %1586 = vmatmul.bf16.gmra.mxu3 %v5317_v42  ;;  %1716 = vmatmul.bf16.gmra.mxu0 %v594_v49  ;;  %v469_v42 = vor.u32 %v467_v63, %v466_v60  ;;  %v572_v17 = vrot.slane %v570_v28, 4 }
 0x15f   : > { %v935_v56 = vpop.f32.mrf.mxu2 }
 0x160   : > { %v957_v11 = vadd.f32 %v935_v56, %v822_v1  ;;  %v492_v19 = vsel %vm5190_vm4, %v358_v18, %v469_v42  ;;  %v595_v41 = vsel %vm5194_vm5, %v512_v25, %v572_v17 }
 0x161   : > { %v1065_v57 = vpop.f32.mrf.mxu3  ;;  %v823_v12 = vpop.f32.mrf.mxu1 }
 0x162   : > { %v1087_v0 = vadd.f32 %v1065_v57, %v957_v11  ;;  %v824_v44 = vadd.f32 %v823_v12, %v5339_v5 }
 0x163   : > { %v1198_v55 = vpop.f32.mrf.mxu0 }
 0x164   : > { %v5436_v13 = vadd.f32 %v1196_v7, %v1087_v0 }
 0x167   : > { %v937_v24 = vpop.f32.mrf.mxu2 }
 0x168   : > { %v958_v21 = vadd.f32 %v937_v24, %v824_v44 }
 0x169   : > { %v1067_v22 = vpop.f32.mrf.mxu3  ;;  %v826_v32 = vpop.f32.mrf.mxu1 }
 0x16a   : > { %v1088_v33 = vadd.f32 %v1067_v22, %v958_v21  ;;  %v827_v5 = vadd.f32 %v826_v32, %v5357_v62 }
 0x16b   : > { %v1201_v20 = vpop.f32.mrf.mxu0 }
 0x16c   : > { %1330 = vmatmul.bf16.gmra.mxu1 %v594_v49  ;;  %1460 = vmatmul.bf16.gmra.mxu2 %v492_v19  ;;  %v5443_v6 = vadd.f32 %v1198_v55, %v1088_v33 }
 0x16e   : > { %1591 = vmatmul.bf16.gmra.mxu3 %v399_v37  ;;  %1721 = vmatmul.bf16.gmra.mxu0 %v595_v41 }
 0x16f   : > { %v940_v43 = vpop.f32.mrf.mxu2 }
 0x170   : > { %v959_v9 = vadd.f32 %v940_v43, %v827_v5 }
 0x171   : > { %v1070_v35 = vpop.f32.mrf.mxu3  ;;  %v828_v16 = vpop.f32.mrf.mxu1 }
 0x172   : > { %v1089_v4 = vadd.f32 %v1070_v35, %v959_v9  ;;  %v829_v23 = vadd.f32 %v828_v16, %v5363_v8 }
 0x173   : > { %v1203_v54 = vpop.f32.mrf.mxu0 }
 0x174   : > { %v5446_v61 = vadd.f32 %v1201_v20, %v1089_v4 }
 0x177   : > { %v942_v59 = vpop.f32.mrf.mxu2 }
 0x178   : > { %v960_v38 = vadd.f32 %v942_v59, %v829_v23 }
 0x179   : > { %v1072_v46 = vpop.f32.mrf.mxu3  ;;  %v1296_v47 = vpop.f32.mrf.mxu1 }
 0x17a   : > { %v1090_v48 = vadd.f32 %v1072_v46, %v960_v38  ;;  %v1336_v62 = vadd.f32 %v1296_v47, %v5369_v27 }
 0x17b   : > { %v1687_v30 = vpop.f32.mrf.mxu0 }
 0x17c   : > { %v5449_v39 = vadd.f32 %v1203_v54, %v1090_v48 }
 0x17f   : > { %v1426_v50 = vpop.f32.mrf.mxu2 }
 0x180   : > { %v1466_v37 = vadd.f32 %v1426_v50, %v1336_v62 }
 0x181   : > { %v1557_v51 = vpop.f32.mrf.mxu3  ;;  %v1298_v7 = vpop.f32.mrf.mxu1 }
 0x182   : > { %v1597_v49 = vadd.f32 %v1557_v51, %v1466_v37  ;;  %v1337_v8 = vadd.f32 %v1298_v7, %v5373_v34 }
 0x183   : > { %v1689_v26 = vpop.f32.mrf.mxu0 }
 0x184   : > { %v5452_v1 = vadd.f32 %v1687_v30, %v1597_v49 }
 0x186   : > { %1744 = vst [vmem:[%s5456_s9] sm:$0xff] %v5452_v1 }
 0x187   : > { %v1428_v63 = vpop.f32.mrf.mxu2 }
 0x188   : > { %v1467_v27 = vadd.f32 %v1428_v63, %v1337_v8 }
 0x189   : > { %v1559_v10 = vpop.f32.mrf.mxu3  ;;  %v1301_v56 = vpop.f32.mrf.mxu1 }
 0x18a   : > { %v1598_v11 = vadd.f32 %v1559_v10, %v1467_v27  ;;  %v1338_v3 = vadd.f32 %v1301_v56, %v5377_v52 }
 0x18b   : > { %v1692_v57 = vpop.f32.mrf.mxu0 }
 0x18c   : > { %v5461_v12 = vadd.f32 %v1689_v26, %v1598_v11 }
 0x18e   : > { %1745 = vst [vmem:[%s5456_s9 + $0x8] sm:$0xff] %v5461_v12 }
 0x18f   : > { %v1431_v60 = vpop.f32.mrf.mxu2 }
 0x190   : > { %v1468_v0 = vadd.f32 %v1431_v60, %v1338_v3 }
 0x191   : > { %v1562_v55 = vpop.f32.mrf.mxu3  ;;  %v1303_v36 = vpop.f32.mrf.mxu1 }
 0x192   : > { %v1599_v28 = vadd.f32 %v1562_v55, %v1468_v0  ;;  %v1339_v42 = vadd.f32 %v1303_v36, %v5382_v14 }
 0x193   : > { %v1694_v34 = vpop.f32.mrf.mxu0 }
 0x194   : > { %v5466_v18 = vadd.f32 %v1692_v57, %v1599_v28 }
 0x196   : > { %1746 = vst [vmem:[%s5456_s9 + $0x10] sm:$0xff] %v5466_v18 }
 0x197   : > { %v1433_v44 = vpop.f32.mrf.mxu2 }
 0x198   : > { %v1469_v25 = vadd.f32 %v1433_v44, %v1339_v42 }
 0x199   : > { %v1564_v17 = vpop.f32.mrf.mxu3  ;;  %v1306_v24 = vpop.f32.mrf.mxu1 }
 0x19a   : > { %v1600_v21 = vadd.f32 %v1564_v17, %v1469_v25  ;;  %v1340_v32 = vadd.f32 %v1306_v24, %v5387_v40 }
 0x19b   : > { %v1697_v52 = vpop.f32.mrf.mxu0 }
 0x19c   : > { %v5471_v22 = vadd.f32 %v1694_v34, %v1600_v21 }
 0x19e   : > { %1747 = vst [vmem:[%s5456_s9 + $0x18] sm:$0xff] %v5471_v22 }
 0x19f   : > { %v1436_v19 = vpop.f32.mrf.mxu2 }
 0x1a0   : > { %v1470_v33 = vadd.f32 %v1436_v19, %v1340_v32 }
 0x1a1   : > { %v1567_v20 = vpop.f32.mrf.mxu3  ;;  %v1308_v41 = vpop.f32.mrf.mxu1 }
 0x1a2   : > { %v1601_v5 = vadd.f32 %v1567_v20, %v1470_v33  ;;  %v1341_v9 = vadd.f32 %v1308_v41, %v5392_v45 }
 0x1a3   : > { %v1699_v14 = vpop.f32.mrf.mxu0 }
 0x1a4   : > { %v5476_v43 = vadd.f32 %v1697_v52, %v1601_v5 }
 0x1a6   : > { %1748 = vst [vmem:[%s5456_s9 + $0x20] sm:$0xff] %v5476_v43 }
 0x1a7   : > { %v1438_v35 = vpop.f32.mrf.mxu2 }
 0x1a8   : > { %v1471_v16 = vadd.f32 %v1438_v35, %v1341_v9 }
 0x1a9   : > { %v1569_v4 = vpop.f32.mrf.mxu3  ;;  %v1311_v54 = vpop.f32.mrf.mxu1 }
 0x1aa   : > { %v1602_v23 = vadd.f32 %v1569_v4, %v1471_v16  ;;  %v1342_v38 = vadd.f32 %v1311_v54, %v5397_v53 }
 0x1ab   : > { %v1702_v40 = vpop.f32.mrf.mxu0 }
 0x1ac   : > { %v5481_v59 = vadd.f32 %v1699_v14, %v1602_v23 }
 0x1ae   : > { %1749 = vst [vmem:[%s5456_s9 + $0x28] sm:$0xff] %v5481_v59 }
 0x1af   : > { %v1441_v46 = vpop.f32.mrf.mxu2 }
 0x1b0   : > { %v1472_v47 = vadd.f32 %v1441_v46, %v1342_v38 }
 0x1b1   : > { %v1572_v48 = vpop.f32.mrf.mxu3  ;;  %v1313_v30 = vpop.f32.mrf.mxu1 }
 0x1b2   : > { %v1603_v62 = vadd.f32 %v1572_v48, %v1472_v47  ;;  %v1343_v37 = vadd.f32 %v1313_v30, %v5401_v2 }
 0x1b3   : > { %v1704_v45 = vpop.f32.mrf.mxu0 }
 0x1b4   : > { %v5486_v50 = vadd.f32 %v1702_v40, %v1603_v62 }
 0x1b6   : > { %1750 = vst [vmem:[%s5456_s9 + $0x30] sm:$0xff] %v5486_v50 }
 0x1b7   : > { %v1443_v51 = vpop.f32.mrf.mxu2 }
 0x1b8   : > { %v1473_v7 = vadd.f32 %v1443_v51, %v1343_v37 }
 0x1b9   : > { %v1574_v49 = vpop.f32.mrf.mxu3  ;;  %v1316_v26 = vpop.f32.mrf.mxu1 }
 0x1ba   : > { %v1604_v8 = vadd.f32 %v1574_v49, %v1473_v7  ;;  %v1344_v27 = vadd.f32 %v1316_v26, %v5408_v58 }
 0x1bb   : > { %v1707_v53 = vpop.f32.mrf.mxu0 }
 0x1bc   : > { %v5491_v63 = vadd.f32 %v1704_v45, %v1604_v8 }
 0x1be   : > { %1751 = vst [vmem:[%s5456_s9 + $0x38] sm:$0xff] %v5491_v63 }
 0x1bf   : > { %v1446_v10 = vpop.f32.mrf.mxu2 }
 0x1c0   : > { %v1474_v56 = vadd.f32 %v1446_v10, %v1344_v27 }
 0x1c1   : > { %v1577_v11 = vpop.f32.mrf.mxu3  ;;  %v1318_v57 = vpop.f32.mrf.mxu1 }
 0x1c2   : > { %v1605_v3 = vadd.f32 %v1577_v11, %v1474_v56  ;;  %v1345_v0 = vadd.f32 %v1318_v57, %v5414_v29 }
 0x1c3   : > { %v1709_v2 = vpop.f32.mrf.mxu0 }
 0x1c4   : > { %v5496_v60 = vadd.f32 %v1707_v53, %v1605_v3 }
 0x1c6   : > { %1752 = vst [vmem:[%s5456_s9 + $0x40] sm:$0xff] %v5496_v60 }
 0x1c7   : > { %v1448_v55 = vpop.f32.mrf.mxu2 }
 0x1c8   : > { %v1475_v36 = vadd.f32 %v1448_v55, %v1345_v0 }
 0x1c9   : > { %v1579_v28 = vpop.f32.mrf.mxu3  ;;  %v1321_v34 = vpop.f32.mrf.mxu1 }
 0x1ca   : > { %v1606_v42 = vadd.f32 %v1579_v28, %v1475_v36  ;;  %v1346_v25 = vadd.f32 %v1321_v34, %v5423_v31 }
 0x1cb   : > { %v1712_v58 = vpop.f32.mrf.mxu0 }
 0x1cc   : > { %v5501_v44 = vadd.f32 %v1709_v2, %v1606_v42 }
 0x1ce   : > { %1753 = vst [vmem:[%s5456_s9 + $0x48] sm:$0xff] %v5501_v44 }
 0x1cf   : > { %v1451_v17 = vpop.f32.mrf.mxu2 }
 0x1d0   : > { %v1476_v24 = vadd.f32 %v1451_v17, %v1346_v25 }
 0x1d1   : > { %v1582_v21 = vpop.f32.mrf.mxu3  ;;  %v1323_v52 = vpop.f32.mrf.mxu1 }
 0x1d2   : > { %v1607_v32 = vadd.f32 %v1582_v21, %v1476_v24  ;;  %v1347_v33 = vadd.f32 %v1323_v52, %v5432_v15 }
 0x1d3   : > { %v1714_v29 = vpop.f32.mrf.mxu0 }
 0x1d4   : > { %v5506_v19 = vadd.f32 %v1712_v58, %v1607_v32 }
 0x1d6   : > { %1754 = vst [vmem:[%s5456_s9 + $0x50] sm:$0xff] %v5506_v19 }
 0x1d7   : > { %v1453_v20 = vpop.f32.mrf.mxu2 }
 0x1d8   : > { %v1477_v41 = vadd.f32 %v1453_v20, %v1347_v33 }
 0x1d9   : > { %v1584_v5 = vpop.f32.mrf.mxu3  ;;  %v1326_v14 = vpop.f32.mrf.mxu1 }
 0x1da   : > { %v1608_v9 = vadd.f32 %v1584_v5, %v1477_v41  ;;  %v1348_v16 = vadd.f32 %v1326_v14, %v5436_v13 }
 0x1db   : > { %v1717_v35 = vpop.f32.mrf.mxu0 }
 0x1dc   : > { %v5511_v31 = vadd.f32 %v1714_v29, %v1608_v9 }
 0x1de   : > { %1755 = vst [vmem:[%s5456_s9 + $0x58] sm:$0xff] %v5511_v31 }
 0x1df   : > { %v1456_v4 = vpop.f32.mrf.mxu2 }
 0x1e0   : > { %v1478_v54 = vadd.f32 %v1456_v4, %v1348_v16 }
 0x1e1   : > { %v1587_v23 = vpop.f32.mrf.mxu3  ;;  %v1328_v40 = vpop.f32.mrf.mxu1 }
 0x1e2   : > { %v1609_v38 = vadd.f32 %v1587_v23, %v1478_v54  ;;  %v1349_v46 = vadd.f32 %v1328_v40, %v5443_v6 }
 0x1e3   : > { %v1719_v47 = vpop.f32.mrf.mxu0 }
 0x1e4   : > { %v5516_v15 = vadd.f32 %v1717_v35, %v1609_v38 }
 0x1e6   : > { %1756 = vst [vmem:[%s5456_s9 + $0x60] sm:$0xff] %v5516_v15 }
 0x1e7   : > { %v1458_v48 = vpop.f32.mrf.mxu2 }
 0x1e8   : > { %v1479_v30 = vadd.f32 %v1458_v48, %v1349_v46 }
 0x1e9   : > { %v1589_v62 = vpop.f32.mrf.mxu3  ;;  %v1331_v45 = vpop.f32.mrf.mxu1 }
 0x1ea   : > { %v1610_v37 = vadd.f32 %v1589_v62, %v1479_v30  ;;  %v1350_v51 = vadd.f32 %v1331_v45, %v5446_v61 }
 0x1eb   : > { %v1722_v8 = vpop.f32.mrf.mxu0 }
 0x1ec   : > { %v1740_v13 = vadd.f32 %v1719_v47, %v1610_v37 }
 0x1ee   : > { %1757 = vst [vmem:[%s5456_s9 + $0x68] sm:$0xff] %v1740_v13 }
 0x1ef   : > { %v1461_v7 = vpop.f32.mrf.mxu2 }
 0x1f0   : > { %v1480_v49 = vadd.f32 %v1461_v7, %v1350_v51 }
 0x1f1   : > { %v1592_v26 = vpop.f32.mrf.mxu3  ;;  %v1333_v27 = vpop.f32.mrf.mxu1 }
 0x1f2   : > { %v1611_v53 = vadd.f32 %v1592_v26, %v1480_v49  ;;  %v1351_v6 = vadd.f32 %v1333_v27, %v5449_v39 }
 0x1f3   : > { %v1724_v2 = vpop.f32.mrf.mxu0 }
 0x1f4   : > { %v1741_v10 = vadd.f32 %v1722_v8, %v1611_v53 }
 0x1f6   : > { %1758 = vst [vmem:[%s5456_s9 + $0x70] sm:$0xff] %v1741_v10 }
 0x1f7   : > { %v1463_v56 = vpop.f32.mrf.mxu2 }
 0x1f8   : > { %v1481_v11 = vadd.f32 %v1463_v56, %v1351_v6 }
 0x1f9   : > { %v1594_v57 = vpop.f32.mrf.mxu3 }
 0x1fa   : > { %v1612_v3 = vadd.f32 %v1594_v57, %v1481_v11  ;;  %1762 = sbr.rel (%p4066_p11) target bundleno = 513 (0x201), region = 52 }
 0x1fc   : > { %v1742_v0 = vadd.f32 %v1724_v2, %v1612_v3 }
 0x1fe   : > { %1759 = vst [vmem:[%s5456_s9 + $0x78] sm:$0xff] %v1742_v0 }
 0x1ff   : > { %v4908_v61 = vmov 0.0  }
 0x200   : > { %1763 = vst [vmem:[#allocation3] sm:$0x3] %v4908_v61 }
 0x201 PF: > { %v1765_v55 = vadd.f32 %v5461_v12, %v5452_v1  ;;  %v1789_v36 = vmul.f32 %v5452_v1, %v5452_v1  ;;  %v1790_v39 = vmul.f32 %v5461_v12, %v5461_v12  ;;  %v1791_v34 = vmul.f32 %v5466_v18, %v5466_v18 }
 0x202   : > { %v1792_v58 = vmul.f32 %v5471_v22, %v5471_v22  ;;  %v1793_v24 = vmul.f32 %v5476_v43, %v5476_v43  ;;  %v1794_v12 = vmul.f32 %v5481_v59, %v5481_v59  ;;  %v1795_v32 = vmul.f32 %v5486_v50, %v5486_v50 }
 0x203   : > { %v1766_v28 = vadd.f32 %v1765_v55, %v5466_v18  ;;  %v1805_v25 = vadd.f32 %v1790_v39, %v1789_v36  ;;  %v1796_v33 = vmul.f32 %v5491_v63, %v5491_v63  ;;  %v1797_v41 = vmul.f32 %v5496_v60, %v5496_v60 }
 0x204   : > { %v1798_v14 = vmul.f32 %v5501_v44, %v5501_v44  ;;  %v1799_v35 = vmul.f32 %v5506_v19, %v5506_v19  ;;  %v1800_v4 = vmul.f32 %v5511_v31, %v5511_v31  ;;  %v1801_v23 = vmul.f32 %v5516_v15, %v5516_v15 }
 0x205   : > { %v1767_v42 = vadd.f32 %v1766_v28, %v5471_v22  ;;  %v1806_v1 = vadd.f32 %v1805_v25, %v1791_v34  ;;  %v1802_v38 = vmul.f32 %v1740_v13, %v1740_v13  ;;  %v1803_v48 = vmul.f32 %v1741_v10, %v1741_v10 }
 0x206   : > { %v1804_v62 = vmul.f32 %v1742_v0, %v1742_v0 }
 0x207   : > { %v1768_v17 = vadd.f32 %v1767_v42, %v5476_v43  ;;  %v1807_v52 = vadd.f32 %v1806_v1, %v1792_v58  ;;  %v1764_v6 = vld [vmem:[#allocation3] sm:$0x1] }
 0x209   : > { %v1769_v21 = vadd.f32 %v1768_v17, %v5481_v59  ;;  %v1808_v29 = vadd.f32 %v1807_v52, %v1793_v24 }
 0x20b   : > { %v1770_v18 = vadd.f32 %v1769_v21, %v5486_v50  ;;  %v1809_v20 = vadd.f32 %v1808_v29, %v1794_v12 }
 0x20d   : > { %v1771_v22 = vadd.f32 %v1770_v18, %v5491_v63  ;;  %v1810_v5 = vadd.f32 %v1809_v20, %v1795_v32 }
 0x20f   : > { %v1772_v43 = vadd.f32 %v1771_v22, %v5496_v60  ;;  %v1811_v9 = vadd.f32 %v1810_v5, %v1796_v33 }
 0x211   : > { %v1773_v59 = vadd.f32 %v1772_v43, %v5501_v44  ;;  %v1812_v16 = vadd.f32 %v1811_v9, %v1797_v41 }
 0x213   : > { %v1774_v50 = vadd.f32 %v1773_v59, %v5506_v19  ;;  %v1813_v54 = vadd.f32 %v1812_v16, %v1798_v14 }
 0x215   : > { %v1775_v63 = vadd.f32 %v1774_v50, %v5511_v31  ;;  %v1814_v40 = vadd.f32 %v1813_v54, %v1799_v35 }
 0x217   : > { %v1776_v60 = vadd.f32 %v1775_v63, %v5516_v15  ;;  %v1815_v46 = vadd.f32 %v1814_v40, %v1800_v4 }
 0x219   : > { %v1777_v44 = vadd.f32 %v1776_v60, %v1740_v13  ;;  %v1816_v30 = vadd.f32 %v1815_v46, %v1801_v23 }
 0x21b   : > { %v1778_v47 = vadd.f32 %v1777_v44, %v1741_v10  ;;  %v1817_v45 = vadd.f32 %v1816_v30, %v1802_v38  ;;  %v1788_v10 = vld [vmem:[#allocation3 + $0x1] sm:$0x1] }
 0x21d   : > { %v1779_v19 = vadd.f32 %v1778_v47, %v1742_v0  ;;  %v1818_v51 = vadd.f32 %v1817_v45, %v1803_v48 }
 0x21f   : > { %v1780_v37 = vrot.slane %v1779_v19, 4  ;;  %v1819_v31 = vadd.f32 %v1818_v51, %v1804_v62 }
 0x221   : > { %v1781_v7 = vadd.f32 %v1780_v37, %v1779_v19  ;;  %v1820_v26 = vrot.slane %v1819_v31, 4 }
 0x223   : > { %v1782_v49 = vrot.slane %v1781_v7, 2  ;;  %v1821_v53 = vadd.f32 %v1820_v26, %v1819_v31 }
 0x225   : > { %v1783_v8 = vadd.f32 %v1782_v49, %v1781_v7  ;;  %v1822_v15 = vrot.slane %v1821_v53, 2 }
 0x227   : > { %v1784_v27 = vrot.slane %v1783_v8, 1  ;;  %v1823_v13 = vadd.f32 %v1822_v15, %v1821_v53 }
 0x229   : > { %v1785_v56 = vadd.f32 %v1784_v27, %v1783_v8  ;;  %v1824_v57 = vrot.slane %v1823_v13, 1 }
 0x22b   : > { %v1786_v11 = vadd.f32 %v1785_v56, %v1764_v6  ;;  %v1825_v3 = vadd.f32 %v1824_v57, %v1823_v13 }
 0x22d   : > { %1787 = vst [vmem:[#allocation3] sm:$0x1] %v1786_v11  ;;  %v1826_v2 = vadd.f32 %v1825_v3, %v1788_v10 }
 0x22f   : > { %1827 = vst [vmem:[#allocation3 + $0x1] sm:$0x1] %v1826_v2 }
 0x230 PF: > { %p4067_p12 = scmp.ne.s32.totalorder %s4880_s16, 1 }
 0x231   : > { %p1849_p13 = scmp.eq.s32.totalorder (!%p4067_p12), %s4876_s15, 0  ;;  %s4068_s10 = sadd.s32 (!%p4067_p12), 4294967295, %s5078_s19 }
 0x232   : > { %1831 = sbr.rel (%p4067_p12) target bundleno = 1077 (0x435), region = 56  ;;  %s4442_s1 = sshll.u32 (!%p4067_p12), %s4876_s15, 7 }
 0x233   : > { %s5577_s24 = scalar_lea.vmem (!%p4067_p12), [#allocation2], %s4442_s1  ;;  %p1852_p3 = scmp.eq.s32.totalorder (!%p4067_p12), %s4876_s15, 1 }
 0x234   : > { %s1853_s28 = sadd.s32 (!%p4067_p12), 8, %s5078_s19  ;;  %s6038_s8 = scalar_lea.vmem (!%p4067_p12), %s5080_s4, %s4442_s1 [#allocation11] }
 0x235   : > { %p4360_p5 = scmp.ne.s32.totalorder (!%p4067_p12), %s4876_s15, 0 }
 0x237   : > { %v4458_v0 = vld [vmem:[#allocation10 + $0x78] sm:$0xff]  ;;  %v4457_v61 = vld [vmem:[#allocation10 + $0x70] sm:$0xff]  ;;  %v4456_v42 = vld [vmem:[#allocation10 + $0x68] sm:$0xff]  ;;  %s6346_s10 = smov (%p1849_p13, %s4068_s10), 1  ;;  %vm2143_vm9 = vcmask 1040384   ;;  %vm2246_vm11 = vcmask 1047552  }
 0x238   : > { %4541 = vmatpush.bf16.msra.mxu1 %v4458_v0  ;;  %4542 = vmatpush.bf16.msra.mxu2 %v4458_v0  ;;  %v1832_v55 = vld [vmem:[#allocation3] sm:$0x1]  ;;  %v1834_v39 = vld [vmem:[#allocation3 + $0x1] sm:$0x1]  ;;  %v4455_v17 = vld [vmem:[#allocation10 + $0x60] sm:$0xff]  ;;  %s4069_s2 = sshll.u32 %s6346_s10, 4 }
 0x239   : > { %4543 = vmatpush.bf16.msra.mxu3 %v4458_v0  ;;  %2348 = vmatpush.bf16.msra.mxu0 %v4458_v0  ;;  %v1833_v36 = vmul.f32 0.00390625, %v1832_v55  ;;  %v1835_v28 = vmul.f32 0.00390625, %v1834_v39  ;;  %v4454_v24 = vld [vmem:[#allocation10 + $0x58] sm:$0xff]  ;;  %v4453_v21 = vld [vmem:[#allocation10 + $0x50] sm:$0xff]  ;;  %v4452_v32 = vld [vmem:[#allocation10 + $0x48] sm:$0xff]  ;;  %s1856_s26 = scalar_lea.vmem [#allocation2], %s4069_s2 }
 0x23a   : > { %v1863_v22 = vld [vmem:[%s5577_s24 + $0x10] sm:$0xff]  ;;  %v1864_v33 = vld [vmem:[%s5577_s24 + $0x18] sm:$0xff]  ;;  %v4451_v5 = vld [vmem:[#allocation10 + $0x40] sm:$0xff]  ;;  %vm2144_vm10 = vsmask.f32 256  ;;  %s6348_s28 = smov (%p1852_p3, %s1853_s28), 14 }
 0x23b   : > { %v1836_v34 = vmul.f32 %v1833_v36, %v1833_v36  ;;  %v5573_v18 = vperm.slane %v1833_v36, 0  ;;  %v1867_v20 = vld [vmem:[%s5577_s24 + $0x30] sm:$0xff]  ;;  %v1868_v43 = vld [vmem:[%s5577_s24 + $0x38] sm:$0xff]  ;;  %v1857_v9 = vld [vmem:[%s1856_s26] sm:$0xff]  ;;  %vm2247_vm12 = vsmask.f32 7424 }
 0x23c   : > { %4544 = vmatpush.bf16.msra.mxu1 %v4457_v61  ;;  %4545 = vmatpush.bf16.msra.mxu2 %v4457_v61  ;;  %v1871_v41 = vld [vmem:[%s5577_s24 + $0x50] sm:$0xff]  ;;  %v1872_v14 = vld [vmem:[%s5577_s24 + $0x58] sm:$0xff]  ;;  %v5585_v50 = vld [vmem:[%s1856_s26 + $0x8] sm:$0xff]  ;;  %s4071_s7 = sshll.u32 %s6348_s28, 4 }
 0x23d   : > { %4546 = vmatpush.bf16.msra.mxu3 %v4457_v61  ;;  %2349 = vmatpush.bf16.msra.mxu0 %v4457_v61  ;;  %v1837_v58 = vsub.f32 %v1835_v28, %v1836_v34  ;;  %v1886_v16 = vsub.f32 %v1863_v22, %v5573_v18  ;;  %v1887_v63 = vsub.f32 %v1864_v33, %v5573_v18  ;;  %v5596_v4 = vld [vmem:[%s5577_s24 + $0x20] sm:$0xff]  ;;  %v5599_v54 = vld [vmem:[%s5577_s24 + $0x28] sm:$0xff]  ;;  %v4465_v36 = vld [vmem:[#allocation10 + $0xb0] sm:$0xff]  ;;  %s1878_s19 = scalar_lea.vmem [#allocation2], %s4071_s7 }
 0x23e   : > { %v1890_v23 = vsub.f32 %v1867_v20, %v5573_v18  ;;  %v1891_v40 = vsub.f32 %v1868_v43, %v5573_v18  ;;  %v5604_v44 = vld [vmem:[%s5577_s24 + $0x40] sm:$0xff]  ;;  %v5607_v38 = vld [vmem:[%s5577_s24 + $0x48] sm:$0xff]  ;;  %v1894_v47 = vsub.f32 %v1871_v41, %v5573_v18  ;;  %v1895_v48 = vsub.f32 %v1872_v14, %v5573_v18  ;;  %v4449_v39 = vld [vmem:[#allocation10 + $0x30] sm:$0xff] }
 0x23f   : > { %v1838_v25 = vadd.f32 1e-05, %v1837_v58  ;;  %v5610_v46 = vld [vmem:[%s5577_s24 + $0x60] sm:$0xff]  ;;  %v1882_v30 = vsub.f32 %v1857_v9, %v5573_v18  ;;  %v5616_v19 = vld [vmem:[%s5577_s24 + $0x68] sm:$0xff]  ;;  %v1883_v31 = vsub.f32 %v5585_v50, %v5573_v18  ;;  %v1888_v49 = vsub.f32 %v5596_v4, %v5573_v18  ;;  %vm5768_vm13 = vmand %vm2143_vm9, %vm2144_vm10 }
 0x240   : > { %4547 = vmatpush.bf16.msra.mxu1 %v4456_v42  ;;  %4548 = vmatpush.bf16.msra.mxu2 %v4456_v42  ;;  %v5619_v62 = vld [vmem:[%s5577_s24] sm:$0xff]  ;;  %v5622_v45 = vld [vmem:[%s5577_s24 + $0x8] sm:$0xff]  ;;  %v1889_v26 = vsub.f32 %v5599_v54, %v5573_v18  ;;  %v1892_v15 = vsub.f32 %v5604_v44, %v5573_v18  ;;  %v1893_v6 = vsub.f32 %v5607_v38, %v5573_v18  ;;  %vm5772_vm14 = vmand %vm2246_vm11, %vm2247_vm12 }
 0x241   : > { %4549 = vmatpush.bf16.msra.mxu3 %v4456_v42  ;;  %2350 = vmatpush.bf16.msra.mxu0 %v4456_v42  ;;  %4688 = vrsqrt.f32 %v1838_v25  ;;  %vm1845_vm6 = vweird.f32 %v1838_v25  ;;  %v4466_v51 = vld [vmem:[#allocation10 + $0xb8] sm:$0xff]  ;;  %v1896_v56 = vsub.f32 %v5610_v46, %v5573_v18  ;;  %v1897_v13 = vsub.f32 %v5616_v19, %v5573_v18  ;;  %v4463_v4 = vld [vmem:[#allocation10 + $0xa0] sm:$0xff] }
 0x242   : > { %v4450_v7 = vld [vmem:[#allocation10 + $0x38] sm:$0xff]  ;;  %v1884_v11 = vsub.f32 %v5619_v62, %v5573_v18  ;;  %v1885_v57 = vsub.f32 %v5622_v45, %v5573_v18 }
 0x243   : > { %v4474_v53 = vld [vmem:[#allocation10 + $0xf8] sm:$0xff] }
 0x244   : > { %4550 = vmatpush.bf16.msra.mxu1 %v4455_v17  ;;  %4551 = vmatpush.bf16.msra.mxu2 %v4455_v17  ;;  %v4482_v27 = vld [vmem:[#allocation10 + $0x138] sm:$0xff] }
 0x245   : > { %4552 = vmatpush.bf16.msra.mxu3 %v4455_v17  ;;  %2351 = vmatpush.bf16.msra.mxu0 %v4455_v17  ;;  %v4481_v17 = vld [vmem:[#allocation10 + $0x130] sm:$0xff] }
 0x247   : > { %v4689_v1 = vpop.eup %4688 }
 0x248   : > { %4553 = vmatpush.bf16.msra.mxu1 %v4454_v24  ;;  %4554 = vmatpush.bf16.msra.mxu2 %v4454_v24  ;;  %v1840_v12 = vmul.f32 %v4689_v1, %v1838_v25  ;;  %vm1846_vm7 = vweird.f32 %v4689_v1  ;;  %v4473_v25 = vld [vmem:[#allocation10 + $0xf0] sm:$0xff] }
 0x249   : > { %4555 = vmatpush.bf16.msra.mxu3 %v4454_v24  ;;  %2352 = vmatpush.bf16.msra.mxu0 %v4454_v24  ;;  %vm5589_vm8 = vmor %vm1845_vm6, %vm1846_vm7 }
 0x24a   : > { %v1841_v52 = vmul.f32 %v4689_v1, %v1840_v12 }
 0x24c   : > { %4556 = vmatpush.bf16.msra.mxu1 %v4453_v21  ;;  %4557 = vmatpush.bf16.msra.mxu2 %v4453_v21  ;;  %v1842_v29 = vmul.f32 0.5, %v1841_v52 }
 0x24d   : > { %4558 = vmatpush.bf16.msra.mxu3 %v4453_v21  ;;  %2353 = vmatpush.bf16.msra.mxu0 %v4453_v21 }
 0x24e   : > { %v1843_v59 = vsub.f32 1.5, %v1842_v29 }
 0x250   : > { %4559 = vmatpush.bf16.msra.mxu1 %v4452_v32  ;;  %4560 = vmatpush.bf16.msra.mxu2 %v4452_v32  ;;  %v1844_v60 = vmul.f32 %v4689_v1, %v1843_v59  ;;  %v4448_v59 = vld [vmem:[#allocation10 + $0x28] sm:$0xff] }
 0x251   : > { %4561 = vmatpush.bf16.msra.mxu3 %v4452_v32  ;;  %2354 = vmatpush.bf16.msra.mxu0 %v4452_v32 }
 0x252   : > { %v1848_v37 = vsel %vm5589_vm8, %v4689_v1, %v1844_v60 }
 0x253   : > { %v5632_v8 = vperm.slane %v1848_v37, 0 }
 0x254   : > { %4562 = vmatpush.bf16.msra.mxu1 %v4451_v5  ;;  %4563 = vmatpush.bf16.msra.mxu2 %v4451_v5 }
 0x255   : > { %4564 = vmatpush.bf16.msra.mxu3 %v4451_v5  ;;  %2355 = vmatpush.bf16.msra.mxu0 %v4451_v5  ;;  %v1907_v10 = vmul.f32 %v5632_v8, %v1886_v16  ;;  %v1908_v3 = vmul.f32 %v5632_v8, %v1887_v63  ;;  %v1911_v2 = vmul.f32 %v5632_v8, %v1890_v23  ;;  %v4464_v5 = vld [vmem:[#allocation10 + $0xa8] sm:$0xff] }
 0x256   : > { %v1912_v0 = vmul.f32 %v5632_v8, %v1891_v40  ;;  %v1915_v61 = vmul.f32 %v5632_v8, %v1894_v47  ;;  %v1916_v55 = vmul.f32 %v5632_v8, %v1895_v48  ;;  %v1903_v58 = vmul.f32 %v5632_v8, %v1882_v30  ;;  %v4472_v16 = vld [vmem:[#allocation10 + $0xe8] sm:$0xff] }
 0x257   : > { %v1927_v28 = vmax.f32 %v1907_v10, 0.0  ;;  %v1928_v34 = vmax.f32 %v1908_v3, 0.0  ;;  %v1931_v42 = vmax.f32 %v1911_v2, 0.0  ;;  %v1904_v12 = vmul.f32 %v5632_v8, %v1883_v31  ;;  %v4480_v30 = vld [vmem:[#allocation10 + $0x128] sm:$0xff] }
 0x258   : > { %2559 = vmatpush.bf16.msrb.mxu2 %v4466_v51  ;;  %2445 = vmatpush.bf16.msrb.mxu1 %v4450_v7  ;;  %v1932_v24 = vmax.f32 %v1912_v0, 0.0  ;;  %v1935_v1 = vmax.f32 %v1915_v61, 0.0  ;;  %v1936_v21 = vmax.f32 %v1916_v55, 0.0  ;;  %v1923_v22 = vmax.f32 %v1903_v58, 0.0 }
 0x259   : > { %2689 = vmatpush.bf16.msrb.mxu3 %v4474_v53  ;;  %2820 = vmatpush.bf16.msrb.mxu0 %v4482_v27  ;;  %v1947_v52 = vpack.c.bf16 %v1927_v28, %v1927_v28  ;;  %v1948_v32 = vpack.c.bf16 %v1928_v34, %v1928_v34  ;;  %v1951_v29 = vpack.c.bf16 %v1931_v42, %v1931_v42  ;;  %v1924_v41 = vmax.f32 %v1904_v12, 0.0  ;;  %v4470_v28 = vld [vmem:[#allocation10 + $0xd8] sm:$0xff]  ;;  %v4445_v12 = vld [vmem:[#allocation10 + $0x10] sm:$0xff] }
 0x25a   : > { %v1952_v33 = vpack.c.bf16 %v1932_v24, %v1932_v24  ;;  %v1955_v20 = vpack.c.bf16 %v1935_v1, %v1935_v1  ;;  %v1956_v43 = vpack.c.bf16 %v1936_v21, %v1936_v21  ;;  %v1943_v35 = vpack.c.bf16 %v1923_v22, %v1923_v22  ;;  %v4461_v21 = vld [vmem:[#allocation10 + $0x90] sm:$0xff] }
 0x25b   : > { %v5654_v14 = vunpack.c.l.b16 %v1947_v52  ;;  %v5656_v9 = vunpack.c.l.b16 %v1948_v32  ;;  %v5658_v50 = vunpack.c.l.b16 %v1951_v29  ;;  %v1944_v40 = vpack.c.bf16 %v1924_v41, %v1924_v41  ;;  %v4469_v52 = vld [vmem:[#allocation10 + $0xd0] sm:$0xff] }
 0x25c   : > { %2560 = vmatpush.bf16.msrb.mxu2 %v4465_v36  ;;  %2446 = vmatpush.bf16.msrb.mxu1 %v4449_v39  ;;  %v5660_v63 = vunpack.c.l.b16 %v1952_v33  ;;  %v5662_v60 = vunpack.c.l.b16 %v1955_v20  ;;  %v5664_v23 = vunpack.c.l.b16 %v1956_v43  ;;  %v5670_v48 = vunpack.c.l.b16 %v1943_v35  ;;  %v4462_v36 = vld [vmem:[#allocation10 + $0x98] sm:$0xff]  ;;  %v4477_v20 = vld [vmem:[#allocation10 + $0x110] sm:$0xff]  ;;  %v4468_v35 = vld [vmem:[#allocation10 + $0xc8] sm:$0xff] }
 0x25d   : > { %2690 = vmatpush.bf16.msrb.mxu3 %v4473_v25  ;;  %2821 = vmatpush.bf16.msrb.mxu0 %v4481_v17  ;;  %v5668_v47 = vpack.c.b16 %v5656_v9, %v5654_v14  ;;  %v1909_v37 = vmul.f32 %v5632_v8, %v1888_v49  ;;  %v1910_v51 = vmul.f32 %v5632_v8, %v1889_v26  ;;  %v5688_v53 = vunpack.c.l.b16 %v1944_v40  ;;  %v4447_v49 = vld [vmem:[#allocation10 + $0x20] sm:$0xff]  ;;  %v4446_v39 = vld [vmem:[#allocation10 + $0x18] sm:$0xff] }
 0x25e   : > { %v5682_v7 = vpack.c.b16 %v5660_v63, %v5658_v50  ;;  %v5686_v31 = vpack.c.b16 %v5664_v23, %v5662_v60  ;;  %v1913_v54 = vmul.f32 %v5632_v8, %v1892_v15  ;;  %v4471_v26 = vld [vmem:[#allocation10 + $0xe0] sm:$0xff]  ;;  %v1914_v3 = vmul.f32 %v5632_v8, %v1893_v6  ;;  %v4478_v17 = vld [vmem:[#allocation10 + $0x118] sm:$0xff] }
 0x25f   : > { %2366 = vmatmul.bf16.vlgmr.msra.gmra.mxu1 %v5668_v47  ;;  %v1929_v27 = vmax.f32 %v1909_v37, 0.0  ;;  %v1930_v10 = vmax.f32 %v1910_v51, 0.0  ;;  %v1917_v2 = vmul.f32 %v5632_v8, %v1896_v56  ;;  %v5707_v44 = vpack.c.b16 %v5688_v53, %v5670_v48  ;;  %v4479_v6 = vld [vmem:[#allocation10 + $0x120] sm:$0xff]  ;;  %v4476_v37 = vld [vmem:[#allocation10 + $0x108] sm:$0xff] }
 0x260   : > { %2561 = vmatpush.bf16.msrb.mxu2 %v4464_v5  ;;  %2447 = vmatpush.bf16.msrb.mxu1 %v4448_v59  ;;  %v1933_v15 = vmax.f32 %v1913_v54, 0.0  ;;  %v1918_v38 = vmul.f32 %v5632_v8, %v1897_v13  ;;  %v1905_v46 = vmul.f32 %v5632_v8, %v1884_v11  ;;  %v1934_v56 = vmax.f32 %v1914_v3, 0.0  ;;  %v4460_v5 = vld [vmem:[#allocation10 + $0x88] sm:$0xff]  ;;  %v4467_v54 = vld [vmem:[#allocation10 + $0xc0] sm:$0xff] }
 0x261   : > { %2691 = vmatpush.bf16.msrb.mxu3 %v4472_v16  ;;  %2376 = vmatmul.bf16.vlgmr.msra.gmra.mxu2 %v5682_v7  ;;  %v1937_v0 = vmax.f32 %v1917_v2, 0.0  ;;  %v1949_v61 = vpack.c.bf16 %v1929_v27, %v1929_v27  ;;  %v1906_v19 = vmul.f32 %v5632_v8, %v1885_v57  ;;  %v1950_v62 = vpack.c.bf16 %v1930_v10, %v1930_v10  ;;  %v4506_v10 = vld [vmem:[#allocation10 + $0x1f8] sm:$0xff]  ;;  %v4443_v3 = vld [vmem:[#allocation10] sm:$0xff] }
 0x262   : > { %2386 = vmatmul.bf16.vlgmr.msra.gmra.mxu3 %v5686_v31  ;;  %2822 = vmatpush.bf16.msrb.mxu0 %v4480_v30  ;;  %v1938_v55 = vmax.f32 %v1918_v38, 0.0  ;;  %v1953_v13 = vpack.c.bf16 %v1933_v15, %v1933_v15  ;;  %v1954_v11 = vpack.c.bf16 %v1934_v56, %v1934_v56  ;;  %v1925_v58 = vmax.f32 %v1905_v46, 0.0  ;;  %v4444_v30 = vld [vmem:[#allocation10 + $0x8] sm:$0xff]  ;;  %v4475_v2 = vld [vmem:[#allocation10 + $0x100] sm:$0xff]  ;;  %v4490_v46 = vld [vmem:[#allocation10 + $0x178] sm:$0xff] }
 0x263   : > { %2356 = vmatmul.bf16.vlgmr.msra.gmra.mxu0 %v5707_v44  ;;  %v1957_v34 = vpack.c.bf16 %v1937_v0, %v1937_v0  ;;  %v1926_v25 = vmax.f32 %v1906_v19, 0.0  ;;  %v5722_v45 = vunpack.c.l.b16 %v1949_v61  ;;  %v5724_v57 = vunpack.c.l.b16 %v1950_v62  ;;  %v4497_v56 = vld [vmem:[#allocation10 + $0x1b0] sm:$0xff] }
 0x264   : > { %2562 = vmatpush.bf16.msrb.mxu2 %v4463_v4  ;;  %2448 = vmatpush.bf16.msrb.mxu1 %v4447_v49  ;;  %v1958_v42 = vpack.c.bf16 %v1938_v55, %v1938_v55  ;;  %v1945_v24 = vpack.c.bf16 %v1925_v58, %v1925_v58  ;;  %v5726_v32 = vunpack.c.l.b16 %v1953_v13  ;;  %v5728_v29 = vunpack.c.l.b16 %v1954_v11  ;;  %v4459_v4 = vld [vmem:[#allocation10 + $0x80] sm:$0xff]  ;;  %v4498_v49 = vld [vmem:[#allocation10 + $0x1b8] sm:$0xff]  ;;  %v4505_v55 = vld [vmem:[#allocation10 + $0x1f0] sm:$0xff] }
 0x265   : > { %2692 = vmatpush.bf16.msrb.mxu3 %v4471_v26  ;;  %v1946_v1 = vpack.c.bf16 %v1926_v25, %v1926_v25  ;;  %v5730_v22 = vunpack.c.l.b16 %v1957_v34  ;;  %v5740_v59 = vpack.c.b16 %v5724_v57, %v5722_v45  ;;  %v2064_v26 = vshrl.u32 %v5707_v44, 16  ;;  %v4489_v13 = vld [vmem:[#allocation10 + $0x170] sm:$0xff] }
 0x266   : > { %2823 = vmatpush.bf16.msrb.mxu0 %v4479_v6  ;;  %v5732_v33 = vunpack.c.l.b16 %v1958_v42  ;;  %v5734_v43 = vunpack.c.l.b16 %v1945_v24  ;;  %v5744_v16 = vpack.c.b16 %v5728_v29, %v5726_v32  ;;  %v2067_v27 = vshll.u32 %v5707_v44, 16  ;;  %v4514_v6 = vld [vmem:[#allocation10 + $0x238] sm:$0xff]  ;;  %v4513_v11 = vld [vmem:[#allocation10 + $0x230] sm:$0xff] }
 0x267   : > { %v5736_v41 = vunpack.c.l.b16 %v1946_v1  ;;  %v2186_v15 = vpack.c.b16 %v5688_v53, %v5688_v53  ;;  %v1983_v44 = vpack.c.b16 %v5670_v48, %v5670_v48  ;;  %v2066_v0 = vrot.slane %v2064_v26, 7 }
 0x268   : > { %2563 = vmatpush.bf16.msrb.mxu2 %v4462_v36  ;;  %2449 = vmatpush.bf16.msrb.mxu1 %v4446_v39  ;;  %v5748_v40 = vpack.c.b16 %v5732_v33, %v5730_v22  ;;  %v2156_v61 = vrot.slane %v2067_v27, 1  ;;  %v1984_v36 = vpack.c.b16 %v5734_v43, %v5734_v43 }
 0x269   : > { %2693 = vmatpush.bf16.msrb.mxu3 %v4470_v28  ;;  %v5752_v51 = vpack.c.b16 %v5736_v41, %v5734_v43  ;;  %v2197_v53 = vshll.u32 %v2186_v15, 16  ;;  %v1994_v48 = vshrl.u32 %v1983_v44, 16  ;;  %v2069_v39 = vor.u32 %v2067_v27, %v2066_v0  ;;  %v4504_v43 = vld [vmem:[#allocation10 + $0x1e8] sm:$0xff] }
 0x26a   : > { %2824 = vmatpush.bf16.msrb.mxu0 %v4478_v17  ;;  %v2157_v34 = vor.u32 %v2156_v61, %v2064_v26  ;;  %v1997_v58 = vshrl.u32 %v1984_v36, 16  ;;  %v2085_v15 = vshrl.u32 %v5740_v59, 16  ;;  %v1986_v0 = vpack.c.b16 %v5722_v45, %v5722_v45  ;;  %v4494_v45 = vld [vmem:[#allocation10 + $0x198] sm:$0xff] }
 0x26b   : > { %v2071_v38 = vshrl.u32 %v5752_v51, 16  ;;  %v2074_v62 = vshll.u32 %v5752_v51, 16  ;;  %v2199_v42 = vrot.slane %v2197_v53, 4  ;;  %v2146_v24 = vsel %vm5768_vm13, %v1994_v48, %v2069_v39  ;;  %v4502_v39 = vld [vmem:[#allocation10 + $0x1d8] sm:$0xff] }
 0x26c   : > { %2564 = vmatpush.bf16.msrb.mxu2 %v4461_v21  ;;  %2450 = vmatpush.bf16.msrb.mxu1 %v4445_v12  ;;  %v4496_v12 = vld [vmem:[#allocation10 + $0x1a8] sm:$0xff]  ;;  %v2087_v61 = vrot.slane %v2085_v15, 7  ;;  %v2003_v36 = vshrl.u32 %v1986_v0, 16  ;;  %v2092_v48 = vshrl.u32 %v5682_v7, 16 }
 0x26d   : > { %2694 = vmatpush.bf16.msrb.mxu3 %v4469_v52  ;;  %v2073_v19 = vrot.slane %v2071_v38, 7  ;;  %v2249_v1 = vsel %vm5772_vm14, %v2157_v34, %v2199_v42  ;;  %v2187_v52 = vpack.c.b16 %v5736_v41, %v5736_v41  ;;  %v4486_v34 = vld [vmem:[#allocation10 + $0x158] sm:$0xff]  ;;  %v4484_v0 = vld [vmem:[#allocation10 + $0x148] sm:$0xff] }
 0x26e   : > { %2825 = vmatpush.bf16.msrb.mxu0 %v4477_v20  ;;  %v2078_v20 = vshrl.u32 %v5668_v47, 16  ;;  %v4510_v42 = vld [vmem:[#allocation10 + $0x218] sm:$0xff] }
 0x26f   : > { %2371 = vmatmul.bf16.gmra.mxu1 %v5740_v59  ;;  %v2076_v25 = vor.u32 %v2074_v62, %v2073_v19 }
 0x270   : > { %2565 = vmatpush.bf16.msrb.mxu2 %v4460_v5  ;;  %2451 = vmatpush.bf16.msrb.mxu1 %v4444_v30  ;;  %v4488_v5 = vld [vmem:[#allocation10 + $0x168] sm:$0xff]  ;;  %v1985_v30 = vpack.c.b16 %v5654_v14, %v5654_v14  ;;  %v4495_v14 = vld [vmem:[#allocation10 + $0x1a0] sm:$0xff] }
 0x271   : > { %2695 = vmatpush.bf16.msrb.mxu3 %v4468_v35  ;;  %2381 = vmatmul.bf16.gmra.mxu2 %v5744_v16  ;;  %v2147_v21 = vsel %vm5768_vm13, %v1997_v58, %v2076_v25  ;;  %v4512_v35 = vld [vmem:[#allocation10 + $0x228] sm:$0xff] }
 0x272   : > { %2391 = vmatmul.bf16.gmra.mxu3 %v5748_v40  ;;  %2826 = vmatpush.bf16.msrb.mxu0 %v4476_v37  ;;  %v2158_v37 = vrot.slane %v2074_v62, 1  ;;  %v2000_v27 = vshrl.u32 %v1985_v30, 16  ;;  %v2099_v30 = vshrl.u32 %v5744_v16, 16 }
 0x273   : > { %2361 = vmatmul.bf16.gmra.mxu0 %v5752_v51 }
 0x274   : > { %2566 = vmatpush.bf16.msrb.mxu2 %v4459_v4  ;;  %2452 = vmatpush.bf16.msrb.mxu1 %v4443_v3  ;;  %v2201_v4 = vshll.u32 %v2187_v52, 16  ;;  %v2159_v41 = vor.u32 %v2158_v37, %v2071_v38  ;;  %v4503_v38 = vld [vmem:[#allocation10 + $0x1e0] sm:$0xff]  ;;  %v4501_v37 = vld [vmem:[#allocation10 + $0x1d0] sm:$0xff] }
 0x275   : > { %2696 = vmatpush.bf16.msrb.mxu3 %v4467_v54  ;;  %v2080_v54 = vrot.slane %v2078_v20, 7 }
 0x276   : > { %2827 = vmatpush.bf16.msrb.mxu0 %v4475_v2  ;;  %v2203_v26 = vrot.slane %v2201_v4, 4  ;;  %v2188_v2 = vpack.c.b16 %v5656_v9, %v5656_v9  ;;  %v4485_v4 = vld [vmem:[#allocation10 + $0x150] sm:$0xff] }
 0x278   : > { %3080 = vmatpush.bf16.msra.mxu2 %v4498_v49  ;;  %2950 = vmatpush.bf16.msra.mxu1 %v4490_v46  ;;  %v2081_v49 = vshll.u32 %v5668_v47, 16  ;;  %v4487_v46 = vld [vmem:[#allocation10 + $0x160] sm:$0xff]  ;;  %v2205_v44 = vshll.u32 %v2188_v2, 16 }
 0x279   : > { %3211 = vmatpush.bf16.msra.mxu3 %v4506_v10 }
 0x27a   : > { %3341 = vmatpush.bf16.msra.mxu0 %v4514_v6  ;;  %v2083_v10 = vor.u32 %v2081_v49, %v2080_v54  ;;  %v4511_v6 = vld [vmem:[#allocation10 + $0x220] sm:$0xff]  ;;  %v2207_v53 = vrot.slane %v2205_v44, 4  ;;  %v4509_v54 = vld [vmem:[#allocation10 + $0x210] sm:$0xff]  ;;  %v4500_v44 = vld [vmem:[#allocation10 + $0x1c8] sm:$0xff] }
 0x27c   : > { %3081 = vmatpush.bf16.msra.mxu2 %v4497_v56  ;;  %2951 = vmatpush.bf16.msra.mxu1 %v4489_v13  ;;  %v5795_v3 = vsel %vm5768_vm13, %v2000_v27, %v2083_v10  ;;  %v2160_v56 = vrot.slane %v2081_v49, 1  ;;  %v2101_v27 = vrot.slane %v2099_v30, 7  ;;  %v2102_v10 = vshll.u32 %v5744_v16, 16 }
 0x27d   : > { %3212 = vmatpush.bf16.msra.mxu3 %v4505_v55  ;;  %v2088_v55 = vshll.u32 %v5740_v59, 16 }
 0x27e   : > { %3342 = vmatpush.bf16.msra.mxu0 %v4513_v11  ;;  %v2161_v9 = vor.u32 %v2160_v56, %v2078_v20  ;;  %v2189_v11 = vpack.c.b16 %v5724_v57, %v5724_v57  ;;  %v2106_v56 = vshrl.u32 %v5686_v31, 16 }
 0x27f   : > { %2453 = vmatmul.bf16.vlgmr.msrb.gmra.mxu1 %v2146_v24  ;;  %v2090_v19 = vor.u32 %v2088_v55, %v2087_v61  ;;  %v2162_v58 = vrot.slane %v2088_v55, 1  ;;  %v1987_v24 = vpack.c.b16 %v5658_v50, %v5658_v50  ;;  %v4493_v50 = vld [vmem:[#allocation10 + $0x190] sm:$0xff]  ;;  %v2166_v61 = vrot.slane %v2102_v10, 1 }
 0x280   : > { %3082 = vmatpush.bf16.msra.mxu2 %v4496_v12  ;;  %2952 = vmatpush.bf16.msra.mxu1 %v4488_v5  ;;  %v5808_v62 = vsel %vm5772_vm14, %v2161_v9, %v2207_v53  ;;  %v2209_v25 = vshll.u32 %v2189_v11, 16  ;;  %v1989_v9 = vpack.c.b16 %v5662_v60, %v5662_v60  ;;  %v2108_v53 = vrot.slane %v2106_v56, 7 }
 0x281   : > { %2567 = vmatmul.bf16.vlgmr.msrb.gmra.mxu2 %v2249_v1  ;;  %3213 = vmatpush.bf16.msra.mxu3 %v4504_v43  ;;  %v5812_v13 = vsel %vm5768_vm13, %v2003_v36, %v2090_v19  ;;  %v2094_v1 = vrot.slane %v2092_v48, 7  ;;  %v2163_v57 = vor.u32 %v2162_v58, %v2085_v15  ;;  %v2006_v52 = vshrl.u32 %v1987_v24, 16  ;;  %v1875_v19 = vld [vmem:[%s5577_s24 + $0x70] sm:$0xff] }
 0x282   : > { %2697 = vmatmul.bf16.vlgmr.msrb.gmra.mxu3 %v2147_v21  ;;  %3343 = vmatpush.bf16.msra.mxu0 %v4512_v35  ;;  %v2211_v12 = vrot.slane %v2209_v25, 4  ;;  %v2190_v35 = vpack.c.b16 %v5660_v63, %v5660_v63  ;;  %v2104_v15 = vor.u32 %v2102_v10, %v2101_v27  ;;  %v2109_v36 = vshll.u32 %v5686_v31, 16 }
 0x283   : > { %2828 = vmatmul.bf16.vlgmr.msrb.gmra.mxu0 %v5752_v51  ;;  %v5791_v51 = vsel %vm5772_vm14, %v2159_v41, %v2203_v26  ;;  %v1988_v26 = vpack.c.b16 %v5726_v32, %v5726_v32  ;;  %v2191_v32 = vpack.c.b16 %v5728_v29, %v5728_v29  ;;  %v1876_v29 = vld [vmem:[%s5577_s24 + $0x78] sm:$0xff]  ;;  %v2167_v11 = vor.u32 %v2166_v61, %v2099_v30 }
 0x284   : > { %3083 = vmatpush.bf16.msra.mxu2 %v4495_v14  ;;  %2953 = vmatpush.bf16.msra.mxu1 %v4487_v46  ;;  %v5826_v43 = vsel %vm5772_vm14, %v2163_v57, %v2211_v12  ;;  %v2213_v41 = vshll.u32 %v2190_v35, 16  ;;  %v1899_v58 = vsub.f32 %v1876_v29, %v5573_v18  ;;  %v4491_v57 = vld [vmem:[#allocation10 + $0x180] sm:$0xff]  ;;  %v2113_v12 = vshrl.u32 %v5748_v40, 16 }
 0x285   : > { %3214 = vmatpush.bf16.msra.mxu3 %v4503_v38  ;;  %v2009_v2 = vshrl.u32 %v1988_v26, 16  ;;  %v2217_v55 = vshll.u32 %v2191_v32, 16  ;;  %v4483_v35 = vld [vmem:[#allocation10 + $0x140] sm:$0xff]  ;;  %v2168_v30 = vrot.slane %v2109_v36, 1 }
 0x286   : > { %3344 = vmatpush.bf16.msra.mxu0 %v4511_v6  ;;  %v2215_v14 = vrot.slane %v2213_v41, 4  ;;  %v4492_v6 = vld [vmem:[#allocation10 + $0x188] sm:$0xff]  ;;  %v4507_v26 = vld [vmem:[#allocation10 + $0x200] sm:$0xff] }
 0x287   : > { %v5848_v46 = vsel %vm5768_vm13, %v2009_v2, %v2104_v15  ;;  %v2169_v27 = vor.u32 %v2168_v30, %v2106_v56 }
 0x288   : > { %3084 = vmatpush.bf16.msra.mxu2 %v4494_v45  ;;  %2954 = vmatpush.bf16.msra.mxu1 %v4486_v34  ;;  %v4508_v45 = vld [vmem:[#allocation10 + $0x208] sm:$0xff]  ;;  %v2111_v34 = vor.u32 %v2109_v36, %v2108_v53 }
 0x289   : > { %3215 = vmatpush.bf16.msra.mxu3 %v4502_v39  ;;  %v2012_v39 = vshrl.u32 %v1989_v9, 16 }
 0x28a   : > { %3345 = vmatpush.bf16.msra.mxu0 %v4510_v42  ;;  %v1898_v42 = vsub.f32 %v1875_v19, %v5573_v18 }
 0x28b   : > { %v5870_v60 = vsel %vm5768_vm13, %v2012_v39, %v2111_v34 }
 0x28c   : > { %3085 = vmatpush.bf16.msra.mxu2 %v4493_v50  ;;  %2955 = vmatpush.bf16.msra.mxu1 %v4485_v4  ;;  %v1919_v24 = vmul.f32 %v5632_v8, %v1898_v42  ;;  %v4499_v50 = vld [vmem:[#allocation10 + $0x1c0] sm:$0xff]  ;;  %v1990_v4 = vpack.c.b16 %v5730_v22, %v5730_v22 }
 0x28d   : > { %3216 = vmatpush.bf16.msra.mxu3 %v4501_v37 }
 0x28e   : > { %3346 = vmatpush.bf16.msra.mxu0 %v4509_v54  ;;  %v2115_v54 = vrot.slane %v2113_v12, 7 }
 0x28f   : > { %2458 = vmatmul.bf16.gmra.mxu1 %v2147_v21  ;;  %v2095_v21 = vshll.u32 %v5682_v7, 16 }
 0x290   : > { %3086 = vmatpush.bf16.msra.mxu2 %v4492_v6  ;;  %2956 = vmatpush.bf16.msra.mxu1 %v4484_v0  ;;  %v2193_v0 = vpack.c.b16 %v5732_v33, %v5732_v33 }
 0x291   : > { %2572 = vmatmul.bf16.gmra.mxu2 %v5791_v51  ;;  %v2097_v20 = vor.u32 %v2095_v21, %v2094_v1  ;;  %v2164_v49 = vrot.slane %v2095_v21, 1  ;;  %3217 = vmatpush.bf16.msra.mxu3 %v4500_v44  ;;  %v1920_v1 = vmul.f32 %v5632_v8, %v1899_v58  ;;  %v2192_v21 = vpack.c.b16 %v5664_v23, %v5664_v23 }
 0x292   : > { %2702 = vmatmul.bf16.gmra.mxu3 %v5795_v3  ;;  %3347 = vmatpush.bf16.msra.mxu0 %v4508_v45  ;;  %v2225_v19 = vshll.u32 %v2193_v0, 16 }
 0x293   : > { %2833 = vmatmul.bf16.gmra.mxu0 %v5668_v47  ;;  %v5830_v5 = vsel %vm5768_vm13, %v2006_v52, %v2097_v20  ;;  %v2165_v63 = vor.u32 %v2164_v49, %v2092_v48  ;;  %v2219_v48 = vrot.slane %v2217_v55, 4  ;;  %v1939_v52 = vmax.f32 %v1919_v24, 0.0 }
 0x294   : > { %v1940_v20 = vmax.f32 %v1920_v1, 0.0  ;;  %3087 = vmatpush.bf16.msra.mxu2 %v4491_v57  ;;  %v2221_v37 = vshll.u32 %v2192_v21, 16  ;;  %v2116_v49 = vshll.u32 %v5748_v40, 16  ;;  %2957 = vmatpush.bf16.msra.mxu1 %v4483_v35  ;;  %v2227_v39 = vrot.slane %v2225_v19, 4 }
 0x295   : > { %v5844_v38 = vsel %vm5772_vm14, %v2165_v63, %v2215_v14  ;;  %v5866_v25 = vsel %vm5772_vm14, %v2167_v11, %v2219_v48  ;;  %3218 = vmatpush.bf16.msra.mxu3 %v4499_v50  ;;  %v1959_v23 = vpack.c.bf16 %v1939_v52, %v1939_v52  ;;  %v2015_v63 = vshrl.u32 %v1990_v4, 16 }
 0x296   : > { %v1960_v41 = vpack.c.bf16 %v1940_v20, %v1940_v20  ;;  %v2223_v10 = vrot.slane %v2221_v37, 4  ;;  %v2118_v14 = vor.u32 %v2116_v49, %v2115_v54  ;;  %3348 = vmatpush.bf16.msra.mxu0 %v4507_v26  ;;  %v2170_v36 = vrot.slane %v2116_v49, 1 }
 0x297   : > { %v1981_v2 = vunpack.c.l.b16 %v1959_v23 }
 0x298   : > { %v5884_v15 = vunpack.c.l.b16 %v1960_v41  ;;  %v5890_v22 = vsel %vm5772_vm14, %v2169_v27, %v2223_v10  ;;  %v5894_v6 = vsel %vm5768_vm13, %v2015_v63, %v2118_v14  ;;  %v2171_v33 = vor.u32 %v2170_v36, %v2113_v12 }
 0x299   : > { %v1991_v29 = vpack.c.b16 %v1981_v2, %v1981_v2 }
 0x29a   : > { %v5897_v44 = vpack.c.b16 %v5884_v15, %v1981_v2  ;;  %v5925_v21 = vsel %vm5772_vm14, %v2171_v33, %v2227_v39 }
 0x29b   : > { %v2018_v34 = vshrl.u32 %v1991_v29, 16 }
 0x29c   : > { %v2120_v61 = vshrl.u32 %v5897_v44, 16  ;;  %v2123_v11 = vshll.u32 %v5897_v44, 16 }
 0x29e   : > { %v2122_v45 = vrot.slane %v2120_v61, 7 }
 0x29f   : > { %2463 = vmatmul.bf16.gmra.mxu1 %v5795_v3 }
 0x2a0   : > { %v2125_v42 = vor.u32 %v2123_v11, %v2122_v45 }
 0x2a1   : > { %2577 = vmatmul.bf16.gmra.mxu2 %v5808_v62 }
 0x2a2   : > { %2707 = vmatmul.bf16.gmra.mxu3 %v5812_v13  ;;  %v5929_v57 = vsel %vm5768_vm13, %v2018_v34, %v2125_v42 }
 0x2a3   : > { %2838 = vmatmul.bf16.gmra.mxu0 %v5740_v59 }
 0x2af   : > { %2468 = vmatmul.bf16.gmra.mxu1 %v5812_v13 }
 0x2b1   : > { %2582 = vmatmul.bf16.gmra.mxu2 %v5826_v43 }
 0x2b2   : > { %2712 = vmatmul.bf16.gmra.mxu3 %v5830_v5 }
 0x2b3   : > { %2843 = vmatmul.bf16.gmra.mxu0 %v5682_v7 }
 0x2bf   : > { %2473 = vmatmul.bf16.gmra.mxu1 %v5830_v5 }
 0x2c1   : > { %2587 = vmatmul.bf16.gmra.mxu2 %v5844_v38 }
 0x2c2   : > { %2717 = vmatmul.bf16.gmra.mxu3 %v5848_v46 }
 0x2c3   : > { %2848 = vmatmul.bf16.gmra.mxu0 %v5744_v16 }
 0x2cf   : > { %2478 = vmatmul.bf16.gmra.mxu1 %v5848_v46 }
 0x2d1   : > { %2592 = vmatmul.bf16.gmra.mxu2 %v5866_v25 }
 0x2d2   : > { %2722 = vmatmul.bf16.gmra.mxu3 %v5870_v60 }
 0x2d3   : > { %2853 = vmatmul.bf16.gmra.mxu0 %v5686_v31 }
 0x2dc   : > { %v5886_v32 = vpop.f32.mrf.mxu1 }
 0x2df   : > { %2483 = vmatmul.bf16.gmra.mxu1 %v5870_v60 }
 0x2e0   : > { %v2357_v56 = vpop.f32.mrf.mxu0 }
 0x2e1   : > { %2597 = vmatmul.bf16.gmra.mxu2 %v5890_v22 }
 0x2e2   : > { %2727 = vmatmul.bf16.gmra.mxu3 %v5894_v6 }
 0x2e3   : > { %2858 = vmatmul.bf16.gmra.mxu0 %v5748_v40 }
 0x2e4   : > { %v5906_v55 = vpop.f32.mrf.mxu2  ;;  %v5910_v53 = vpop.f32.mrf.mxu1 }
 0x2e5   : > { %v5908_v9 = vpop.f32.mrf.mxu3 }
 0x2e8   : > { %v2359_v48 = vpop.f32.mrf.mxu0 }
 0x2ec   : > { %v5917_v58 = vpop.f32.mrf.mxu2  ;;  %v5921_v1 = vpop.f32.mrf.mxu1 }
 0x2ed   : > { %v5919_v24 = vpop.f32.mrf.mxu3 }
 0x2ef   : > { %2488 = vmatmul.bf16.gmra.mxu1 %v5894_v6 }
 0x2f0   : > { %v2362_v12 = vpop.f32.mrf.mxu0 }
 0x2f1   : > { %2602 = vmatmul.bf16.gmra.mxu2 %v5925_v21 }
 0x2f2   : > { %2732 = vmatmul.bf16.gmra.mxu3 %v5929_v57 }
 0x2f3   : > { %2863 = vmatmul.bf16.gmra.mxu0 %v5897_v44 }
 0x2f4   : > { %v5935_v52 = vpop.f32.mrf.mxu2  ;;  %v5939_v50 = vpop.f32.mrf.mxu1 }
 0x2f5   : > { %v5937_v20 = vpop.f32.mrf.mxu3 }
 0x2f8   : > { %v2364_v35 = vpop.f32.mrf.mxu0 }
 0x2fc   : > { %v5941_v30 = vpop.f32.mrf.mxu2  ;;  %v2454_v4 = vpop.f32.mrf.mxu1 }
 0x2fd   : > { %v5943_v37 = vpop.f32.mrf.mxu3  ;;  %v2455_v54 = vadd.f32 %v2454_v4, %v2357_v56 }
 0x2ff   : > { %2958 = vmatmul.bf16.vlgmr.msra.gmra.mxu1 %v5791_v51 }
 0x300   : > { %v2829_v49 = vpop.f32.mrf.mxu0 }
 0x301   : > { %3088 = vmatmul.bf16.vlgmr.msra.gmra.mxu2 %v5795_v3 }
 0x302   : > { %3219 = vmatmul.bf16.vlgmr.msra.gmra.mxu3 %v5668_v47 }
 0x303   : > { %3349 = vmatmul.bf16.vlgmr.msra.gmra.mxu0 %v5808_v62 }
 0x304   : > { %v2568_v23 = vpop.f32.mrf.mxu2  ;;  %v2456_v27 = vpop.f32.mrf.mxu1 }
 0x305   : > { %v2698_v41 = vpop.f32.mrf.mxu3  ;;  %v2608_v26 = vadd.f32 %v2568_v23, %v2455_v54  ;;  %v2457_v10 = vadd.f32 %v2456_v27, %v2359_v48 }
 0x307   : > { %v2738_v63 = vadd.f32 %v2698_v41, %v2608_v26 }
 0x308   : > { %v2831_v14 = vpop.f32.mrf.mxu0 }
 0x309   : > { %v5949_v2 = vadd.f32 %v2829_v49, %v2738_v63 }
 0x30c   : > { %v2570_v0 = vpop.f32.mrf.mxu2  ;;  %v2459_v19 = vpop.f32.mrf.mxu1 }
 0x30d   : > { %v2700_v56 = vpop.f32.mrf.mxu3  ;;  %v2609_v36 = vadd.f32 %v2570_v0, %v2457_v10  ;;  %v2460_v51 = vadd.f32 %v2459_v19, %v2362_v12 }
 0x30f   : > { %v2739_v29 = vadd.f32 %v2700_v56, %v2609_v36  ;;  %2963 = vmatmul.bf16.gmra.mxu1 %v5808_v62 }
 0x310   : > { %v2834_v3 = vpop.f32.mrf.mxu0 }
 0x311   : > { %3093 = vmatmul.bf16.gmra.mxu2 %v5812_v13  ;;  %v5954_v47 = vadd.f32 %v2831_v14, %v2739_v29 }
 0x312   : > { %3224 = vmatmul.bf16.gmra.mxu3 %v5740_v59 }
 0x313   : > { %3354 = vmatmul.bf16.gmra.mxu0 %v5826_v43 }
 0x314   : > { %v2573_v45 = vpop.f32.mrf.mxu2  ;;  %v2461_v39 = vpop.f32.mrf.mxu1 }
 0x315   : > { %v2703_v48 = vpop.f32.mrf.mxu3  ;;  %v2610_v33 = vadd.f32 %v2573_v45, %v2460_v51  ;;  %v2462_v34 = vadd.f32 %v2461_v39, %v2364_v35 }
 0x317   : > { %v2740_v42 = vadd.f32 %v2703_v48, %v2610_v33 }
 0x318   : > { %v2836_v4 = vpop.f32.mrf.mxu0 }
 0x319   : > { %v5957_v12 = vadd.f32 %v2834_v3, %v2740_v42 }
 0x31c   : > { %v2575_v54 = vpop.f32.mrf.mxu2  ;;  %v2464_v23 = vpop.f32.mrf.mxu1 }
 0x31d   : > { %v2705_v49 = vpop.f32.mrf.mxu3  ;;  %v2611_v62 = vadd.f32 %v2575_v54, %v2462_v34  ;;  %v2465_v13 = vadd.f32 %v2464_v23, %v5886_v32 }
 0x31f   : > { %v2741_v59 = vadd.f32 %v2705_v49, %v2611_v62  ;;  %2968 = vmatmul.bf16.gmra.mxu1 %v5826_v43 }
 0x320   : > { %v2839_v41 = vpop.f32.mrf.mxu0 }
 0x321   : > { %3098 = vmatmul.bf16.gmra.mxu2 %v5830_v5  ;;  %v5963_v26 = vadd.f32 %v2836_v4, %v2741_v59 }
 0x322   : > { %3229 = vmatmul.bf16.gmra.mxu3 %v5682_v7 }
 0x323   : > { %3359 = vmatmul.bf16.gmra.mxu0 %v5844_v38 }
 0x324   : > { %v2578_v35 = vpop.f32.mrf.mxu2  ;;  %v2466_v63 = vpop.f32.mrf.mxu1 }
 0x325   : > { %v2708_v27 = vpop.f32.mrf.mxu3  ;;  %v2612_v10 = vadd.f32 %v2578_v35, %v2465_v13  ;;  %v2467_v14 = vadd.f32 %v2466_v63, %v5910_v53 }
 0x327   : > { %v2742_v0 = vadd.f32 %v2708_v27, %v2612_v10  ;;  %v1879_v27 = vld [vmem:[%s1878_s19] sm:$0xff]  ;;  %v1880_v10 = vld [vmem:[%s1878_s19 + $0x8] sm:$0xff] }
 0x328   : > { %v2841_v32 = vpop.f32.mrf.mxu0 }
 0x329   : > { %v5967_v56 = vadd.f32 %v2839_v41, %v2742_v0 }
 0x32c   : > { %v2580_v36 = vpop.f32.mrf.mxu2  ;;  %v2469_v5 = vpop.f32.mrf.mxu1 }
 0x32d   : > { %v2710_v43 = vpop.f32.mrf.mxu3  ;;  %v2613_v19 = vadd.f32 %v2580_v36, %v2467_v14  ;;  %v2470_v7 = vadd.f32 %v2469_v5, %v5921_v1 }
 0x32f   : > { %v2743_v51 = vadd.f32 %v2710_v43, %v2613_v19  ;;  %2973 = vmatmul.bf16.gmra.mxu1 %v5844_v38 }
 0x330   : > { %v2844_v29 = vpop.f32.mrf.mxu0 }
 0x331   : > { %3103 = vmatmul.bf16.gmra.mxu2 %v5848_v46  ;;  %v5973_v53 = vadd.f32 %v2841_v32, %v2743_v51 }
 0x332   : > { %3234 = vmatmul.bf16.gmra.mxu3 %v5744_v16 }
 0x333   : > { %3364 = vmatmul.bf16.gmra.mxu0 %v5866_v25 }
 0x334   : > { %v2583_v3 = vpop.f32.mrf.mxu2  ;;  %v2471_v33 = vpop.f32.mrf.mxu1 }
 0x335   : > { %v2713_v45 = vpop.f32.mrf.mxu3  ;;  %v2614_v48 = vadd.f32 %v2583_v3, %v2470_v7  ;;  %v2472_v39 = vadd.f32 %v2471_v33, %v5939_v50 }
 0x337   : > { %v2744_v1 = vadd.f32 %v2713_v45, %v2614_v48 }
 0x338   : > { %v2846_v34 = vpop.f32.mrf.mxu0 }
 0x339   : > { %v5978_v42 = vadd.f32 %v2844_v29, %v2744_v1 }
 0x33c   : > { %v2585_v38 = vpop.f32.mrf.mxu2  ;;  %v2474_v16 = vpop.f32.mrf.mxu1 }
 0x33d   : > { %v2715_v46 = vpop.f32.mrf.mxu3  ;;  %v2615_v4 = vadd.f32 %v2585_v38, %v2472_v39  ;;  %v2475_v62 = vadd.f32 %v2474_v16, %v5906_v55 }
 0x33f   : > { %v2745_v54 = vadd.f32 %v2715_v46, %v2615_v4  ;;  %2978 = vmatmul.bf16.gmra.mxu1 %v5866_v25 }
 0x340   : > { %v2849_v49 = vpop.f32.mrf.mxu0 }
 0x341   : > { %3108 = vmatmul.bf16.gmra.mxu2 %v5870_v60  ;;  %v5984_v50 = vadd.f32 %v2846_v34, %v2745_v54  ;;  %v1901_v60 = vsub.f32 %v1880_v10, %v5573_v18 }
 0x342   : > { %3239 = vmatmul.bf16.gmra.mxu3 %v5686_v31  ;;  %v1900_v31 = vsub.f32 %v1879_v27, %v5573_v18 }
 0x343   : > { %3369 = vmatmul.bf16.gmra.mxu0 %v5890_v22  ;;  %v1922_v19 = vmul.f32 %v5632_v8, %v1901_v60 }
 0x344   : > { %v2588_v23 = vpop.f32.mrf.mxu2  ;;  %v2476_v41 = vpop.f32.mrf.mxu1  ;;  %v1921_v43 = vmul.f32 %v5632_v8, %v1900_v31  ;;  %v2194_v8 = vpack.c.b16 %v5884_v15, %v5884_v15 }
 0x345   : > { %v2718_v13 = vpop.f32.mrf.mxu3  ;;  %v2616_v59 = vadd.f32 %v2588_v23, %v2475_v62  ;;  %v2477_v14 = vadd.f32 %v2476_v41, %v5917_v58  ;;  %v1942_v58 = vmax.f32 %v1922_v19, 0.0 }
 0x346   : > { %v1941_v18 = vmax.f32 %v1921_v43, 0.0  ;;  %v2229_v34 = vshll.u32 %v2194_v8, 16 }
 0x347   : > { %v2746_v35 = vadd.f32 %v2718_v13, %v2616_v59  ;;  %v1962_v39 = vpack.c.bf16 %v1942_v58, %v1942_v58 }
 0x348   : > { %v2851_v25 = vpop.f32.mrf.mxu0 }
 0x349   : > { %v5988_v63 = vadd.f32 %v2849_v49, %v2746_v35  ;;  %v2052_v46 = vunpack.c.l.b16 %v1962_v39  ;;  %v2231_v49 = vrot.slane %v2229_v34, 4 }
 0x34b   : > { %v2195_v31 = vpack.c.b16 %v2052_v46, %v2052_v46 }
 0x34c   : > { %v2590_v55 = vpop.f32.mrf.mxu2  ;;  %v2479_v36 = vpop.f32.mrf.mxu1 }
 0x34d   : > { %v2720_v0 = vpop.f32.mrf.mxu3  ;;  %v2617_v32 = vadd.f32 %v2590_v55, %v2477_v14  ;;  %v2480_v29 = vadd.f32 %v2479_v36, %v5935_v52 }
 0x34f   : > { %v2747_v5 = vadd.f32 %v2720_v0, %v2617_v32  ;;  %2983 = vmatmul.bf16.gmra.mxu1 %v5890_v22  ;;  %v1961_v22 = vpack.c.bf16 %v1941_v18, %v1941_v18 }
 0x350   : > { %v2854_v7 = vpop.f32.mrf.mxu0 }
 0x351   : > { %3113 = vmatmul.bf16.gmra.mxu2 %v5894_v6  ;;  %v5998_v51 = vadd.f32 %v2851_v25, %v2747_v5  ;;  %v1982_v52 = vunpack.c.l.b16 %v1961_v22 }
 0x352   : > { %3244 = vmatmul.bf16.gmra.mxu3 %v5748_v40  ;;  %v2172_v40 = vrot.slane %v2123_v11, 1 }
 0x353   : > { %3374 = vmatmul.bf16.gmra.mxu0 %v5925_v21  ;;  %v2062_v13 = vpack.c.b16 %v2052_v46, %v1982_v52 }
 0x354   : > { %v2593_v3 = vpop.f32.mrf.mxu2  ;;  %v2481_v33 = vpop.f32.mrf.mxu1  ;;  %v2173_v15 = vor.u32 %v2172_v40, %v2120_v61 }
 0x355   : > { %v2723_v45 = vpop.f32.mrf.mxu3  ;;  %v2618_v48 = vadd.f32 %v2593_v3, %v2480_v29  ;;  %v2482_v4 = vadd.f32 %v2481_v33, %v5941_v30  ;;  %v2127_v35 = vshrl.u32 %v2062_v13, 16  ;;  %v2130_v25 = vshll.u32 %v2062_v13, 16 }
 0x356   : > { %v2257_v11 = vsel %vm5772_vm14, %v2173_v15, %v2231_v49 }
 0x357   : > { %v2748_v6 = vadd.f32 %v2723_v45, %v2618_v48  ;;  %v2129_v55 = vrot.slane %v2127_v35, 7  ;;  %v2174_v36 = vrot.slane %v2130_v25, 1 }
 0x358   : > { %v2856_v1 = vpop.f32.mrf.mxu0 }
 0x359   : > { %v6006_v38 = vadd.f32 %v2854_v7, %v2748_v6  ;;  %v2132_v19 = vor.u32 %v2130_v25, %v2129_v55  ;;  %v2175_v18 = vor.u32 %v2174_v36, %v2127_v35 }
 0x35c   : > { %v2595_v16 = vpop.f32.mrf.mxu2  ;;  %v2484_v23 = vpop.f32.mrf.mxu1 }
 0x35d   : > { %v2725_v54 = vpop.f32.mrf.mxu3  ;;  %v2619_v62 = vadd.f32 %v2595_v16, %v2482_v4  ;;  %v2485_v61 = vadd.f32 %v2484_v23, %v5908_v9 }
 0x35f   : > { %v2749_v59 = vadd.f32 %v2725_v54, %v2619_v62  ;;  %2988 = vmatmul.bf16.gmra.mxu1 %v5925_v21  ;;  %v1992_v21 = vpack.c.b16 %v1982_v52, %v1982_v52 }
 0x360   : > { %v2859_v41 = vpop.f32.mrf.mxu0 }
 0x361   : > { %3118 = vmatmul.bf16.gmra.mxu2 %v5929_v57  ;;  %v6016_v30 = vadd.f32 %v2856_v1, %v2749_v59  ;;  %v2233_v57 = vshll.u32 %v2195_v31, 16 }
 0x362   : > { %3249 = vmatmul.bf16.gmra.mxu3 %v5897_v44  ;;  %v2021_v44 = vshrl.u32 %v1992_v21, 16 }
 0x363   : > { %3379 = vmatmul.bf16.gmra.mxu0 %v2257_v11  ;;  %v2235_v58 = vrot.slane %v2233_v57, 4 }
 0x364   : > { %v2598_v27 = vpop.f32.mrf.mxu2  ;;  %v2486_v14 = vpop.f32.mrf.mxu1  ;;  %v2155_v45 = vsel %vm5768_vm13, %v2021_v44, %v2132_v19 }
 0x365   : > { %v2728_v10 = vpop.f32.mrf.mxu3  ;;  %v2620_v60 = vadd.f32 %v2598_v27, %v2485_v61  ;;  %v2487_v5 = vadd.f32 %v2486_v14, %v5919_v24  ;;  %v2258_v33 = vsel %vm5772_vm14, %v2175_v18, %v2235_v58 }
 0x367   : > { %v2750_v0 = vadd.f32 %v2728_v10, %v2620_v60 }
 0x368   : > { %v2861_v32 = vpop.f32.mrf.mxu0 }
 0x369   : > { %v6019_v43 = vadd.f32 %v2859_v41, %v2750_v0 }
 0x36c   : > { %v2600_v9 = vpop.f32.mrf.mxu2  ;;  %v2489_v3 = vpop.f32.mrf.mxu1 }
 0x36d   : > { %v2730_v7 = vpop.f32.mrf.mxu3  ;;  %v2621_v29 = vadd.f32 %v2600_v9, %v2487_v5  ;;  %v2490_v24 = vadd.f32 %v2489_v3, %v5937_v20 }
 0x36f   : > { %v2751_v8 = vadd.f32 %v2730_v7, %v2621_v29  ;;  %2993 = vmatmul.bf16.gmra.mxu1 %v2257_v11 }
 0x370   : > { %v2864_v48 = vpop.f32.mrf.mxu0 }
 0x371   : > { %3123 = vmatmul.bf16.gmra.mxu2 %v2155_v45  ;;  %v6026_v22 = vadd.f32 %v2861_v32, %v2751_v8 }
 0x372   : > { %3254 = vmatmul.bf16.gmra.mxu3 %v2062_v13 }
 0x373   : > { %3384 = vmatmul.bf16.gmra.mxu0 %v2258_v33 }
 0x374   : > { %v2603_v39 = vpop.f32.mrf.mxu2  ;;  %v2491_v40 = vpop.f32.mrf.mxu1 }
 0x375   : > { %v2733_v6 = vpop.f32.mrf.mxu3  ;;  %v2622_v1 = vadd.f32 %v2603_v39, %v2490_v24  ;;  %v2492_v17 = vadd.f32 %v2491_v40, %v5943_v37 }
 0x377   : > { %v2752_v34 = vadd.f32 %v2733_v6, %v2622_v1 }
 0x378   : > { %v2866_v28 = vpop.f32.mrf.mxu0 }
 0x379   : > { %v6029_v52 = vadd.f32 %v2864_v48, %v2752_v34 }
 0x37c   : > { %v2605_v46 = vpop.f32.mrf.mxu2  ;;  %v2959_v54 = vpop.f32.mrf.mxu1 }
 0x37d   : > { %v2735_v4 = vpop.f32.mrf.mxu3  ;;  %v2623_v16 = vadd.f32 %v2605_v46, %v2492_v17  ;;  %v2999_v62 = vadd.f32 %v2959_v54, %v5949_v2 }
 0x37f   : > { %v2753_v15 = vadd.f32 %v2735_v4, %v2623_v16 }
 0x380   : > { %v3350_v49 = vpop.f32.mrf.mxu0 }
 0x381   : > { %v6032_v20 = vadd.f32 %v2866_v28, %v2753_v15 }
 0x384   : > { %v3089_v23 = vpop.f32.mrf.mxu2  ;;  %v2961_v41 = vpop.f32.mrf.mxu1 }
 0x385   : > { %v3220_v13 = vpop.f32.mrf.mxu3  ;;  %v3129_v59 = vadd.f32 %v3089_v23, %v2999_v62  ;;  %v3000_v61 = vadd.f32 %v2961_v41, %v5954_v47 }
 0x387   : > { %v3260_v11 = vadd.f32 %v3220_v13, %v3129_v59 }
 0x388   : > { %v3352_v37 = vpop.f32.mrf.mxu0 }
 0x389   : > { %v6040_v35 = vadd.f32 %v3350_v49, %v3260_v11 }
 0x38b   : > { %3407 = vst [vmem:[%s6038_s8] sm:$0xff] %v6040_v35 }
 0x38c   : > { %v3091_v27 = vpop.f32.mrf.mxu2  ;;  %v2964_v25 = vpop.f32.mrf.mxu1 }
 0x38d   : > { %v3222_v2 = vpop.f32.mrf.mxu3  ;;  %v3130_v10 = vadd.f32 %v3091_v27, %v3000_v61  ;;  %v3001_v21 = vadd.f32 %v2964_v25, %v5957_v12 }
 0x38f   : > { %v3261_v31 = vadd.f32 %v3222_v2, %v3130_v10 }
 0x390   : > { %v3355_v60 = vpop.f32.mrf.mxu0 }
 0x391   : > { %v6045_v14 = vadd.f32 %v3352_v37, %v3261_v31 }
 0x393   : > { %3408 = vst [vmem:[%s6038_s8 + $0x8] sm:$0xff] %v6045_v14 }
 0x394   : > { %v3094_v55 = vpop.f32.mrf.mxu2  ;;  %v2966_v36 = vpop.f32.mrf.mxu1 }
 0x395   : > { %v3225_v0 = vpop.f32.mrf.mxu3  ;;  %v3131_v32 = vadd.f32 %v3094_v55, %v3001_v21  ;;  %v3002_v19 = vadd.f32 %v2966_v36, %v5963_v26 }
 0x397   : > { %v3262_v57 = vadd.f32 %v3225_v0, %v3131_v32 }
 0x398   : > { %v3357_v47 = vpop.f32.mrf.mxu0 }
 0x399   : > { %v6050_v44 = vadd.f32 %v3355_v60, %v3262_v57 }
 0x39b   : > { %3409 = vst [vmem:[%s6038_s8 + $0x10] sm:$0xff] %v6050_v44 }
 0x39c   : > { %v3096_v5 = vpop.f32.mrf.mxu2  ;;  %v2969_v18 = vpop.f32.mrf.mxu1 }
 0x39d   : > { %v3227_v9 = vpop.f32.mrf.mxu3  ;;  %v3132_v7 = vadd.f32 %v3096_v5, %v3002_v19  ;;  %v3003_v3 = vadd.f32 %v2969_v18, %v5967_v56 }
 0x39f   : > { %v3263_v58 = vadd.f32 %v3227_v9, %v3132_v7 }
 0x3a0   : > { %v3360_v12 = vpop.f32.mrf.mxu0 }
 0x3a1   : > { %v6055_v29 = vadd.f32 %v3357_v47, %v3263_v58 }
 0x3a3   : > { %3410 = vst [vmem:[%s6038_s8 + $0x18] sm:$0xff] %v6055_v29 }
 0x3a4   : > { %v3099_v45 = vpop.f32.mrf.mxu2  ;;  %v2971_v33 = vpop.f32.mrf.mxu1 }
 0x3a5   : > { %v3230_v8 = vpop.f32.mrf.mxu3  ;;  %v3133_v48 = vadd.f32 %v3099_v45, %v3003_v3  ;;  %v3004_v6 = vadd.f32 %v2971_v33, %v5973_v53 }
 0x3a7   : > { %v3264_v24 = vadd.f32 %v3230_v8, %v3133_v48 }
 0x3a8   : > { %v3362_v26 = vpop.f32.mrf.mxu0 }
 0x3a9   : > { %v6060_v39 = vadd.f32 %v3360_v12, %v3264_v24 }
 0x3ab   : > { %3411 = vst [vmem:[%s6038_s8 + $0x20] sm:$0xff] %v6060_v39 }
 0x3ac   : > { %v3101_v1 = vpop.f32.mrf.mxu2  ;;  %v2974_v28 = vpop.f32.mrf.mxu1 }
 0x3ad   : > { %v3232_v40 = vpop.f32.mrf.mxu3  ;;  %v3134_v34 = vadd.f32 %v3101_v1, %v3004_v6  ;;  %v3005_v4 = vadd.f32 %v2974_v28, %v5978_v42 }
 0x3af   : > { %v3265_v17 = vadd.f32 %v3232_v40, %v3134_v34 }
 0x3b0   : > { %v3365_v56 = vpop.f32.mrf.mxu0 }
 0x3b1   : > { %v6065_v46 = vadd.f32 %v3362_v26, %v3265_v17 }
 0x3b3   : > { %3412 = vst [vmem:[%s6038_s8 + $0x28] sm:$0xff] %v6065_v46 }
 0x3b4   : > { %v3104_v16 = vpop.f32.mrf.mxu2  ;;  %v2976_v49 = vpop.f32.mrf.mxu1 }
 0x3b5   : > { %v3235_v54 = vpop.f32.mrf.mxu3  ;;  %v3135_v15 = vadd.f32 %v3104_v16, %v3005_v4  ;;  %v3006_v13 = vadd.f32 %v2976_v49, %v5984_v50 }
 0x3b7   : > { %v3266_v62 = vadd.f32 %v3235_v54, %v3135_v15 }
 0x3b8   : > { %v3367_v53 = vpop.f32.mrf.mxu0 }
 0x3b9   : > { %v6070_v23 = vadd.f32 %v3365_v56, %v3266_v62 }
 0x3bb   : > { %3413 = vst [vmem:[%s6038_s8 + $0x30] sm:$0xff] %v6070_v23 }
 0x3bc   : > { %v3106_v59 = vpop.f32.mrf.mxu2  ;;  %v2979_v37 = vpop.f32.mrf.mxu1 }
 0x3bd   : > { %v3237_v41 = vpop.f32.mrf.mxu3  ;;  %v3136_v11 = vadd.f32 %v3106_v59, %v3006_v13  ;;  %v3007_v2 = vadd.f32 %v2979_v37, %v5988_v63 }
 0x3bf   : > { %v3267_v61 = vadd.f32 %v3237_v41, %v3136_v11 }
 0x3c0   : > { %v3370_v42 = vpop.f32.mrf.mxu0 }
 0x3c1   : > { %v6075_v27 = vadd.f32 %v3367_v53, %v3267_v61 }
 0x3c3   : > { %3414 = vst [vmem:[%s6038_s8 + $0x38] sm:$0xff] %v6075_v27 }
 0x3c4   : > { %v3109_v10 = vpop.f32.mrf.mxu2  ;;  %v2981_v60 = vpop.f32.mrf.mxu1 }
 0x3c5   : > { %v3240_v25 = vpop.f32.mrf.mxu3  ;;  %v3137_v31 = vadd.f32 %v3109_v10, %v3007_v2  ;;  %v3008_v0 = vadd.f32 %v2981_v60, %v5998_v51 }
 0x3c7   : > { %v3268_v21 = vadd.f32 %v3240_v25, %v3137_v31 }
 0x3c8   : > { %v3372_v50 = vpop.f32.mrf.mxu0 }
 0x3c9   : > { %v6080_v55 = vadd.f32 %v3370_v42, %v3268_v21 }
 0x3cb   : > { %3415 = vst [vmem:[%s6038_s8 + $0x40] sm:$0xff] %v6080_v55 }
 0x3cc   : > { %v3111_v32 = vpop.f32.mrf.mxu2  ;;  %v2984_v47 = vpop.f32.mrf.mxu1 }
 0x3cd   : > { %v3242_v36 = vpop.f32.mrf.mxu3  ;;  %v3138_v57 = vadd.f32 %v3111_v32, %v3008_v0  ;;  %v3009_v9 = vadd.f32 %v2984_v47, %v6006_v38 }
 0x3cf   : > { %v3269_v19 = vadd.f32 %v3242_v36, %v3138_v57 }
 0x3d0   : > { %v3375_v63 = vpop.f32.mrf.mxu0 }
 0x3d1   : > { %v6085_v5 = vadd.f32 %v3372_v50, %v3269_v19 }
 0x3d3   : > { %3416 = vst [vmem:[%s6038_s8 + $0x48] sm:$0xff] %v6085_v5 }
 0x3d4   : > { %v3114_v7 = vpop.f32.mrf.mxu2  ;;  %v2986_v12 = vpop.f32.mrf.mxu1 }
 0x3d5   : > { %v3245_v18 = vpop.f32.mrf.mxu3  ;;  %v3139_v58 = vadd.f32 %v3114_v7, %v3009_v9  ;;  %v3010_v8 = vadd.f32 %v2986_v12, %v6016_v30 }
 0x3d7   : > { %v3270_v3 = vadd.f32 %v3245_v18, %v3139_v58 }
 0x3d8   : > { %v3377_v51 = vpop.f32.mrf.mxu0 }
 0x3d9   : > { %v6090_v45 = vadd.f32 %v3375_v63, %v3270_v3 }
 0x3db   : > { %3417 = vst [vmem:[%s6038_s8 + $0x50] sm:$0xff] %v6090_v45 }
 0x3dc   : > { %v3116_v48 = vpop.f32.mrf.mxu2  ;;  %v2989_v26 = vpop.f32.mrf.mxu1 }
 0x3dd   : > { %v3247_v33 = vpop.f32.mrf.mxu3  ;;  %v3140_v24 = vadd.f32 %v3116_v48, %v3010_v8  ;;  %v3011_v40 = vadd.f32 %v2989_v26, %v6019_v43 }
 0x3df   : > { %v3271_v6 = vadd.f32 %v3247_v33, %v3140_v24 }
 0x3e0   : > { %v3380_v1 = vpop.f32.mrf.mxu0 }
 0x3e1   : > { %v6095_v38 = vadd.f32 %v3377_v51, %v3271_v6 }
 0x3e3   : > { %3418 = vst [vmem:[%s6038_s8 + $0x58] sm:$0xff] %v6095_v38 }
 0x3e4   : > { %v3119_v34 = vpop.f32.mrf.mxu2  ;;  %v2991_v56 = vpop.f32.mrf.mxu1 }
 0x3e5   : > { %v3250_v28 = vpop.f32.mrf.mxu3  ;;  %v3141_v17 = vadd.f32 %v3119_v34, %v3011_v40  ;;  %v3012_v16 = vadd.f32 %v2991_v56, %v6026_v22 }
 0x3e7   : > { %v3272_v4 = vadd.f32 %v3250_v28, %v3141_v17 }
 0x3e8   : > { %v3382_v54 = vpop.f32.mrf.mxu0 }
 0x3e9   : > { %v6100_v30 = vadd.f32 %v3380_v1, %v3272_v4 }
 0x3eb   : > { %3419 = vst [vmem:[%s6038_s8 + $0x60] sm:$0xff] %v6100_v30 }
 0x3ec   : > { %v3121_v15 = vpop.f32.mrf.mxu2  ;;  %v2994_v53 = vpop.f32.mrf.mxu1 }
 0x3ed   : > { %v3252_v49 = vpop.f32.mrf.mxu3  ;;  %v3142_v62 = vadd.f32 %v3121_v15, %v3012_v16  ;;  %v3013_v59 = vadd.f32 %v2994_v53, %v6029_v52 }
 0x3ef   : > { %v3273_v13 = vadd.f32 %v3252_v49, %v3142_v62 }
 0x3f0   : > { %v3385_v61 = vpop.f32.mrf.mxu0 }
 0x3f1   : > { %v3403_v43 = vadd.f32 %v3382_v54, %v3273_v13 }
 0x3f3   : > { %3420 = vst [vmem:[%s6038_s8 + $0x68] sm:$0xff] %v3403_v43 }
 0x3f4   : > { %v3124_v41 = vpop.f32.mrf.mxu2  ;;  %v2996_v2 = vpop.f32.mrf.mxu1 }
 0x3f5   : > { %v3255_v11 = vpop.f32.mrf.mxu3  ;;  %v3143_v37 = vadd.f32 %v3124_v41, %v3013_v59  ;;  %v3014_v22 = vadd.f32 %v2996_v2, %v6032_v20 }
 0x3f7   : > { %v3274_v42 = vadd.f32 %v3255_v11, %v3143_v37 }
 0x3f8   : > { %v3387_v50 = vpop.f32.mrf.mxu0 }
 0x3f9   : > { %v3404_v10 = vadd.f32 %v3385_v61, %v3274_v42 }
 0x3fb   : > { %3421 = vst [vmem:[%s6038_s8 + $0x70] sm:$0xff] %v3404_v10 }
 0x3fc   : > { %v3126_v25 = vpop.f32.mrf.mxu2 }
 0x3fd   : > { %v3144_v31 = vadd.f32 %v3126_v25, %v3014_v22  ;;  %v3257_v60 = vpop.f32.mrf.mxu3 }
 0x3ff   : > { %v3275_v21 = vadd.f32 %v3257_v60, %v3144_v31  ;;  %3425 = sbr.rel (%p4360_p5) target bundleno = 1030 (0x406), region = 60 }
 0x401   : > { %v3405_v0 = vadd.f32 %v3387_v50, %v3275_v21 }
 0x403   : > { %3422 = vst [vmem:[%s6038_s8 + $0x78] sm:$0xff] %v3405_v0 }
 0x404   : > { %v4909_v52 = vmov 0.0  }
 0x405   : > { %3426 = vst [vmem:[#allocation4] sm:$0x3] %v4909_v52 }
 0x406 PF: > { %v3428_v32 = vadd.f32 %v6045_v14, %v6040_v35  ;;  %v3452_v36 = vmul.f32 %v6040_v35, %v6040_v35  ;;  %v3453_v20 = vmul.f32 %v6045_v14, %v6045_v14  ;;  %v3454_v47 = vmul.f32 %v6050_v44, %v6050_v44 }
 0x407   : > { %v3455_v63 = vmul.f32 %v6055_v29, %v6055_v29  ;;  %v3456_v18 = vmul.f32 %v6060_v39, %v6060_v39  ;;  %v3457_v14 = vmul.f32 %v6065_v46, %v6065_v46  ;;  %v3458_v3 = vmul.f32 %v6070_v23, %v6070_v23 }
 0x408   : > { %v3429_v57 = vadd.f32 %v3428_v32, %v6050_v44  ;;  %v3468_v9 = vadd.f32 %v3453_v20, %v3452_v36  ;;  %v3459_v8 = vmul.f32 %v6075_v27, %v6075_v27  ;;  %v3460_v33 = vmul.f32 %v6080_v55, %v6080_v55 }
 0x409   : > { %v3461_v26 = vmul.f32 %v6085_v5, %v6085_v5  ;;  %v3462_v1 = vmul.f32 %v6090_v45, %v6090_v45  ;;  %v3463_v34 = vmul.f32 %v6095_v38, %v6095_v38  ;;  %v3464_v17 = vmul.f32 %v6100_v30, %v6100_v30 }
 0x40a   : > { %v3430_v19 = vadd.f32 %v3429_v57, %v6055_v29  ;;  %v3469_v35 = vadd.f32 %v3468_v9, %v3454_v47  ;;  %v3465_v4 = vmul.f32 %v3403_v43, %v3403_v43  ;;  %v3466_v15 = vmul.f32 %v3404_v10, %v3404_v10 }
 0x40b   : > { %v3467_v62 = vmul.f32 %v3405_v0, %v3405_v0 }
 0x40c   : > { %v3431_v7 = vadd.f32 %v3430_v19, %v6060_v39  ;;  %v3470_v12 = vadd.f32 %v3469_v35, %v3455_v63  ;;  %v3427_v22 = vld [vmem:[#allocation4] sm:$0x1] }
 0x40e   : > { %v3432_v58 = vadd.f32 %v3431_v7, %v6065_v46  ;;  %v3471_v51 = vadd.f32 %v3470_v12, %v3456_v18 }
 0x410   : > { %v3433_v44 = vadd.f32 %v3432_v58, %v6070_v23  ;;  %v3472_v48 = vadd.f32 %v3471_v51, %v3457_v14 }
 0x412   : > { %v3434_v29 = vadd.f32 %v3433_v44, %v6075_v27  ;;  %v3473_v24 = vadd.f32 %v3472_v48, %v3458_v3 }
 0x414   : > { %v3435_v39 = vadd.f32 %v3434_v29, %v6080_v55  ;;  %v3474_v6 = vadd.f32 %v3473_v24, %v3459_v8 }
 0x416   : > { %v3436_v46 = vadd.f32 %v3435_v39, %v6085_v5  ;;  %v3475_v40 = vadd.f32 %v3474_v6, %v3460_v33 }
 0x418   : > { %v3437_v23 = vadd.f32 %v3436_v46, %v6090_v45  ;;  %v3476_v28 = vadd.f32 %v3475_v40, %v3461_v26 }
 0x41a   : > { %v3438_v27 = vadd.f32 %v3437_v23, %v6095_v38  ;;  %v3477_v56 = vadd.f32 %v3476_v28, %v3462_v1 }
 0x41c   : > { %v3439_v55 = vadd.f32 %v3438_v27, %v6100_v30  ;;  %v3478_v16 = vadd.f32 %v3477_v56, %v3463_v34 }
 0x41e   : > { %v3440_v5 = vadd.f32 %v3439_v55, %v3403_v43  ;;  %v3479_v49 = vadd.f32 %v3478_v16, %v3464_v17 }
 0x420   : > { %v3441_v54 = vadd.f32 %v3440_v5, %v3404_v10  ;;  %v3480_v53 = vadd.f32 %v3479_v49, %v3465_v4  ;;  %v3451_v10 = vld [vmem:[#allocation4 + $0x1] sm:$0x1] }
 0x422   : > { %v3442_v45 = vadd.f32 %v3441_v54, %v3405_v0  ;;  %v3481_v59 = vadd.f32 %v3480_v53, %v3466_v15 }
 0x424   : > { %v3443_v13 = vrot.slane %v3442_v45, 4  ;;  %v3482_v38 = vadd.f32 %v3481_v59, %v3467_v62 }
 0x426   : > { %v3444_v41 = vadd.f32 %v3443_v13, %v3442_v45  ;;  %v3483_v37 = vrot.slane %v3482_v38, 4 }
 0x428   : > { %v3445_v11 = vrot.slane %v3444_v41, 2  ;;  %v3484_v42 = vadd.f32 %v3483_v37, %v3482_v38 }
 0x42a   : > { %v3446_v61 = vadd.f32 %v3445_v11, %v3444_v41  ;;  %v3485_v30 = vrot.slane %v3484_v42, 2 }
 0x42c   : > { %v3447_v2 = vrot.slane %v3446_v61, 1  ;;  %v3486_v43 = vadd.f32 %v3485_v30, %v3484_v42 }
 0x42e   : > { %v3448_v25 = vadd.f32 %v3447_v2, %v3446_v61  ;;  %v3487_v60 = vrot.slane %v3486_v43, 1 }
 0x430   : > { %v3449_v31 = vadd.f32 %v3448_v25, %v3427_v22  ;;  %v3488_v21 = vadd.f32 %v3487_v60, %v3486_v43 }
 0x432   : > { %3450 = vst [vmem:[#allocation4] sm:$0x1] %v3449_v31  ;;  %v3489_v50 = vadd.f32 %v3488_v21, %v3451_v10 }
 0x434   : > { %3490 = vst [vmem:[#allocation4 + $0x1] sm:$0x1] %v3489_v50 }
 0x435 PF: > { %p4361_p7 = scmp.ne.s32.totalorder %s4880_s16, 2 }
 0x436   : > { %s4515_s11 = sshll.u32 (!%p4361_p7), %s4876_s15, 7 }
 0x437   : > { %3494 = sbr.rel (%p4361_p7) target bundleno = 1133 (0x46d), region = 64  ;;  %s6153_s22 = scalar_lea.vmem (!%p4361_p7), %s5080_s4, %s4515_s11 [#allocation11] }
 0x438   : > { %s6165_s15 = scalar_lea.vmem (!%p4361_p7), %s5067_s6, %s4515_s11 [#allocation5] }
 0x43c   : > { %v3495_v0 = vld [vmem:[#allocation4] sm:$0x1]  ;;  %v3497_v52 = vld [vmem:[#allocation4 + $0x1] sm:$0x1]  ;;  %v3515_v14 = vld [vmem:[%s6153_s22 + $0x8] sm:$0xff] }
 0x43d   : > { %v3496_v32 = vmul.f32 0.00390625, %v3495_v0  ;;  %v3498_v36 = vmul.f32 0.00390625, %v3497_v52  ;;  %v3514_v18 = vld [vmem:[%s6153_s22] sm:$0xff]  ;;  %v3516_v12 = vld [vmem:[%s6153_s22 + $0x10] sm:$0xff]  ;;  %v3517_v44 = vld [vmem:[%s6153_s22 + $0x18] sm:$0xff] }
 0x43e   : > { %v3518_v3 = vld [vmem:[%s6153_s22 + $0x20] sm:$0xff]  ;;  %v3519_v51 = vld [vmem:[%s6153_s22 + $0x28] sm:$0xff]  ;;  %v3520_v8 = vld [vmem:[%s6153_s22 + $0x30] sm:$0xff] }
 0x43f   : > { %v3499_v20 = vmul.f32 %v3496_v32, %v3496_v32  ;;  %v6156_v35 = vperm.slane %v3496_v32, 0  ;;  %v3521_v46 = vld [vmem:[%s6153_s22 + $0x38] sm:$0xff]  ;;  %v3522_v26 = vld [vmem:[%s6153_s22 + $0x40] sm:$0xff]  ;;  %v3523_v34 = vld [vmem:[%s6153_s22 + $0x48] sm:$0xff] }
 0x440   : > { %v3524_v28 = vld [vmem:[%s6153_s22 + $0x50] sm:$0xff]  ;;  %v3531_v55 = vld [vmem:[%s6165_s15] sm:$0xff]  ;;  %v3532_v17 = vld [vmem:[%s6165_s15 + $0x8] sm:$0xff] }
 0x441   : > { %v3500_v57 = vsub.f32 %v3498_v36, %v3499_v20  ;;  %v3548_v48 = vsub.f32 %v3514_v18, %v6156_v35  ;;  %v3549_v39 = vsub.f32 %v3515_v14, %v6156_v35  ;;  %v3550_v33 = vsub.f32 %v3516_v12, %v6156_v35  ;;  %v3533_v56 = vld [vmem:[%s6165_s15 + $0x10] sm:$0xff]  ;;  %v3534_v49 = vld [vmem:[%s6165_s15 + $0x18] sm:$0xff]  ;;  %v3535_v53 = vld [vmem:[%s6165_s15 + $0x20] sm:$0xff] }
 0x442   : > { %v3551_v24 = vsub.f32 %v3517_v44, %v6156_v35  ;;  %v3552_v23 = vsub.f32 %v3518_v3, %v6156_v35  ;;  %v3553_v1 = vsub.f32 %v3519_v51, %v6156_v35  ;;  %v3554_v27 = vsub.f32 %v3520_v8, %v6156_v35  ;;  %v3525_v62 = vld [vmem:[%s6153_s22 + $0x58] sm:$0xff]  ;;  %v3526_v11 = vld [vmem:[%s6153_s22 + $0x60] sm:$0xff]  ;;  %v3536_v2 = vld [vmem:[%s6165_s15 + $0x28] sm:$0xff] }
 0x443   : > { %v3501_v47 = vadd.f32 1e-05, %v3500_v57  ;;  %v3555_v5 = vsub.f32 %v3521_v46, %v6156_v35  ;;  %v3556_v4 = vsub.f32 %v3522_v26, %v6156_v35  ;;  %v3557_v41 = vsub.f32 %v3523_v34, %v6156_v35  ;;  %v3527_v22 = vld [vmem:[%s6153_s22 + $0x68] sm:$0xff]  ;;  %v3537_v43 = vld [vmem:[%s6165_s15 + $0x30] sm:$0xff]  ;;  %v3538_v50 = vld [vmem:[%s6165_s15 + $0x38] sm:$0xff] }
 0x444   : > { %v3558_v38 = vsub.f32 %v3524_v28, %v6156_v35  ;;  %v3559_v60 = vsub.f32 %v3525_v62, %v6156_v35  ;;  %v3528_v10 = vld [vmem:[%s6153_s22 + $0x70] sm:$0xff]  ;;  %v3560_v52 = vsub.f32 %v3526_v11, %v6156_v35  ;;  %v3529_v32 = vld [vmem:[%s6153_s22 + $0x78] sm:$0xff]  ;;  %v3539_v20 = vld [vmem:[%s6165_s15 + $0x40] sm:$0xff] }
 0x445   : > { %4690 = vrsqrt.f32 %v3501_v47  ;;  %vm3508_vm15 = vweird.f32 %v3501_v47  ;;  %v3563_v12 = vsub.f32 %v3529_v32, %v6156_v35  ;;  %v3542_v3 = vld [vmem:[%s6165_s15 + $0x58] sm:$0xff]  ;;  %v3543_v8 = vld [vmem:[%s6165_s15 + $0x60] sm:$0xff]  ;;  %v3545_v46 = vld [vmem:[%s6165_s15 + $0x70] sm:$0xff] }
 0x44b   : > { %v4691_v19 = vpop.eup %4690 }
 0x44c   : > { %v3503_v63 = vmul.f32 %v4691_v19, %v3501_v47  ;;  %vm3509_vm0 = vweird.f32 %v4691_v19  ;;  %v3561_v47 = vsub.f32 %v3527_v22, %v6156_v35 }
 0x44d   : > { %vm3510_vm1 = vmor %vm3508_vm15, %vm3509_vm0 }
 0x44e   : > { %v3504_v9 = vmul.f32 %v4691_v19, %v3503_v63  ;;  %v3540_v63 = vld [vmem:[%s6165_s15 + $0x48] sm:$0xff] }
 0x450   : > { %v3505_v7 = vmul.f32 0.5, %v3504_v9 }
 0x452   : > { %v3506_v58 = vsub.f32 1.5, %v3505_v7  ;;  %v3562_v7 = vsub.f32 %v3528_v10, %v6156_v35 }
 0x454   : > { %v3507_v29 = vmul.f32 %v4691_v19, %v3506_v58  ;;  %v3541_v58 = vld [vmem:[%s6165_s15 + $0x50] sm:$0xff] }
 0x456   : > { %v3511_v6 = vsel %vm3510_vm1, %v4691_v19, %v3507_v29 }
 0x457   : > { %v6175_v40 = vperm.slane %v3511_v6, 0 }
 0x459   : > { %v3565_v16 = vmul.f32 %v6175_v40, %v3548_v48  ;;  %v3566_v54 = vmul.f32 %v6175_v40, %v3549_v39  ;;  %v3567_v15 = vmul.f32 %v6175_v40, %v3550_v33  ;;  %v3568_v45 = vmul.f32 %v6175_v40, %v3551_v24  ;;  %v3544_v33 = vld [vmem:[%s6165_s15 + $0x68] sm:$0xff] }
 0x45a   : > { %v3569_v13 = vmul.f32 %v6175_v40, %v3552_v23  ;;  %v3570_v59 = vmul.f32 %v6175_v40, %v3553_v1  ;;  %v3571_v30 = vmul.f32 %v6175_v40, %v3554_v27  ;;  %v3572_v31 = vmul.f32 %v6175_v40, %v3555_v5  ;;  %v3546_v23 = vld [vmem:[%s6165_s15 + $0x78] sm:$0xff] }
 0x45b   : > { %v3581_v37 = vadd.f32 %v3565_v16, %v3531_v55  ;;  %v3582_v61 = vadd.f32 %v3566_v54, %v3532_v17  ;;  %v3583_v42 = vadd.f32 %v3567_v15, %v3533_v56  ;;  %v3584_v25 = vadd.f32 %v3568_v45, %v3534_v49 }
 0x45c   : > { %v3585_v21 = vadd.f32 %v3569_v13, %v3535_v53  ;;  %v3573_v0 = vmul.f32 %v6175_v40, %v3556_v4  ;;  %v3586_v36 = vadd.f32 %v3570_v59, %v3536_v2  ;;  %v3574_v57 = vmul.f32 %v6175_v40, %v3557_v41 }
 0x45d   : > { %3597 = vst [vmem:[%s6153_s22] sm:$0xff] %v3581_v37  ;;  %v3587_v19 = vadd.f32 %v3571_v30, %v3537_v43  ;;  %v3575_v9 = vmul.f32 %v6175_v40, %v3558_v38  ;;  %v3588_v18 = vadd.f32 %v3572_v31, %v3538_v50  ;;  %v3576_v14 = vmul.f32 %v6175_v40, %v3559_v60 }
 0x45e   : > { %3598 = vst [vmem:[%s6153_s22 + $0x8] sm:$0xff] %v3582_v61  ;;  %v3589_v44 = vadd.f32 %v3573_v0, %v3539_v20  ;;  %v3577_v51 = vmul.f32 %v6175_v40, %v3560_v52  ;;  %v3590_v29 = vadd.f32 %v3574_v57, %v3540_v63  ;;  %v3578_v48 = vmul.f32 %v6175_v40, %v3561_v47 }
 0x45f   : > { %3599 = vst [vmem:[%s6153_s22 + $0x10] sm:$0xff] %v3583_v42  ;;  %v3591_v39 = vadd.f32 %v3575_v9, %v3541_v58  ;;  %v3579_v35 = vmul.f32 %v6175_v40, %v3562_v7  ;;  %v3592_v24 = vadd.f32 %v3576_v14, %v3542_v3  ;;  %v3580_v26 = vmul.f32 %v6175_v40, %v3563_v12 }
 0x460   : > { %3600 = vst [vmem:[%s6153_s22 + $0x18] sm:$0xff] %v3584_v25  ;;  %v3593_v6 = vadd.f32 %v3577_v51, %v3543_v8  ;;  %v3594_v1 = vadd.f32 %v3578_v48, %v3544_v33 }
 0x461   : > { %3601 = vst [vmem:[%s6153_s22 + $0x20] sm:$0xff] %v3585_v21  ;;  %v3595_v27 = vadd.f32 %v3579_v35, %v3545_v46  ;;  %v3596_v34 = vadd.f32 %v3580_v26, %v3546_v23 }
 0x462   : > { %3602 = vst [vmem:[%s6153_s22 + $0x28] sm:$0xff] %v3586_v36 }
 0x463   : > { %3603 = vst [vmem:[%s6153_s22 + $0x30] sm:$0xff] %v3587_v19 }
 0x464   : > { %3604 = vst [vmem:[%s6153_s22 + $0x38] sm:$0xff] %v3588_v18 }
 0x465   : > { %3605 = vst [vmem:[%s6153_s22 + $0x40] sm:$0xff] %v3589_v44 }
 0x466   : > { %3606 = vst [vmem:[%s6153_s22 + $0x48] sm:$0xff] %v3590_v29 }
 0x467   : > { %3607 = vst [vmem:[%s6153_s22 + $0x50] sm:$0xff] %v3591_v39 }
 0x468   : > { %3608 = vst [vmem:[%s6153_s22 + $0x58] sm:$0xff] %v3592_v24 }
 0x469   : > { %3609 = vst [vmem:[%s6153_s22 + $0x60] sm:$0xff] %v3593_v6 }
 0x46a   : > { %3610 = vst [vmem:[%s6153_s22 + $0x68] sm:$0xff] %v3594_v1 }
 0x46b   : > { %3611 = vst [vmem:[%s6153_s22 + $0x70] sm:$0xff] %v3595_v27 }
 0x46c   : > { %3612 = vst [vmem:[%s6153_s22 + $0x78] sm:$0xff] %v3596_v34 }
 0x46d PF: > { %s4516_s16 = sshll.u32 %s4884_s17, 8  ;;  %s3626_s10 = sshll.u32 %s5080_s4, 4  ;;  %s3627_s10 = int_to_ptr.vmem [resolvable:$true] %s3626_s10 }
 0x46e   : > { %s3625_s9 = scalar_lea.hbm %s6295_s3, %s4516_s16  ;;  %s3614_s2 = scalar_lea.sflag [#allocation7], %s5063_s25 }
 0x46f   : > { %s3628_s1 = sshll.u32 %s3625_s9, 4  ;;  %s4802_s17 = scalar_lea.hbm %s6295_s3, 512  ;;  %s3629_s1 = int_to_ptr.hbm [resolvable:$true] %s3628_s1 }
 0x470   : > { %s4796_s24 = sshra.s32 %s3629_s1, 4  ;;  %s4797_s24 = int_to_ptr.hbm [resolvable:$true] %s4796_s24 }
 0x471   : > { %s4798_s26 = scalar_lea.hbm %s4797_s24, 256  ;;  %p4803_p8 = scmp.lt.s32.totalorder %s4797_s24, %s6295_s3 }
 0x472   : > { %p4799_p9 = scmp.ne.s32.totalorder %s4797_s24, %s4798_s26  ;;  %p4804_p4 = scmp.lt.s32.totalorder %s4802_s17, %s4798_s26 }
 0x474   : > { %p4800_p2 = pnand %p4799_p9, %p5032_p0  ;;  %p4805_p1 = por %p4804_p4, %p4803_p8 }
 0x476   : > { %p4801_p10 = pneg %p4800_p2 }
 0x478   : > { %p4806_p11 = pnand %p4805_p1, %p4801_p10 }
 0x47a   : > { %4809 = shalt.err (!%p4806_p11)
}
 0x47b   : > { %s4910_s25 = smov 128   ;;  %s4911_s4 = smov 8  }
 0x47c   : > { %4575 = dma.vmem_to_hbm [thread:$0]  (%p5032_p0), %s3627_s10, 4096, %s3629_s1, %s3614_s2, %s4910_s25, %s4910_s25, %s4911_s4  }
 0x47d PF: > { %p4597_p12 = scmp.ge.s32.totalorder %s4900_s21, 2  ;;  %s3643_s11 = sand.u32 1, %s4864_s12  }
 0x47e   : > { %s3644_s22 = scalar_lea.sflag [#allocation7], %s3643_s11 }
 0x47f   : > { %p4589_p13 = pnand %p4597_p12, %p5001_p6 }
 0x481   : > { %p4590_p3 = pneg %p4589_p13 }
 0x483   : > { %4859 = dma.done.wait (%p4590_p3), %s3644_s22, 4096  }
 0x484   : > { %4861 = vsyncadd (%p4590_p3), %s3644_s22, 4294963200  ;;  %s20_s21 = sadd.s32 1, %s4900_s21   ;;  %s6321_s16 = sld [smem:[#allocation15_spill]] }
 0x485   : > { %p17_p5 = scmp.ge.s32.totalorder %s20_s21, 14   ;;  %s6322_s30 = sld [smem:[#allocation16_spill]] }
 0x486   : > { %s6323_s19 = sld [smem:[#allocation17_spill]]  ;;  %s6324_s12 = smov %s4868_s13 }
 0x487   : > { %s6325_s13 = smov %s4872_s14  ;;  %s6326_s14 = smov %s5058_s29 }
 0x488   : > { %s6327_s15 = smov %s4888_s18  ;;  %s6328_s17 = smov %s4896_s20 }
 0x489   : > { %s6330_s20 = smov %s6340_s5  ;;  %19 = sbr.rel (!%p17_p5) target bundleno = 12 (0xc), region = 131 }
 0x48b   : > { %s6329_s18 = smov %s6322_s30 }
 0x48e   :  { %3650 = vsyncpa [#allocation6], 1 }
 0x48f   :  { %3652 = vsyncpa [#allocation6 + $0x1], 1 }
 0x490   :  { %3653 = vsyncpa [#allocation9], 1 }
 0x491   :  { %3654 = vsyncpa [#allocation7], 1 }
 0x492   :  { %3656 = vsyncpa [#allocation7 + $0x1], 1 }

</bundles_post_ra>
